<compile_context>
chip_gen: v7x
topology: tpu7x:2x2x1
jax: 0.10.0
libtpu: 0.0.40
codegen_flags: <defaults>
</compile_context>

<pallas_src>
import jax
import jax.numpy as jnp
from jax import lax
from jax.experimental import pallas as pl
from jax.experimental.pallas import tpu as pltpu


# --------------------------------------------------------------------------- kernel ---

def _fused_forward_kernel(x_ref, a1_ref, c1_ref, a2_ref, c2_ref, a3_ref, c3_ref,
                          w4_ref, b4_ref, o_ref):
    """One batch tile of the whole network: 3x (matmul + bias + ReLU) + final Linear.

    x_ref : [TB, 243]      flattened (C,H,W) input tile
    a*_ref: dense conv+pool operator matrices (VMEM-resident, fetched once)
    c*_ref: [1, N_l] bias rows (bias is invariant under AvgPool, applied once per layer)
    o_ref : [TB, 1]        network output tile (model output is a single scalar/sample)
    """
    h = x_ref[...]                                                          # [TB, 243]
    h = jnp.maximum(jnp.dot(h, a1_ref[...],
                            preferred_element_type=jnp.float32) + c1_ref[...], 0.0)
    h = jnp.maximum(jnp.dot(h, a2_ref[...],
                            preferred_element_type=jnp.float32) + c2_ref[...], 0.0)
    h = jnp.maximum(jnp.dot(h, a3_ref[...],
                            preferred_element_type=jnp.float32) + c3_ref[...], 0.0)
    o_ref[...] = (jnp.dot(h, w4_ref[...],
                          preferred_element_type=jnp.float32) + b4_ref[...])  # [TB, 1]


# -------------------------------------------------------------------------- wrapper ---

def _pick_batch_tile(batch):
    # At least 2 grid tiles when the batch allows it (keeps both v7x TensorCores busy),
    # tile rows a multiple of 8 (sublane), capped at 128 MXU rows per step.
    return int(min(128, 8 * pl.cdiv(pl.cdiv(batch, 2), 8)))


@jax.jit
def cnn_3prv_pool_forward(x_nchw, a1, c1, a2, c2, a3, c3, w4, b4):
    """x_nchw: [B, 3, 9, 9] float32 -> [B, 1] float32."""
    batch = x_nchw.shape[0]
    x_flat = x_nchw.reshape(batch, -1).astype(jnp.float32)   # (C,H,W) flatten, free
    tb = _pick_batch_tile(batch)
    num_tiles = pl.cdiv(batch, tb)
    padded = num_tiles * tb
    if padded != batch:
        x_flat = jnp.pad(x_flat, ((0, padded - batch), (0, 0)))

    k1 = x_flat.shape[1]
    n_out = w4.shape[1]

    out = pl.pallas_call(
        _fused_forward_kernel,
        out_shape=jax.ShapeDtypeStruct((padded, n_out), jnp.float32),
        grid=(num_tiles,),
        in_specs=[
            pl.BlockSpec((tb, k1), lambda i: (i, 0)),        # batch tile of inputs
            pl.BlockSpec(a1.shape, lambda i: (0, 0)),        # weights: fetched once,
            pl.BlockSpec(c1.shape, lambda i: (0, 0)),        # stay resident in VMEM
            pl.BlockSpec(a2.shape, lambda i: (0, 0)),
            pl.BlockSpec(c2.shape, lambda i: (0, 0)),
            pl.BlockSpec(a3.shape, lambda i: (0, 0)),
            pl.BlockSpec(c3.shape, lambda i: (0, 0)),
            pl.BlockSpec(w4.shape, lambda i: (0, 0)),
            pl.BlockSpec(b4.shape, lambda i: (0, 0)),
        ],
        out_specs=pl.BlockSpec((tb, n_out), lambda i: (i, 0)),
        compiler_params=pltpu.CompilerParams(
            dimension_semantics=("parallel",),               # megacore over batch tiles
            vmem_limit_bytes=48 * 1024 * 1024),              # fits v7x's 64 MiB VMEM
    )(x_flat, a1, c1, a2, c2, a3, c3, w4, b4)
    return out[:batch]


# ----------------------------------------------- one-time parameter preprocessing -----

def _conv_pool_operator(w_oihw, b_o, in_chw, pad):
    """Fold Conv2d(k=3, padding=pad) + AvgPool2d(2, stride=1) into the exact affine map
    flat_out = flat_in @ A + c, with flattening in PyTorch (C, H, W) order.
    Runs once at init time (not in the forward path)."""
    cin, h, w = in_chw
    k = cin * h * w
    basis = jnp.eye(k, dtype=jnp.float32).reshape(k, cin, h, w)
    y = lax.conv_general_dilated(
        basis, jnp.asarray(w_oihw, jnp.float32), window_strides=(1, 1),
        padding=((pad, pad), (pad, pad)),
        dimension_numbers=("NCHW", "OIHW", "NCHW"),
        precision=lax.Precision.HIGHEST)
    y = lax.reduce_window(y, 0.0, lax.add, (1, 1, 2, 2), (1, 1, 1, 1), "VALID") * 0.25
    cout, ho, wo = y.shape[1], y.shape[2], y.shape[3]
    a = y.reshape(k, cout * ho * wo)
    c = jnp.broadcast_to(jnp.asarray(b_o, jnp.float32)[:, None, None],
                         (cout, ho, wo)).reshape(1, cout * ho * wo)
    return a, c, (cout, ho, wo)


def build_params(w1, b1, w2, b2, w3, b3, w_lin, b_lin, in_chw=(3, 9, 9)):
    """Takes parameters in native PyTorch layouts (Conv2d [Cout,Cin,3,3] + [Cout],
    Linear [1,256] + [1]) and returns the fused-kernel operands."""
    a1, c1, s1 = _conv_pool_operator(w1, b1, in_chw, pad=1)   # 243  -> 1024
    a2, c2, s2 = _conv_pool_operator(w2, b2, s1, pad=0)       # 1024 -> 800
    a3, c3, _ = _conv_pool_operator(w3, b3, s2, pad=0)        # 800  -> 256
    w4 = jnp.asarray(w_lin, jnp.float32).T                    # [256, 1]
    b4 = jnp.asarray(b_lin, jnp.float32).reshape(1, -1)       # [1, 1]
    return a1, c1, a2, c2, a3, c3, w4, b4


# ----------------------------------------------------------- pure-JAX reference -------

@jax.jit
def _reference_forward(x_nchw, w1, b1, w2, b2, w3, b3, w_lin, b_lin):
    """Direct translation of the PyTorch module (conv -> +bias -> avgpool -> relu)."""
    def stage(x, w, b, pad):
        y = lax.conv_general_dilated(
            x, w, (1, 1), ((pad, pad), (pad, pad)),
            dimension_numbers=("NCHW", "OIHW", "NCHW"),
            precision=lax.Precision.HIGHEST)
        y = y + b[None, :, None, None]
        y = lax.reduce_window(y, 0.0, lax.add, (1, 1, 2, 2), (1, 1, 1, 1), "VALID") * 0.25
        return jnp.maximum(y, 0.0)

    x = stage(x_nchw, w1, b1, 1)
    x = stage(x, w2, b2, 0)
    x = stage(x, w3, b3, 0)
    x = x.reshape(x.shape[0], -1)                              # nn.Flatten: (C,H,W) order
    return jnp.dot(x, w_lin.T, precision=lax.Precision.HIGHEST) + b_lin.reshape(1, -1)


# ------------------------------------------------------------------------------ main --

if __name__ == "__main__":
    key = jax.random.PRNGKey(0)
    ks = jax.random.split(key, 9)

    # Parameters in native PyTorch layouts.
    w1 = 0.1 * jax.random.normal(ks[0], (16, 3, 3, 3), jnp.float32)
    b1 = 0.1 * jax.random.normal(ks[1], (16,), jnp.float32)
    w2 = 0.1 * jax.random.normal(ks[2], (32, 16, 3, 3), jnp.float32)
    b2 = 0.1 * jax.random.normal(ks[3], (32,), jnp.float32)
    w3 = 0.1 * jax.random.normal(ks[4], (64, 32, 3, 3), jnp.float32)
    b3 = 0.1 * jax.random.normal(ks[5], (64,), jnp.float32)
    w_lin = 0.1 * jax.random.normal(ks[6], (1, 4 * 64), jnp.float32)
    b_lin = 0.1 * jax.random.normal(ks[7], (1,), jnp.float32)

    # One-time preprocessing of the weights into fused layer operators.
    params = build_params(w1, b1, w2, b2, w3, b3, w_lin, b_lin, in_chw=(3, 9, 9))

    # Linear(4*64, 1) implies a 9x9 spatial input (9 -> 8 -> 5 -> 2).  Batch 16 gives two
    # batch tiles of 8, exercising the parallel grid axis.
    x = jax.random.normal(ks[8], (16, 3, 9, 9), jnp.float32)

    y = cnn_3prv_pool_forward(x, *params)
    jax.block_until_ready(y)
    assert y.shape == (16, 1), y.shape

    # Sanity check against a direct (conv/pool/relu/linear) reference.
    y_ref = _reference_forward(x, w1, b1, w2, b2, w3, b3, w_lin, b_lin)
    scale = float(jnp.max(jnp.abs(y_ref))) + 1e-6
    err = float(jnp.max(jnp.abs(y - y_ref)))
    assert err / scale < 2e-2, f"mismatch vs reference: max_abs_err={err}, scale={scale}"

    print("KERNEL_OK")
</pallas_src>

<mosaic_0001>
module attributes {stable_mosaic.version = 11 : i64} {
  func.func @_fused_forward_kernel(%arg0: i32, %arg1: memref<8x243xf32, #tpu.memory_space<vmem>>, %arg2: memref<243x1024xf32, #tpu.memory_space<vmem>>, %arg3: memref<1x1024xf32, #tpu.memory_space<vmem>>, %arg4: memref<1024x800xf32, #tpu.memory_space<vmem>>, %arg5: memref<1x800xf32, #tpu.memory_space<vmem>>, %arg6: memref<800x256xf32, #tpu.memory_space<vmem>>, %arg7: memref<1x256xf32, #tpu.memory_space<vmem>>, %arg8: memref<256x1xf32, #tpu.memory_space<vmem>>, %arg9: memref<1x1xf32, #tpu.memory_space<vmem>>, %arg10: memref<8x1xf32, #tpu.memory_space<vmem>>) attributes {dimension_semantics = [#tpu.dimension_semantics<parallel>], iteration_bounds = array<i64: 2>, scalar_prefetch = 0 : i64, scratch_operands = 0 : i64, tpu.core_type = #tpu.core_type<tc>, window_params = [{transform_indices = @transform_0, window_bounds = array<i64: 8, 243>}, {pipeline_mode = #tpu.pipeline_mode<synchronous>, transform_indices = @transform_1, window_bounds = array<i64: 243, 1024>}, {pipeline_mode = #tpu.pipeline_mode<synchronous>, transform_indices = @transform_2, window_bounds = array<i64: 1, 1024>}, {pipeline_mode = #tpu.pipeline_mode<synchronous>, transform_indices = @transform_3, window_bounds = array<i64: 1024, 800>}, {pipeline_mode = #tpu.pipeline_mode<synchronous>, transform_indices = @transform_4, window_bounds = array<i64: 1, 800>}, {pipeline_mode = #tpu.pipeline_mode<synchronous>, transform_indices = @transform_5, window_bounds = array<i64: 800, 256>}, {pipeline_mode = #tpu.pipeline_mode<synchronous>, transform_indices = @transform_6, window_bounds = array<i64: 1, 256>}, {pipeline_mode = #tpu.pipeline_mode<synchronous>, transform_indices = @transform_7, window_bounds = array<i64: 256, 1>}, {pipeline_mode = #tpu.pipeline_mode<synchronous>, transform_indices = @transform_8, window_bounds = array<i64: 1, 1>}, {transform_indices = @transform_9, window_bounds = array<i64: 8, 1>}]} {
    %c0 = arith.constant 0 : index
    %c0_0 = arith.constant 0 : index
    %0 = vector.load %arg1[%c0, %c0_0] : memref<8x243xf32, #tpu.memory_space<vmem>>, vector<8x243xf32>
    %c0_1 = arith.constant 0 : index
    %c0_2 = arith.constant 0 : index
    %1 = vector.load %arg2[%c0_1, %c0_2] : memref<243x1024xf32, #tpu.memory_space<vmem>>, vector<243x1024xf32>
    %cst = arith.constant dense<0.000000e+00> : vector<8x1024xf32>
    %2 = tpu.matmul %0, %1, %cst {dimension_numbers = #tpu.dot_dimension_numbers<[1], [0], [0], [1], [0, 0, 1, 1], [], []>} : vector<8x243xf32>, vector<243x1024xf32>, vector<8x1024xf32> -> vector<8x1024xf32>
    %c0_3 = arith.constant 0 : index
    %c0_4 = arith.constant 0 : index
    %3 = vector.load %arg3[%c0_3, %c0_4] : memref<1x1024xf32, #tpu.memory_space<vmem>>, vector<1x1024xf32>
    %4 = vector.broadcast %3 : vector<1x1024xf32> to vector<8x1024xf32>
    %5 = arith.addf %2, %4 : vector<8x1024xf32>
    %cst_5 = arith.constant 0.000000e+00 : f32
    %6 = vector.broadcast %cst_5 : f32 to vector<8x1024xf32>
    %7 = arith.maximumf %5, %6 : vector<8x1024xf32>
    %c0_6 = arith.constant 0 : index
    %c0_7 = arith.constant 0 : index
    %8 = vector.load %arg4[%c0_6, %c0_7] : memref<1024x800xf32, #tpu.memory_space<vmem>>, vector<1024x800xf32>
    %cst_8 = arith.constant dense<0.000000e+00> : vector<8x800xf32>
    %9 = tpu.matmul %7, %8, %cst_8 {dimension_numbers = #tpu.dot_dimension_numbers<[1], [0], [0], [1], [0, 0, 1, 1], [], []>} : vector<8x1024xf32>, vector<1024x800xf32>, vector<8x800xf32> -> vector<8x800xf32>
    %c0_9 = arith.constant 0 : index
    %c0_10 = arith.constant 0 : index
    %10 = vector.load %arg5[%c0_9, %c0_10] : memref<1x800xf32, #tpu.memory_space<vmem>>, vector<1x800xf32>
    %11 = vector.broadcast %10 : vector<1x800xf32> to vector<8x800xf32>
    %12 = arith.addf %9, %11 : vector<8x800xf32>
    %cst_11 = arith.constant 0.000000e+00 : f32
    %13 = vector.broadcast %cst_11 : f32 to vector<8x800xf32>
    %14 = arith.maximumf %12, %13 : vector<8x800xf32>
    %c0_12 = arith.constant 0 : index
    %c0_13 = arith.constant 0 : index
    %15 = vector.load %arg6[%c0_12, %c0_13] : memref<800x256xf32, #tpu.memory_space<vmem>>, vector<800x256xf32>
    %cst_14 = arith.constant dense<0.000000e+00> : vector<8x256xf32>
    %16 = tpu.matmul %14, %15, %cst_14 {dimension_numbers = #tpu.dot_dimension_numbers<[1], [0], [0], [1], [0, 0, 1, 1], [], []>} : vector<8x800xf32>, vector<800x256xf32>, vector<8x256xf32> -> vector<8x256xf32>
    %c0_15 = arith.constant 0 : index
    %c0_16 = arith.constant 0 : index
    %17 = vector.load %arg7[%c0_15, %c0_16] : memref<1x256xf32, #tpu.memory_space<vmem>>, vector<1x256xf32>
    %18 = vector.broadcast %17 : vector<1x256xf32> to vector<8x256xf32>
    %19 = arith.addf %16, %18 : vector<8x256xf32>
    %cst_17 = arith.constant 0.000000e+00 : f32
    %20 = vector.broadcast %cst_17 : f32 to vector<8x256xf32>
    %21 = arith.maximumf %19, %20 : vector<8x256xf32>
    %c0_18 = arith.constant 0 : index
    %c0_19 = arith.constant 0 : index
    %22 = vector.load %arg8[%c0_18, %c0_19] : memref<256x1xf32, #tpu.memory_space<vmem>>, vector<256x1xf32>
    %cst_20 = arith.constant dense<0.000000e+00> : vector<8x1xf32>
    %23 = tpu.matmul %21, %22, %cst_20 {dimension_numbers = #tpu.dot_dimension_numbers<[1], [0], [0], [1], [0, 0, 1, 1], [], []>} : vector<8x256xf32>, vector<256x1xf32>, vector<8x1xf32> -> vector<8x1xf32>
    %c0_21 = arith.constant 0 : index
    %c0_22 = arith.constant 0 : index
    %24 = vector.load %arg9[%c0_21, %c0_22] : memref<1x1xf32, #tpu.memory_space<vmem>>, vector<1x1xf32>
    %25 = vector.broadcast %24 : vector<1x1xf32> to vector<8x1xf32>
    %26 = arith.addf %23, %25 : vector<8x1xf32>
    %c0_23 = arith.constant 0 : index
    %c0_24 = arith.constant 0 : index
    %27 = vector.load %arg10[%c0_23, %c0_24] : memref<8x1xf32, #tpu.memory_space<vmem>>, vector<8x1xf32>
    tpu.vector_store %arg10[%c0_23, %c0_24], %26 {strides = array<i32>} : memref<8x1xf32, #tpu.memory_space<vmem>>, vector<8x1xf32>,
    return
  }
  func.func @transform_0(%arg0: i32) -> (i32, i32) {
    %c0_i32 = arith.constant 0 : i32
    %c0_i32_0 = arith.constant 0 : i32
    return %arg0, %c0_i32 : i32, i32
  }
  func.func @transform_1(%arg0: i32) -> (i32, i32) {
    %c0_i32 = arith.constant 0 : i32
    %c0_i32_0 = arith.constant 0 : i32
    %c0_i32_1 = arith.constant 0 : i32
    return %c0_i32, %c0_i32_0 : i32, i32
  }
  func.func @transform_2(%arg0: i32) -> (i32, i32) {
    %c0_i32 = arith.constant 0 : i32
    %c0_i32_0 = arith.constant 0 : i32
    %c0_i32_1 = arith.constant 0 : i32
    return %c0_i32, %c0_i32_0 : i32, i32
  }
  func.func @transform_3(%arg0: i32) -> (i32, i32) {
    %c0_i32 = arith.constant 0 : i32
    %c0_i32_0 = arith.constant 0 : i32
    %c0_i32_1 = arith.constant 0 : i32
    return %c0_i32, %c0_i32_0 : i32, i32
  }
  func.func @transform_4(%arg0: i32) -> (i32, i32) {
    %c0_i32 = arith.constant 0 : i32
    %c0_i32_0 = arith.constant 0 : i32
    %c0_i32_1 = arith.constant 0 : i32
    return %c0_i32, %c0_i32_0 : i32, i32
  }
  func.func @transform_5(%arg0: i32) -> (i32, i32) {
    %c0_i32 = arith.constant 0 : i32
    %c0_i32_0 = arith.constant 0 : i32
    %c0_i32_1 = arith.constant 0 : i32
    return %c0_i32, %c0_i32_0 : i32, i32
  }
  func.func @transform_6(%arg0: i32) -> (i32, i32) {
    %c0_i32 = arith.constant 0 : i32
    %c0_i32_0 = arith.constant 0 : i32
    %c0_i32_1 = arith.constant 0 : i32
    return %c0_i32, %c0_i32_0 : i32, i32
  }
  func.func @transform_7(%arg0: i32) -> (i32, i32) {
    %c0_i32 = arith.constant 0 : i32
    %c0_i32_0 = arith.constant 0 : i32
    %c0_i32_1 = arith.constant 0 : i32
    return %c0_i32, %c0_i32_0 : i32, i32
  }
  func.func @transform_8(%arg0: i32) -> (i32, i32) {
    %c0_i32 = arith.constant 0 : i32
    %c0_i32_0 = arith.constant 0 : i32
    %c0_i32_1 = arith.constant 0 : i32
    return %c0_i32, %c0_i32_0 : i32, i32
  }
  func.func @transform_9(%arg0: i32) -> (i32, i32) {
    %c0_i32 = arith.constant 0 : i32
    %c0_i32_0 = arith.constant 0 : i32
    return %arg0, %c0_i32 : i32, i32
  }
}

</mosaic_0001>

<bundles_post_ra>
// kernel: cnn_3prv_pool_forward.1
= control target key start
LH: loop header
LB: loop body
LE: loop exit
PB: predicated region body
PF: predicated region fallthrough
CT: control target
= control target key end

     0   :  { %s5357_s11 = smov 0   ;;  %s9685_s0 = inlined_call_operand.vmem [shape: f32[16,243], index: 0, kind: input, shape index: {}]   ;;  %s9686_s1 = inlined_call_operand.vmem [shape: f32[243,1024], index: 1, kind: input, shape index: {}]   ;;  %s9687_s2 = inlined_call_operand.vmem [shape: f32[1,1024], index: 2, kind: input, shape index: {}]   ;;  %s9688_s3 = inlined_call_operand.vmem [shape: f32[1024,800], index: 3, kind: input, shape index: {}]   ;;  %s9689_s4 = inlined_call_operand.vmem [shape: f32[1,800], index: 4, kind: input, shape index: {}]   ;;  %s9690_s5 = inlined_call_operand.vmem [shape: f32[800,256], index: 5, kind: input, shape index: {}]   ;;  %s9691_s6 = inlined_call_operand.vmem [shape: f32[1,256], index: 6, kind: input, shape index: {}]   ;;  %s9692_s7 = inlined_call_operand.vmem [shape: f32[256,1], index: 7, kind: input, shape index: {}]   ;;  %s9693_s8 = inlined_call_operand.<no memory space> [shape: f32[1,1], index: 8, kind: input, shape index: {}]   ;;  %s9694_s9 = inlined_call_operand.vmem [shape: f32[16,1], index: 9, kind: output, shape index: {}]  }
   0x1   :  { %v14_v0 = vstv %s9693_s8 }
   0x2   :  { %15 = vst [vmem:[#allocation2] sm:$0x1] %v14_v0 }
   0x3 LB: > { %s3684_s12 = sadd.s32 4294967295, %s5301_s11   ;;  %p3688_p0 = scmp.ge.s32.totalorder %s5301_s11, 1  ;;  %s5301_s11 = sphi %s5357_s11, %s21_s11  }
   0x4   : > { %p289_p1 = scmp.lt.s32.totalorder %s5301_s11, 3 }
   0x6   : > { %p290_p2 = pnand %p3688_p0, %p289_p1 }
   0x7   : > { %v336_v1 = vld [vmem:[%s9686_s1 + $0x8] sm:$0xff] (!%p290_p2)  ;;  %v335_v3 = vld [vmem:[%s9686_s1] sm:$0xff] (!%p290_p2)  ;;  %p324_p3 = scmp.lt.s32.totalorder (!%p290_p2), %s3684_s12, 1  ;;  %vm625_vm0 = vcmask (!%p290_p2), 941056   ;;  %v338_v45 = vld [vmem:[%s9686_s1 + $0x18] sm:$0xff] (!%p290_p2)  ;;  %vm629_vm1 = vcmask (!%p290_p2), 1042432  }
   0x8   : > { %293 = sbr.rel (%p290_p2) target bundleno = 1432 (0x598), region = 56  ;;  %v344_v2 = vld [vmem:[%s9686_s1 + $0x48] sm:$0xff] (!%p290_p2)  ;;  %v343_v5 = vld [vmem:[%s9686_s1 + $0x40] sm:$0xff] (!%p290_p2)  ;;  %v346_v46 = vld [vmem:[%s9686_s1 + $0x58] sm:$0xff] (!%p290_p2)  ;;  %vm3230_vm2 = vcmask (!%p290_p2), 261120   ;;  %vm3629_vm3 = vcmask (!%p290_p2), 7168  }
   0x9   : > { %v3884_v4 = vpack.c.bf16 (!%p290_p2), %v344_v2, %v336_v1  ;;  %v352_v6 = vld [vmem:[%s9686_s1 + $0x88] sm:$0xff] (!%p290_p2)  ;;  %v3886_v8 = vpack.c.bf16 (!%p290_p2), %v343_v5, %v335_v3  ;;  %v351_v10 = vld [vmem:[%s9686_s1 + $0x80] sm:$0xff] (!%p290_p2)  ;;  %v3944_v47 = vpack.c.bf16 (!%p290_p2), %v346_v46, %v338_v45  ;;  %v337_v48 = vld [vmem:[%s9686_s1 + $0x10] sm:$0xff] (!%p290_p2) }
   0xa   : > { %v360_v7 = vld [vmem:[%s9686_s1 + $0xc8] sm:$0xff] (!%p290_p2)  ;;  %v359_v11 = vld [vmem:[%s9686_s1 + $0xc0] sm:$0xff] (!%p290_p2)  ;;  %v345_v49 = vld [vmem:[%s9686_s1 + $0x50] sm:$0xff] (!%p290_p2) }
   0xb   : > { %v3888_v9 = vpack.c.bf16 (!%p290_p2), %v360_v7, %v352_v6  ;;  %v368_v12 = vld [vmem:[%s9686_s1 + $0x108] sm:$0xff] (!%p290_p2)  ;;  %3885 = vmatprep.subr.bf16.mxu0 (!%p290_p2), %v3884_v4  ;;  %v3890_v14 = vpack.c.bf16 (!%p290_p2), %v359_v11, %v351_v10  ;;  %v367_v16 = vld [vmem:[%s9686_s1 + $0x100] sm:$0xff] (!%p290_p2)  ;;  %v354_v50 = vld [vmem:[%s9686_s1 + $0x98] sm:$0xff] (!%p290_p2)  ;;  %v3946_v51 = vpack.c.bf16 (!%p290_p2), %v345_v49, %v337_v48  ;;  %3945 = vmatprep.subr.bf16.mxu1 (!%p290_p2), %v3944_v47 }
   0xc   : > { %v376_v13 = vld [vmem:[%s9686_s1 + $0x148] sm:$0xff] (!%p290_p2)  ;;  %3887 = vmatpush1.bf16.msra.mxu0 (!%p290_p2), %v3886_v8  ;;  %v375_v17 = vld [vmem:[%s9686_s1 + $0x140] sm:$0xff] (!%p290_p2)  ;;  %v362_v52 = vld [vmem:[%s9686_s1 + $0xd8] sm:$0xff] (!%p290_p2) }
   0xd   : > { %3889 = vmatprep.subr.bf16.mxu0 (!%p290_p2), %v3888_v9  ;;  %v3892_v15 = vpack.c.bf16 (!%p290_p2), %v376_v13, %v368_v12  ;;  %v384_v18 = vld [vmem:[%s9686_s1 + $0x188] sm:$0xff] (!%p290_p2)  ;;  %v3894_v20 = vpack.c.bf16 (!%p290_p2), %v375_v17, %v367_v16  ;;  %v383_v22 = vld [vmem:[%s9686_s1 + $0x180] sm:$0xff] (!%p290_p2)  ;;  %v353_v53 = vld [vmem:[%s9686_s1 + $0x90] sm:$0xff] (!%p290_p2)  ;;  %v3948_v56 = vpack.c.bf16 (!%p290_p2), %v362_v52, %v354_v50  ;;  %3947 = vmatpush1.bf16.msra.mxu1 (!%p290_p2), %v3946_v51 }
   0xe   : > { %v392_v19 = vld [vmem:[%s9686_s1 + $0x1c8] sm:$0xff] (!%p290_p2)  ;;  %v391_v23 = vld [vmem:[%s9686_s1 + $0x1c0] sm:$0xff] (!%p290_p2)  ;;  %v361_v54 = vld [vmem:[%s9686_s1 + $0xd0] sm:$0xff] (!%p290_p2) }
   0xf   : > { %v3896_v21 = vpack.c.bf16 %v392_v19, %v384_v18  ;;  %v400_v24 = vld [vmem:[%s9686_s1 + $0x208] sm:$0xff]  ;;  %s9696_s12 = smov (!%p324_p3, %s3684_s12), 1  ;;  %v3898_v26 = vpack.c.bf16 %v391_v23, %v383_v22  ;;  %v399_v28 = vld [vmem:[%s9686_s1 + $0x200] sm:$0xff]  ;;  %v370_v57 = vld [vmem:[%s9686_s1 + $0x118] sm:$0xff]  ;;  %v3950_v63 = vpack.c.bf16 %v361_v54, %v353_v53  ;;  %3949 = vmatprep.subr.bf16.mxu1 %v3948_v56 }
  0x10   : > { %3891 = vmatpush1.bf16.msra.mxu0 %v3890_v14  ;;  %v408_v25 = vld [vmem:[%s9686_s1 + $0x248] sm:$0xff]  ;;  %v407_v29 = vld [vmem:[%s9686_s1 + $0x240] sm:$0xff]  ;;  %s3708_s16 = sshll.u32 %s9696_s12, 4  ;;  %v378_v58 = vld [vmem:[%s9686_s1 + $0x158] sm:$0xff]  ;;  %s3691_s27 = sshll.u32 %s9696_s12, 3 }
  0x11   : > { %3893 = vmatprep.subr.bf16.mxu0 %v3892_v15  ;;  %v3900_v27 = vpack.c.bf16 %v408_v25, %v400_v24  ;;  %v416_v30 = vld [vmem:[%s9686_s1 + $0x288] sm:$0xff]  ;;  %v3902_v32 = vpack.c.bf16 %v407_v29, %v399_v28  ;;  %v415_v34 = vld [vmem:[%s9686_s1 + $0x280] sm:$0xff]  ;;  %s5447_s23 = scalar_lea.vmem %s9685_s0, %s3708_s16  ;;  %v3952_v1 = vpack.c.bf16 %v378_v58, %v370_v57  ;;  %v369_v2 = vld [vmem:[%s9686_s1 + $0x110] sm:$0xff]  ;;  %3951 = vmatpush1.bf16.msra.mxu1 %v3950_v63  ;;  %s332_s30 = scalar_lea.vmem %s9694_s9, %s3691_s27 }
  0x12   : > { %v424_v31 = vld [vmem:[%s9686_s1 + $0x2c8] sm:$0xff]  ;;  %v423_v35 = vld [vmem:[%s9686_s1 + $0x2c0] sm:$0xff]  ;;  %v377_v3 = vld [vmem:[%s9686_s1 + $0x150] sm:$0xff] }
  0x13   : > { %v3904_v33 = vpack.c.bf16 %v424_v31, %v416_v30  ;;  %v432_v36 = vld [vmem:[%s9686_s1 + $0x308] sm:$0xff]  ;;  %v431_v38 = vld [vmem:[%s9686_s1 + $0x300] sm:$0xff]  ;;  %v3906_v39 = vpack.c.bf16 %v423_v35, %v415_v34  ;;  %v386_v4 = vld [vmem:[%s9686_s1 + $0x198] sm:$0xff]  ;;  %v3954_v11 = vpack.c.bf16 %v377_v3, %v369_v2  ;;  %3953 = vmatprep.subr.bf16.mxu1 %v3952_v1 }
  0x14   : > { %3895 = vmatpush1.bf16.msra.mxu0 %v3894_v20  ;;  %v440_v37 = vld [vmem:[%s9686_s1 + $0x348] sm:$0xff]  ;;  %v439_v40 = vld [vmem:[%s9686_s1 + $0x340] sm:$0xff]  ;;  %v394_v5 = vld [vmem:[%s9686_s1 + $0x1d8] sm:$0xff] }
  0x15   : > { %3897 = vmatprep.subr.bf16.mxu0 %v3896_v21  ;;  %v448_v41 = vld [vmem:[%s9686_s1 + $0x388] sm:$0xff]  ;;  %v3908_v43 = vpack.c.bf16 %v440_v37, %v432_v36  ;;  %v3910_v55 = vpack.c.bf16 %v439_v40, %v431_v38  ;;  %v447_v60 = vld [vmem:[%s9686_s1 + $0x380] sm:$0xff]  ;;  %v3956_v13 = vpack.c.bf16 %v394_v5, %v386_v4  ;;  %v385_v14 = vld [vmem:[%s9686_s1 + $0x190] sm:$0xff]  ;;  %3955 = vmatpush1.bf16.msra.mxu1 %v3954_v11 }
  0x16   : > { %v5465_v42 = vld [vmem:[%s5447_s23 + $0x8] sm:$0xff]  ;;  %v455_v61 = vld [vmem:[%s9686_s1 + $0x3c0] sm:$0xff]  ;;  %v393_v15 = vld [vmem:[%s9686_s1 + $0x1d0] sm:$0xff] }
  0x17   : > { %v456_v44 = vld [vmem:[%s9686_s1 + $0x3c8] sm:$0xff]  ;;  %3694 = vmatprep.mubr.msk.f32.mxu0 %vm625_vm0, %v5465_v42  ;;  %3697 = vmatprep.mubr.msk.f32.mxu1 %vm625_vm0, %v5465_v42  ;;  %v3914_v6 = vpack.c.bf16 %v455_v61, %v447_v60  ;;  %v463_v8 = vld [vmem:[%s9686_s1 + $0x400] sm:$0xff]  ;;  %v402_v16 = vld [vmem:[%s9686_s1 + $0x218] sm:$0xff]  ;;  %v3958_v23 = vpack.c.bf16 %v393_v15, %v385_v14 }
  0x18   : > { %3899 = vmatpush1.bf16.msra.mxu0 %v3898_v26  ;;  %v3912_v59 = vpack.c.bf16 %v456_v44, %v448_v41  ;;  %v464_v62 = vld [vmem:[%s9686_s1 + $0x408] sm:$0xff]  ;;  %v471_v9 = vld [vmem:[%s9686_s1 + $0x440] sm:$0xff]  ;;  %v410_v17 = vld [vmem:[%s9686_s1 + $0x258] sm:$0xff]  ;;  %3957 = vmatprep.subr.bf16.mxu1 %v3956_v13 }
  0x19   : > { %3901 = vmatprep.subr.bf16.mxu0 %v3900_v27  ;;  %v472_v0 = vld [vmem:[%s9686_s1 + $0x448] sm:$0xff]  ;;  %v3918_v18 = vpack.c.bf16 %v471_v9, %v463_v8  ;;  %v479_v20 = vld [vmem:[%s9686_s1 + $0x480] sm:$0xff]  ;;  %v3960_v25 = vpack.c.bf16 %v410_v17, %v402_v16  ;;  %v401_v26 = vld [vmem:[%s9686_s1 + $0x210] sm:$0xff]  ;;  %3959 = vmatpush1.bf16.msra.mxu1 %v3958_v23 }
  0x1a   : > { %v3916_v7 = vpack.c.bf16 %v472_v0, %v464_v62  ;;  %v480_v10 = vld [vmem:[%s9686_s1 + $0x488] sm:$0xff]  ;;  %v487_v21 = vld [vmem:[%s9686_s1 + $0x4c0] sm:$0xff]  ;;  %v409_v27 = vld [vmem:[%s9686_s1 + $0x250] sm:$0xff] }
  0x1b   : > { %v488_v12 = vld [vmem:[%s9686_s1 + $0x4c8] sm:$0xff]  ;;  %v418_v28 = vld [vmem:[%s9686_s1 + $0x298] sm:$0xff]  ;;  %v3922_v30 = vpack.c.bf16 %v487_v21, %v479_v20  ;;  %v3962_v35 = vpack.c.bf16 %v409_v27, %v401_v26  ;;  %3961 = vmatprep.subr.bf16.mxu1 %v3960_v25  ;;  %v417_v38 = vld [vmem:[%s9686_s1 + $0x290] sm:$0xff] }
  0x1c   : > { %3903 = vmatpush1.bf16.msra.mxu0 %v3902_v32  ;;  %v3920_v19 = vpack.c.bf16 %v488_v12, %v480_v10  ;;  %v496_v22 = vld [vmem:[%s9686_s1 + $0x508] sm:$0xff]  ;;  %v426_v29 = vld [vmem:[%s9686_s1 + $0x2d8] sm:$0xff]  ;;  %v495_v32 = vld [vmem:[%s9686_s1 + $0x500] sm:$0xff] }
  0x1d   : > { %3905 = vmatprep.subr.bf16.mxu0 %v3904_v33  ;;  %v504_v24 = vld [vmem:[%s9686_s1 + $0x548] sm:$0xff]  ;;  %v503_v33 = vld [vmem:[%s9686_s1 + $0x540] sm:$0xff]  ;;  %v3964_v37 = vpack.c.bf16 %v426_v29, %v418_v28  ;;  %v434_v40 = vld [vmem:[%s9686_s1 + $0x318] sm:$0xff]  ;;  %3963 = vmatpush1.bf16.msra.mxu1 %v3962_v35 }
  0x1e   : > { %v3924_v31 = vpack.c.bf16 %v504_v24, %v496_v22  ;;  %v512_v34 = vld [vmem:[%s9686_s1 + $0x588] sm:$0xff]  ;;  %v442_v41 = vld [vmem:[%s9686_s1 + $0x358] sm:$0xff]  ;;  %v511_v45 = vld [vmem:[%s9686_s1 + $0x580] sm:$0xff] }
  0x1f   : > { %v520_v36 = vld [vmem:[%s9686_s1 + $0x5c8] sm:$0xff]  ;;  %v519_v46 = vld [vmem:[%s9686_s1 + $0x5c0] sm:$0xff]  ;;  %3965 = vmatprep.subr.bf16.mxu1 %v3964_v37  ;;  %v3968_v50 = vpack.c.bf16 %v442_v41, %v434_v40  ;;  %v433_v51 = vld [vmem:[%s9686_s1 + $0x310] sm:$0xff] }
  0x20   : > { %3907 = vmatpush1.bf16.msra.mxu0 %v3906_v39  ;;  %v425_v39 = vld [vmem:[%s9686_s1 + $0x2d0] sm:$0xff]  ;;  %v3928_v44 = vpack.c.bf16 %v520_v36, %v512_v34  ;;  %v528_v47 = vld [vmem:[%s9686_s1 + $0x608] sm:$0xff]  ;;  %v450_v53 = vld [vmem:[%s9686_s1 + $0x398] sm:$0xff] }
  0x21   : > { %3909 = vmatprep.subr.bf16.mxu0 %v3908_v43  ;;  %v3926_v43 = vpack.c.bf16 %v503_v33, %v495_v32  ;;  %v3966_v48 = vpack.c.bf16 %v425_v39, %v417_v38  ;;  %v536_v49 = vld [vmem:[%s9686_s1 + $0x648] sm:$0xff]  ;;  %v441_v52 = vld [vmem:[%s9686_s1 + $0x350] sm:$0xff]  ;;  %v458_v54 = vld [vmem:[%s9686_s1 + $0x3d8] sm:$0xff] }
  0x22   : > { %v3932_v56 = vpack.c.bf16 %v536_v49, %v528_v47  ;;  %v527_v57 = vld [vmem:[%s9686_s1 + $0x600] sm:$0xff]  ;;  %v3970_v60 = vpack.c.bf16 %v441_v52, %v433_v51  ;;  %v552_v61 = vld [vmem:[%s9686_s1 + $0x6c8] sm:$0xff]  ;;  %v3972_v62 = vpack.c.bf16 %v458_v54, %v450_v53  ;;  %v449_v63 = vld [vmem:[%s9686_s1 + $0x390] sm:$0xff] }
  0x23   : > { %v535_v58 = vld [vmem:[%s9686_s1 + $0x640] sm:$0xff]  ;;  %3967 = vmatpush1.bf16.msra.mxu1 %v3966_v48  ;;  %v457_v0 = vld [vmem:[%s9686_s1 + $0x3d0] sm:$0xff]  ;;  %v466_v1 = vld [vmem:[%s9686_s1 + $0x418] sm:$0xff] }
  0x24   : > { %3911 = vmatpush1.bf16.msra.mxu0 %v3910_v55  ;;  %v3930_v55 = vpack.c.bf16 %v519_v46, %v511_v45  ;;  %3969 = vmatprep.subr.bf16.mxu1 %v3968_v50  ;;  %v474_v2 = vld [vmem:[%s9686_s1 + $0x458] sm:$0xff]  ;;  %v3934_v3 = vpack.c.bf16 %v535_v58, %v527_v57  ;;  %v543_v5 = vld [vmem:[%s9686_s1 + $0x680] sm:$0xff]  ;;  %v3974_v8 = vpack.c.bf16 %v457_v0, %v449_v63  ;;  %v568_v9 = vld [vmem:[%s9686_s1 + $0x748] sm:$0xff] }
  0x25   : > { %3913 = vmatprep.subr.bf16.mxu0 %v3912_v59  ;;  %v544_v59 = vld [vmem:[%s9686_s1 + $0x688] sm:$0xff]  ;;  %v3976_v10 = vpack.c.bf16 %v474_v2, %v466_v1  ;;  %v465_v11 = vld [vmem:[%s9686_s1 + $0x410] sm:$0xff]  ;;  %v482_v13 = vld [vmem:[%s9686_s1 + $0x498] sm:$0xff] }
  0x26   : > { %v3936_v4 = vpack.c.bf16 %v552_v61, %v544_v59  ;;  %v473_v12 = vld [vmem:[%s9686_s1 + $0x450] sm:$0xff]  ;;  %v490_v14 = vld [vmem:[%s9686_s1 + $0x4d8] sm:$0xff]  ;;  %v559_v17 = vld [vmem:[%s9686_s1 + $0x700] sm:$0xff] }
  0x27   : > { %3971 = vmatpush1.bf16.msra.mxu1 %v3970_v60  ;;  %v3980_v20 = vpack.c.bf16 %v490_v14, %v482_v13  ;;  %v481_v21 = vld [vmem:[%s9686_s1 + $0x490] sm:$0xff]  ;;  %v498_v23 = vld [vmem:[%s9686_s1 + $0x518] sm:$0xff]  ;;  %v576_v26 = vld [vmem:[%s9686_s1 + $0x788] sm:$0x7] }
  0x28   : > { %3915 = vmatpush1.bf16.msra.mxu0 %v3914_v6  ;;  %v551_v6 = vld [vmem:[%s9686_s1 + $0x6c0] sm:$0xff]  ;;  %3973 = vmatprep.subr.bf16.mxu1 %v3972_v62  ;;  %v489_v22 = vld [vmem:[%s9686_s1 + $0x4d0] sm:$0xff]  ;;  %v506_v24 = vld [vmem:[%s9686_s1 + $0x558] sm:$0xff] }
  0x29   : > { %3917 = vmatprep.subr.bf16.mxu0 %v3916_v7  ;;  %v560_v7 = vld [vmem:[%s9686_s1 + $0x708] sm:$0xff]  ;;  %v3938_v15 = vpack.c.bf16 %v551_v6, %v543_v5  ;;  %v3982_v27 = vpack.c.bf16 %v489_v22, %v481_v21  ;;  %v3984_v28 = vpack.c.bf16 %v506_v24, %v498_v23  ;;  %v497_v29 = vld [vmem:[%s9686_s1 + $0x510] sm:$0xff]  ;;  %v522_v32 = vld [vmem:[%s9686_s1 + $0x5d8] sm:$0xff] }
  0x2a   : > { %v3940_v16 = vpack.c.bf16 %v568_v9, %v560_v7  ;;  %v340_v33 = vld [vmem:[%s9686_s1 + $0x28] sm:$0xff]  ;;  %v339_v35 = vld [vmem:[%s9686_s1 + $0x20] sm:$0xff]  ;;  %v521_v45 = vld [vmem:[%s9686_s1 + $0x5d0] sm:$0xff] }
  0x2b   : > { %3975 = vmatpush1.bf16.msra.mxu1 %v3974_v8  ;;  %v348_v34 = vld [vmem:[%s9686_s1 + $0x68] sm:$0xff]  ;;  %v347_v36 = vld [vmem:[%s9686_s1 + $0x60] sm:$0xff]  ;;  %v530_v47 = vld [vmem:[%s9686_s1 + $0x618] sm:$0xff] }
  0x2c   : > { %3919 = vmatpush1.bf16.msra.mxu0 %v3918_v18  ;;  %v567_v18 = vld [vmem:[%s9686_s1 + $0x740] sm:$0xff]  ;;  %3977 = vmatprep.subr.bf16.mxu1 %v3976_v10  ;;  %v356_v39 = vld [vmem:[%s9686_s1 + $0xa8] sm:$0xff]  ;;  %v4004_v46 = vpack.c.bf16 %v348_v34, %v340_v33  ;;  %v538_v48 = vld [vmem:[%s9686_s1 + $0x658] sm:$0xff]  ;;  %v4006_v49 = vpack.c.bf16 %v347_v36, %v339_v35 }
  0x2d   : > { %3921 = vmatprep.subr.bf16.mxu0 %v3920_v19  ;;  %v3978_v19 = vpack.c.bf16 %v473_v12, %v465_v11  ;;  %v3942_v25 = vpack.c.bf16 %v567_v18, %v559_v17  ;;  %v575_v37 = vld [vmem:[%s9686_s1 + $0x780] sm:$0x7]  ;;  %v364_v40 = vld [vmem:[%s9686_s1 + $0xe8] sm:$0xff]  ;;  %v529_v57 = vld [vmem:[%s9686_s1 + $0x610] sm:$0xff] }
  0x2e   : > { %v5728_v41 = vld [vmem:[%s5447_s23] sm:$0xff]  ;;  %v4008_v50 = vpack.c.bf16 %v364_v40, %v356_v39  ;;  %v372_v54 = vld [vmem:[%s9686_s1 + $0x128] sm:$0xff]  ;;  %v537_v58 = vld [vmem:[%s9686_s1 + $0x650] sm:$0xff] }
  0x2f   : > { %3979 = vmatpush1.bf16.msra.mxu1 %v3978_v19  ;;  %v355_v51 = vld [vmem:[%s9686_s1 + $0xa0] sm:$0xff]  ;;  %v546_v59 = vld [vmem:[%s9686_s1 + $0x698] sm:$0xff]  ;;  %v3994_v1 = vpack.c.bf16 %v537_v58, %v529_v57  ;;  %v388_v2 = vld [vmem:[%s9686_s1 + $0x1a8] sm:$0xff] }
  0x30   : > { %3923 = vmatpush1.bf16.msra.mxu0 %v3922_v30  ;;  %3981 = vmatprep.subr.bf16.mxu1 %v3980_v20  ;;  %v505_v30 = vld [vmem:[%s9686_s1 + $0x550] sm:$0xff]  ;;  %v363_v52 = vld [vmem:[%s9686_s1 + $0xe0] sm:$0xff]  ;;  %v554_v60 = vld [vmem:[%s9686_s1 + $0x6d8] sm:$0xff] }
  0x31   : > { %3925 = vmatprep.subr.bf16.mxu0 %v3924_v31  ;;  %v514_v31 = vld [vmem:[%s9686_s1 + $0x598] sm:$0xff]  ;;  %v3986_v38 = vpack.c.bf16 %v505_v30, %v497_v29  ;;  %v4010_v61 = vpack.c.bf16 %v363_v52, %v355_v51  ;;  %v371_v63 = vld [vmem:[%s9686_s1 + $0x120] sm:$0xff]  ;;  %v545_v5 = vld [vmem:[%s9686_s1 + $0x690] sm:$0xff] }
  0x32   : > { %v379_v0 = vld [vmem:[%s9686_s1 + $0x160] sm:$0xff]  ;;  %v553_v6 = vld [vmem:[%s9686_s1 + $0x6d0] sm:$0xff]  ;;  %v562_v7 = vld [vmem:[%s9686_s1 + $0x718] sm:$0xff] }
  0x33   : > { %3983 = vmatpush1.bf16.msra.mxu1 %v3982_v27  ;;  %v570_v8 = vld [vmem:[%s9686_s1 + $0x758] sm:$0xff]  ;;  %v4014_v9 = vpack.c.bf16 %v379_v0, %v371_v63  ;;  %v387_v11 = vld [vmem:[%s9686_s1 + $0x1a0] sm:$0xff]  ;;  %v3998_v13 = vpack.c.bf16 %v553_v6, %v545_v5  ;;  %v404_v14 = vld [vmem:[%s9686_s1 + $0x228] sm:$0xff] }
  0x34   : > { %3927 = vmatpush1.bf16.msra.mxu0 %v3926_v43  ;;  %3985 = vmatprep.subr.bf16.mxu1 %v3984_v28  ;;  %v3988_v43 = vpack.c.bf16 %v522_v32, %v514_v31  ;;  %v395_v12 = vld [vmem:[%s9686_s1 + $0x1e0] sm:$0xff]  ;;  %v561_v17 = vld [vmem:[%s9686_s1 + $0x710] sm:$0xff]  ;;  %v420_v24 = vld [vmem:[%s9686_s1 + $0x2a8] sm:$0xff] }
  0x35   : > { %3929 = vmatprep.subr.bf16.mxu0 %v3928_v44  ;;  %v513_v44 = vld [vmem:[%s9686_s1 + $0x590] sm:$0xff]  ;;  %v4018_v19 = vpack.c.bf16 %v395_v12, %v387_v11  ;;  %v403_v21 = vld [vmem:[%s9686_s1 + $0x220] sm:$0xff]  ;;  %v342_v30 = vld [vmem:[%s9686_s1 + $0x38] sm:$0xff] }
  0x36   : > { %v3990_v53 = vpack.c.bf16 %v521_v45, %v513_v44  ;;  %v569_v18 = vld [vmem:[%s9686_s1 + $0x750] sm:$0xff]  ;;  %v411_v22 = vld [vmem:[%s9686_s1 + $0x260] sm:$0xff]  ;;  %v350_v31 = vld [vmem:[%s9686_s1 + $0x78] sm:$0xff] }
  0x37   : > { %3987 = vmatpush1.bf16.msra.mxu1 %v3986_v38  ;;  %v4002_v23 = vpack.c.bf16 %v569_v18, %v561_v17  ;;  %v419_v27 = vld [vmem:[%s9686_s1 + $0x2a0] sm:$0xff]  ;;  %v4022_v28 = vpack.c.bf16 %v411_v22, %v403_v21  ;;  %v436_v33 = vld [vmem:[%s9686_s1 + $0x328] sm:$0xff]  ;;  %v341_v34 = vld [vmem:[%s9686_s1 + $0x30] sm:$0xff]  ;;  %v4064_v40 = vpack.c.bf16 %v350_v31, %v342_v30 }
  0x38   : > { %3931 = vmatpush1.bf16.msra.mxu0 %v3930_v55  ;;  %v380_v55 = vld [vmem:[%s9686_s1 + $0x168] sm:$0xff]  ;;  %3989 = vmatprep.subr.bf16.mxu1 %v3988_v43  ;;  %v427_v29 = vld [vmem:[%s9686_s1 + $0x2e0] sm:$0xff]  ;;  %v349_v35 = vld [vmem:[%s9686_s1 + $0x70] sm:$0xff] }
  0x39   : > { %3933 = vmatprep.subr.bf16.mxu0 %v3932_v56  ;;  %v3992_v56 = vpack.c.bf16 %v538_v48, %v530_v47  ;;  %v4012_v62 = vpack.c.bf16 %v380_v55, %v372_v54  ;;  %v444_v36 = vld [vmem:[%s9686_s1 + $0x368] sm:$0xff]  ;;  %v366_v38 = vld [vmem:[%s9686_s1 + $0xf8] sm:$0xff]  ;;  %v577_v39 = vld [vmem:[%s9686_s1 + $0x790] sm:$0x7]  ;;  %v4026_v43 = vpack.c.bf16 %v427_v29, %v419_v27 }
  0x3a   : > { %v435_v44 = vld [vmem:[%s9686_s1 + $0x320] sm:$0xff]  ;;  %v4028_v47 = vpack.c.bf16 %v444_v36, %v436_v33  ;;  %v452_v48 = vld [vmem:[%s9686_s1 + $0x3a8] sm:$0xff]  ;;  %v365_v51 = vld [vmem:[%s9686_s1 + $0xf0] sm:$0xff] }
  0x3b   : > { %3991 = vmatpush1.bf16.msra.mxu1 %v3990_v53  ;;  %v443_v45 = vld [vmem:[%s9686_s1 + $0x360] sm:$0xff]  ;;  %v460_v52 = vld [vmem:[%s9686_s1 + $0x3e8] sm:$0xff]  ;;  %v374_v53 = vld [vmem:[%s9686_s1 + $0x138] sm:$0xff] }
  0x3c   : > { %3935 = vmatpush1.bf16.msra.mxu0 %v3934_v3  ;;  %v396_v3 = vld [vmem:[%s9686_s1 + $0x1e8] sm:$0xff]  ;;  %3993 = vmatprep.subr.bf16.mxu1 %v3992_v56  ;;  %v382_v54 = vld [vmem:[%s9686_s1 + $0x178] sm:$0xff]  ;;  %v4030_v55 = vpack.c.bf16 %v443_v45, %v435_v44  ;;  %v451_v56 = vld [vmem:[%s9686_s1 + $0x3a0] sm:$0xff] }
  0x3d   : > { %3937 = vmatprep.subr.bf16.mxu0 %v3936_v4  ;;  %v3996_v4 = vpack.c.bf16 %v554_v60, %v546_v59  ;;  %v4016_v10 = vpack.c.bf16 %v396_v3, %v388_v2  ;;  %v459_v57 = vld [vmem:[%s9686_s1 + $0x3e0] sm:$0xff]  ;;  %v4032_v59 = vpack.c.bf16 %v460_v52, %v452_v48  ;;  %v468_v60 = vld [vmem:[%s9686_s1 + $0x428] sm:$0xff]  ;;  %v381_v63 = vld [vmem:[%s9686_s1 + $0x170] sm:$0xff] }
  0x3e   : > { %v476_v0 = vld [vmem:[%s9686_s1 + $0x468] sm:$0xff]  ;;  %v398_v2 = vld [vmem:[%s9686_s1 + $0x1f8] sm:$0xff]  ;;  %v4034_v3 = vpack.c.bf16 %v459_v57, %v451_v56  ;;  %v475_v5 = vld [vmem:[%s9686_s1 + $0x460] sm:$0xff] }
  0x3f   : > { %3995 = vmatpush1.bf16.msra.mxu1 %v3994_v1  ;;  %v390_v1 = vld [vmem:[%s9686_s1 + $0x1b8] sm:$0xff]  ;;  %v492_v11 = vld [vmem:[%s9686_s1 + $0x4e8] sm:$0xff]  ;;  %v405_v21 = vld [vmem:[%s9686_s1 + $0x230] sm:$0xff] }
  0x40   : > { %3939 = vmatpush1.bf16.msra.mxu0 %v3938_v15  ;;  %v412_v15 = vld [vmem:[%s9686_s1 + $0x268] sm:$0xff]  ;;  %3997 = vmatprep.subr.bf16.mxu1 %v3996_v4  ;;  %v467_v4 = vld [vmem:[%s9686_s1 + $0x420] sm:$0xff]  ;;  %v406_v12 = vld [vmem:[%s9686_s1 + $0x238] sm:$0xff] }
  0x41   : > { %3941 = vmatprep.subr.bf16.mxu0 %v3940_v16  ;;  %v4000_v16 = vpack.c.bf16 %v570_v8, %v562_v7  ;;  %v4020_v20 = vpack.c.bf16 %v412_v15, %v404_v14  ;;  %v4036_v7 = vpack.c.bf16 %v476_v0, %v468_v60  ;;  %v484_v8 = vld [vmem:[%s9686_s1 + $0x4a8] sm:$0xff]  ;;  %v4038_v14 = vpack.c.bf16 %v475_v5, %v467_v4  ;;  %v483_v15 = vld [vmem:[%s9686_s1 + $0x4a0] sm:$0xff]  ;;  %v413_v22 = vld [vmem:[%s9686_s1 + $0x270] sm:$0xff] }
  0x42   : > { %v4040_v18 = vpack.c.bf16 %v492_v11, %v484_v8  ;;  %v499_v27 = vld [vmem:[%s9686_s1 + $0x520] sm:$0xff]  ;;  %v4082_v29 = vpack.c.bf16 %v413_v22, %v405_v21  ;;  %v516_v31 = vld [vmem:[%s9686_s1 + $0x5a8] sm:$0xff]  ;;  %v421_v33 = vld [vmem:[%s9686_s1 + $0x2b0] sm:$0xff] }
  0x43   : > { %3999 = vmatpush1.bf16.msra.mxu1 %v3998_v13  ;;  %v414_v13 = vld [vmem:[%s9686_s1 + $0x278] sm:$0xff]  ;;  %v532_v45 = vld [vmem:[%s9686_s1 + $0x628] sm:$0xff]  ;;  %v445_v48 = vld [vmem:[%s9686_s1 + $0x370] sm:$0xff] }
  0x44   : > { %3943 = vmatpush1.bf16.msra.mxu0 %v3942_v25  ;;  %v428_v25 = vld [vmem:[%s9686_s1 + $0x2e8] sm:$0xff]  ;;  %4001 = vmatprep.subr.bf16.mxu1 %v4000_v16  ;;  %v491_v16 = vld [vmem:[%s9686_s1 + $0x4e0] sm:$0xff]  ;;  %v438_v36 = vld [vmem:[%s9686_s1 + $0x338] sm:$0xff] }
  0x45   : > { %3692 = vmatprep.subr.msk.mxu0 %vm629_vm1, %v576_v26  ;;  %v578_v26 = vld [vmem:[%s9686_s1 + $0x798] sm:$0x7]  ;;  %v4024_v32 = vpack.c.bf16 %v428_v25, %v420_v24  ;;  %v548_v57 = vld [vmem:[%s9686_s1 + $0x6a8] sm:$0xff]  ;;  %v461_v60 = vld [vmem:[%s9686_s1 + $0x3f0] sm:$0xff] }
  0x46   : > { %v422_v24 = vld [vmem:[%s9686_s1 + $0x2b8] sm:$0xff]  ;;  %v564_v5 = vld [vmem:[%s9686_s1 + $0x728] sm:$0xff]  ;;  %v477_v8 = vld [vmem:[%s9686_s1 + $0x470] sm:$0xff] }
  0x47   : > { %4003 = vmatpush1.bf16.msra.mxu1 %v4002_v23  ;;  %v508_v23 = vld [vmem:[%s9686_s1 + $0x568] sm:$0xff]  ;;  %v430_v25 = vld [vmem:[%s9686_s1 + $0x2f8] sm:$0xff] }
  0x48   : > { %3693 = vmatpush1.msk.msra.mxu0 %vm629_vm1, %v575_v37  ;;  %v358_v37 = vld [vmem:[%s9686_s1 + $0xb8] sm:$0xff]  ;;  %3695 = vmatprep.subr.msk.mxu1 %vm629_vm1, %v578_v26  ;;  %v4042_v26 = vpack.c.bf16 %v491_v16, %v483_v15  ;;  %v571_v15 = vld [vmem:[%s9686_s1 + $0x760] sm:$0xff] }
  0x49   : > { %719 = vmatmul.mubr.f32.vlgmr.msra.gmra.mrb[0].mxu0 %v5728_v41  ;;  %4005 = vmatprep.subr.bf16.mxu0 %v4004_v46  ;;  %v4066_v46 = vpack.c.bf16 %v349_v35, %v341_v34  ;;  %v429_v34 = vld [vmem:[%s9686_s1 + $0x2f0] sm:$0xff]  ;;  %v524_v35 = vld [vmem:[%s9686_s1 + $0x5e8] sm:$0xff] }
  0x4a   : > { %4007 = vmatpush1.bf16.msra.mxu0 %v4006_v49  ;;  %3700 = vmatprep.mubr.msk.f32.mxu0 %vm625_vm0, %v5465_v42  ;;  %v4068_v49 = vpack.c.bf16 %v366_v38, %v358_v37  ;;  %v446_v37 = vld [vmem:[%s9686_s1 + $0x378] sm:$0xff]  ;;  %v4048_v44 = vpack.c.bf16 %v524_v35, %v516_v31  ;;  %v954_v31 = vld [vmem:[%s9688_s3 + $0x40] sm:$0xff] }
  0x4b   : > { %4009 = vmatprep.subr.bf16.mxu0 %v4008_v50  ;;  %v357_v50 = vld [vmem:[%s9686_s1 + $0xb0] sm:$0xff]  ;;  %3696 = vmatpush1.msk.msra.mxu1 %vm629_vm1, %v577_v39  ;;  %v515_v39 = vld [vmem:[%s9686_s1 + $0x5a0] sm:$0xff]  ;;  %v953_v35 = vld [vmem:[%s9688_s3 + $0x38] sm:$0xff] }
  0x4c   : > { %790 = vmatmul.mubr.f32.vlgmr.msra.gmra.mrb[0].mxu1 %v5728_v41  ;;  %4065 = vmatprep.subr.bf16.mxu1 %v4064_v40  ;;  %v4070_v58 = vpack.c.bf16 %v365_v51, %v357_v50  ;;  %v523_v40 = vld [vmem:[%s9686_s1 + $0x5e0] sm:$0xff]  ;;  %v454_v50 = vld [vmem:[%s9686_s1 + $0x3b8] sm:$0xff] }
  0x4d   : > { %4067 = vmatpush1.bf16.msra.mxu1 %v4066_v46  ;;  %3703 = vmatprep.mubr.msk.f32.mxu1 %vm625_vm0, %v5465_v42  ;;  %v4076_v42 = vpack.c.bf16 %v398_v2, %v390_v1  ;;  %v4088_v46 = vpack.c.bf16 %v446_v37, %v438_v36  ;;  %v462_v51 = vld [vmem:[%s9686_s1 + $0x3f8] sm:$0xff]  ;;  %v4050_v52 = vpack.c.bf16 %v523_v40, %v515_v39  ;;  %v547_v1 = vld [vmem:[%s9686_s1 + $0x6a0] sm:$0xff]  ;;  %v525_v37 = vld [vmem:[%s9686_s1 + $0x5f0] sm:$0xff] }
  0x4e   : > { %4011 = vmatpush1.bf16.msra.mxu0 %v4010_v61  ;;  %4069 = vmatprep.subr.bf16.mxu1 %v4068_v49  ;;  %v4072_v61 = vpack.c.bf16 %v382_v54, %v374_v53  ;;  %v540_v49 = vld [vmem:[%s9686_s1 + $0x668] sm:$0xff]  ;;  %v531_v53 = vld [vmem:[%s9686_s1 + $0x620] sm:$0xff]  ;;  %v968_v39 = vld [vmem:[%s9688_s3 + $0xb0] sm:$0xff] }
  0x4f   : > { %4013 = vmatprep.subr.bf16.mxu0 %v4012_v62  ;;  %v373_v62 = vld [vmem:[%s9686_s1 + $0x130] sm:$0xff]  ;;  %v539_v54 = vld [vmem:[%s9686_s1 + $0x660] sm:$0xff]  ;;  %v4052_v56 = vpack.c.bf16 %v540_v49, %v532_v45  ;;  %v534_v40 = vld [vmem:[%s9686_s1 + $0x638] sm:$0xff] }
  0x50   : > { %v4074_v6 = vpack.c.bf16 %v381_v63, %v373_v62  ;;  %v470_v62 = vld [vmem:[%s9686_s1 + $0x438] sm:$0xff]  ;;  %v4054_v0 = vpack.c.bf16 %v539_v54, %v531_v53  ;;  %v555_v2 = vld [vmem:[%s9686_s1 + $0x6e0] sm:$0xff]  ;;  %v960_v49 = vld [vmem:[%s9688_s3 + $0x70] sm:$0xff] }
  0x51   : > { %4071 = vmatpush1.bf16.msra.mxu1 %v4070_v58  ;;  %v4092_v58 = vpack.c.bf16 %v462_v51, %v454_v50  ;;  %v478_v63 = vld [vmem:[%s9686_s1 + $0x478] sm:$0xff]  ;;  %v4058_v11 = vpack.c.bf16 %v555_v2, %v547_v1  ;;  %v967_v50 = vld [vmem:[%s9688_s3 + $0xa8] sm:$0xff]  ;;  %v982_v54 = vld [vmem:[%s9688_s3 + $0x120] sm:$0xff] }
  0x52   : > { %4015 = vmatpush1.bf16.msra.mxu0 %v4014_v9  ;;  %4073 = vmatprep.subr.bf16.mxu1 %v4072_v61  ;;  %v389_v9 = vld [vmem:[%s9686_s1 + $0x1b0] sm:$0xff]  ;;  %v556_v61 = vld [vmem:[%s9686_s1 + $0x6e8] sm:$0xff]  ;;  %v989_v1 = vld [vmem:[%s9688_s3 + $0x158] sm:$0xff] }
  0x53   : > { %4017 = vmatprep.subr.bf16.mxu0 %v4016_v10  ;;  %v397_v10 = vld [vmem:[%s9686_s1 + $0x1f0] sm:$0xff]  ;;  %v4056_v4 = vpack.c.bf16 %v556_v61, %v548_v57  ;;  %v975_v53 = vld [vmem:[%s9688_s3 + $0xe8] sm:$0xff]  ;;  %v4130_v57 = vpack.c.bf16 %v967_v50, %v960_v49  ;;  %v974_v61 = vld [vmem:[%s9688_s3 + $0xe0] sm:$0xff] }
  0x54   : > { %v4078_v17 = vpack.c.bf16 %v397_v10, %v389_v9  ;;  %v486_v9 = vld [vmem:[%s9686_s1 + $0x4b8] sm:$0xff]  ;;  %v996_v2 = vld [vmem:[%s9688_s3 + $0x190] sm:$0xff] }
  0x55   : > { %4075 = vmatpush1.bf16.msra.mxu1 %v4074_v6  ;;  %v4096_v6 = vpack.c.bf16 %v478_v63, %v470_v62  ;;  %v494_v10 = vld [vmem:[%s9686_s1 + $0x4f8] sm:$0xff]  ;;  %v1052_v49 = vld [vmem:[%s9688_s3 + $0x350] sm:$0xff] }
  0x56   : > { %4019 = vmatpush1.bf16.msra.mxu0 %v4018_v19  ;;  %4077 = vmatprep.subr.bf16.mxu1 %v4076_v42  ;;  %v500_v19 = vld [vmem:[%s9686_s1 + $0x528] sm:$0xff]  ;;  %v4100_v16 = vpack.c.bf16 %v494_v10, %v486_v9  ;;  %v981_v62 = vld [vmem:[%s9688_s3 + $0x118] sm:$0xff] }
  0x57   : > { %4021 = vmatprep.subr.bf16.mxu0 %v4020_v20  ;;  %v4080_v20 = vpack.c.bf16 %v414_v13, %v406_v12  ;;  %v4044_v30 = vpack.c.bf16 %v508_v23, %v500_v19  ;;  %v572_v42 = vld [vmem:[%s9686_s1 + $0x768] sm:$0xff]  ;;  %v563_v12 = vld [vmem:[%s9686_s1 + $0x720] sm:$0xff]  ;;  %v502_v19 = vld [vmem:[%s9686_s1 + $0x538] sm:$0xff] }
  0x58   : > { %v4062_v21 = vpack.c.bf16 %v571_v15, %v563_v12  ;;  %v995_v9 = vld [vmem:[%s9688_s3 + $0x188] sm:$0xff] }
  0x59   : > { %4079 = vmatpush1.bf16.msra.mxu1 %v4078_v17  ;;  %v485_v17 = vld [vmem:[%s9686_s1 + $0x4b0] sm:$0xff]  ;;  %v1003_v12 = vld [vmem:[%s9688_s3 + $0x1c8] sm:$0xff] }
  0x5a   : > { %4023 = vmatpush1.bf16.msra.mxu0 %v4022_v28  ;;  %v507_v28 = vld [vmem:[%s9686_s1 + $0x560] sm:$0xff]  ;;  %4081 = vmatprep.subr.bf16.mxu1 %v4080_v20  ;;  %v510_v20 = vld [vmem:[%s9686_s1 + $0x578] sm:$0xff] }
  0x5b   : > { %4025 = vmatprep.subr.bf16.mxu0 %v4024_v32  ;;  %v4084_v32 = vpack.c.bf16 %v430_v25, %v422_v24  ;;  %v4046_v38 = vpack.c.bf16 %v507_v28, %v499_v27  ;;  %v4104_v23 = vpack.c.bf16 %v510_v20, %v502_v19  ;;  %v501_v24 = vld [vmem:[%s9686_s1 + $0x530] sm:$0xff]  ;;  %v518_v27 = vld [vmem:[%s9686_s1 + $0x5b8] sm:$0xff] }
  0x5c   : > { %v509_v25 = vld [vmem:[%s9686_s1 + $0x570] sm:$0xff]  ;;  %v526_v28 = vld [vmem:[%s9686_s1 + $0x5f8] sm:$0xff] }
  0x5d   : > { %4083 = vmatpush1.bf16.msra.mxu1 %v4082_v29  ;;  %v579_v29 = vld [vmem:[%s9686_s1 + $0x7a0] sm:$0x7]  ;;  %v4108_v36 = vpack.c.bf16 %v526_v28, %v518_v27  ;;  %v1017_v19 = vld [vmem:[%s9688_s3 + $0x238] sm:$0xff]  ;;  %v1024_v20 = vld [vmem:[%s9688_s3 + $0x270] sm:$0xff] }
  0x5e   : > { %4027 = vmatpush1.bf16.msra.mxu0 %v4026_v43  ;;  %v4086_v43 = vpack.c.bf16 %v429_v34, %v421_v33  ;;  %4085 = vmatprep.subr.bf16.mxu1 %v4084_v32  ;;  %v4106_v32 = vpack.c.bf16 %v509_v25, %v501_v24  ;;  %v517_v33 = vld [vmem:[%s9686_s1 + $0x5b0] sm:$0xff]  ;;  %v946_v34 = vld [vmem:[%s9688_s3] sm:$0xff]  ;;  %v955_v25 = vld [vmem:[%s9688_s3 + $0x48] sm:$0xff] }
  0x5f   : > { %4029 = vmatprep.subr.bf16.mxu0 %v4028_v47  ;;  %v437_v47 = vld [vmem:[%s9686_s1 + $0x330] sm:$0xff]  ;;  %v4126_v45 = vpack.c.bf16 %v953_v35, %v946_v34  ;;  %v970_v28 = vld [vmem:[%s9688_s3 + $0xc0] sm:$0xff]  ;;  %v1031_v34 = vld [vmem:[%s9688_s3 + $0x2a8] sm:$0xff] }
  0x60   : > { %v948_v24 = vld [vmem:[%s9688_s3 + $0x10] sm:$0xff]  ;;  %v1038_v35 = vld [vmem:[%s9688_s3 + $0x2e0] sm:$0xff] }
  0x61   : > { %4087 = vmatpush1.bf16.msra.mxu1 %v4086_v43  ;;  %v542_v43 = vld [vmem:[%s9686_s1 + $0x678] sm:$0xff] }
  0x62   : > { %4031 = vmatpush1.bf16.msra.mxu0 %v4030_v55  ;;  %v4090_v55 = vpack.c.bf16 %v445_v48, %v437_v47  ;;  %4089 = vmatprep.subr.bf16.mxu1 %v4088_v46  ;;  %v4110_v46 = vpack.c.bf16 %v525_v37, %v517_v33  ;;  %v533_v47 = vld [vmem:[%s9686_s1 + $0x630] sm:$0xff]  ;;  %v4112_v51 = vpack.c.bf16 %v542_v43, %v534_v40  ;;  %v977_v40 = vld [vmem:[%s9688_s3 + $0xf8] sm:$0xff] }
  0x63   : > { %4033 = vmatprep.subr.bf16.mxu0 %v4032_v59  ;;  %v453_v59 = vld [vmem:[%s9686_s1 + $0x3b0] sm:$0xff] }
  0x65   : > { %4091 = vmatpush1.bf16.msra.mxu1 %v4090_v55  ;;  %v550_v55 = vld [vmem:[%s9686_s1 + $0x6b8] sm:$0xff] }
  0x66   : > { %4035 = vmatpush1.bf16.msra.mxu0 %v4034_v3  ;;  %v4094_v3 = vpack.c.bf16 %v461_v60, %v453_v59  ;;  %4093 = vmatprep.subr.bf16.mxu1 %v4092_v58  ;;  %v549_v59 = vld [vmem:[%s9686_s1 + $0x6b0] sm:$0xff]  ;;  %v4132_v60 = vpack.c.bf16 %v982_v54, %v975_v53  ;;  %v991_v53 = vld [vmem:[%s9688_s3 + $0x168] sm:$0xff] }
  0x67   : > { %4037 = vmatprep.subr.bf16.mxu0 %v4036_v7  ;;  %v469_v7 = vld [vmem:[%s9686_s1 + $0x430] sm:$0xff] }
  0x68   : > { %v4098_v13 = vpack.c.bf16 %v477_v8, %v469_v7  ;;  %v565_v7 = vld [vmem:[%s9686_s1 + $0x730] sm:$0xff]  ;;  %v4136_v8 = vpack.c.bf16 %v996_v2, %v989_v1  ;;  %v1005_v1 = vld [vmem:[%s9688_s3 + $0x1d8] sm:$0xff] }
  0x69   : > { %4095 = vmatpush1.bf16.msra.mxu1 %v4094_v3  ;;  %v566_v3 = vld [vmem:[%s9686_s1 + $0x738] sm:$0xff] }
  0x6a   : > { %4039 = vmatpush1.bf16.msra.mxu0 %v4038_v14  ;;  %v4060_v14 = vpack.c.bf16 %v572_v42, %v564_v5  ;;  %4097 = vmatprep.subr.bf16.mxu1 %v4096_v6  ;;  %v4134_v5 = vpack.c.bf16 %v981_v62, %v974_v61  ;;  %v988_v42 = vld [vmem:[%s9688_s3 + $0x150] sm:$0xff] }
  0x6b   : > { %4041 = vmatprep.subr.bf16.mxu0 %v4040_v18  ;;  %v493_v18 = vld [vmem:[%s9686_s1 + $0x4f0] sm:$0xff] }
  0x6c   : > { %v4102_v22 = vpack.c.bf16 %v493_v18, %v485_v17  ;;  %v1002_v17 = vld [vmem:[%s9688_s3 + $0x1c0] sm:$0xff]  ;;  %v1009_v18 = vld [vmem:[%s9688_s3 + $0x1f8] sm:$0xff] }
  0x6d   : > { %4099 = vmatpush1.bf16.msra.mxu1 %v4098_v13  ;;  %v1010_v13 = vld [vmem:[%s9688_s3 + $0x200] sm:$0xff]  ;;  %v4142_v27 = vpack.c.bf16 %v1009_v18, %v1002_v17  ;;  %v1079_v17 = vld [vmem:[%s9688_s3 + $0x428] sm:$0xff] }
  0x6e   : > { %4043 = vmatpush1.bf16.msra.mxu0 %v4042_v26  ;;  %4101 = vmatprep.subr.bf16.mxu1 %v4100_v16  ;;  %v580_v26 = vld [vmem:[%s9686_s1 + $0x7a8] sm:$0x7]  ;;  %v4140_v16 = vpack.c.bf16 %v1010_v13, %v1003_v12 }
  0x6f   : > { %4045 = vmatprep.subr.bf16.mxu0 %v4044_v30  ;;  %v947_v30 = vld [vmem:[%s9688_s3 + $0x8] sm:$0xff] }
  0x70   : > { %v1019_v12 = vld [vmem:[%s9688_s3 + $0x248] sm:$0xff] }
  0x71   : > { %4103 = vmatpush1.bf16.msra.mxu1 %v4102_v22  ;;  %v949_v22 = vld [vmem:[%s9688_s3 + $0x18] sm:$0xff]  ;;  %v1087_v18 = vld [vmem:[%s9688_s3 + $0x468] sm:$0xff] }
  0x72   : > { %4047 = vmatpush1.bf16.msra.mxu0 %v4046_v38  ;;  %4105 = vmatprep.subr.bf16.mxu1 %v4104_v23  ;;  %v961_v38 = vld [vmem:[%s9688_s3 + $0x78] sm:$0xff]  ;;  %v956_v23 = vld [vmem:[%s9688_s3 + $0x50] sm:$0xff] }
  0x73   : > { %4049 = vmatprep.subr.bf16.mxu0 %v4048_v44  ;;  %v4124_v44 = vpack.c.bf16 %v954_v31, %v947_v30  ;;  %v4128_v48 = vpack.c.bf16 %v968_v39, %v961_v38  ;;  %v1016_v30 = vld [vmem:[%s9688_s3 + $0x230] sm:$0xff]  ;;  %v1023_v31 = vld [vmem:[%s9688_s3 + $0x268] sm:$0xff]  ;;  %v4380_v33 = vpack.c.bf16 %v956_v23, %v949_v22  ;;  %v962_v38 = vld [vmem:[%s9688_s3 + $0x80] sm:$0xff] }
  0x74   : > { %v969_v39 = vld [vmem:[%s9688_s3 + $0xb8] sm:$0xff]  ;;  %v4146_v43 = vpack.c.bf16 %v1023_v31, %v1016_v30  ;;  %v1018_v22 = vld [vmem:[%s9688_s3 + $0x240] sm:$0xff]  ;;  %v1108_v31 = vld [vmem:[%s9688_s3 + $0x510] sm:$0xff] }
  0x75   : > { %4107 = vmatpush1.bf16.msra.mxu1 %v4106_v32  ;;  %v581_v32 = vld [vmem:[%s9686_s1 + $0x7b0] sm:$0x7]  ;;  %v4386_v50 = vpack.c.bf16 %v969_v39, %v962_v38  ;;  %v1025_v23 = vld [vmem:[%s9688_s3 + $0x278] sm:$0xff]  ;;  %v1054_v38 = vld [vmem:[%s9688_s3 + $0x360] sm:$0xff] }
  0x76   : > { %4051 = vmatpush1.bf16.msra.mxu0 %v4050_v52  ;;  %4109 = vmatprep.subr.bf16.mxu1 %v4108_v36  ;;  %v541_v52 = vld [vmem:[%s9686_s1 + $0x670] sm:$0xff]  ;;  %v4382_v36 = vpack.c.bf16 %v955_v25, %v948_v24  ;;  %v1033_v24 = vld [vmem:[%s9688_s3 + $0x2b8] sm:$0xff] }
  0x77   : > { %4053 = vmatprep.subr.bf16.mxu0 %v4052_v56  ;;  %v558_v56 = vld [vmem:[%s9686_s1 + $0x6f8] sm:$0xff]  ;;  %v4114_v58 = vpack.c.bf16 %v541_v52, %v533_v47  ;;  %v976_v52 = vld [vmem:[%s9688_s3 + $0xf0] sm:$0xff] }
  0x78   : > { %v4116_v63 = vpack.c.bf16 %v558_v56, %v550_v55  ;;  %v1037_v47 = vld [vmem:[%s9688_s3 + $0x2d8] sm:$0xff]  ;;  %v998_v55 = vld [vmem:[%s9688_s3 + $0x1a0] sm:$0xff] }
  0x79   : > { %4111 = vmatpush1.bf16.msra.mxu1 %v4110_v46  ;;  %v1030_v46 = vld [vmem:[%s9688_s3 + $0x2a0] sm:$0xff]  ;;  %v4392_v62 = vpack.c.bf16 %v998_v55, %v991_v53  ;;  %v1101_v30 = vld [vmem:[%s9688_s3 + $0x4d8] sm:$0xff] }
  0x7a   : > { %4055 = vmatpush1.bf16.msra.mxu0 %v4054_v0  ;;  %4113 = vmatprep.subr.bf16.mxu1 %v4112_v51  ;;  %v557_v0 = vld [vmem:[%s9686_s1 + $0x6f0] sm:$0xff]  ;;  %v4150_v54 = vpack.c.bf16 %v1037_v47, %v1030_v46  ;;  %v4168_v39 = vpack.c.bf16 %v1108_v31, %v1101_v30  ;;  %v1114_v53 = vld [vmem:[%s9688_s3 + $0x540] sm:$0xff]  ;;  %v1129_v55 = vld [vmem:[%s9688_s3 + $0x5b8] sm:$0xff] }
  0x7b   : > { %4057 = vmatprep.subr.bf16.mxu0 %v4056_v4  ;;  %v574_v4 = vld [vmem:[%s9686_s1 + $0x778] sm:$0xff]  ;;  %v4118_v6 = vpack.c.bf16 %v557_v0, %v549_v59  ;;  %v1059_v59 = vld [vmem:[%s9688_s3 + $0x388] sm:$0xff]  ;;  %v1102_v30 = vld [vmem:[%s9688_s3 + $0x4e0] sm:$0xff] }
  0x7c   : > { %v4120_v10 = vpack.c.bf16 %v574_v4, %v566_v3  ;;  %v997_v0 = vld [vmem:[%s9688_s3 + $0x198] sm:$0xff]  ;;  %v1012_v3 = vld [vmem:[%s9688_s3 + $0x210] sm:$0xff] }
  0x7d   : > { %4115 = vmatpush1.bf16.msra.mxu1 %v4114_v58  ;;  %v1051_v58 = vld [vmem:[%s9688_s3 + $0x348] sm:$0xff]  ;;  %v1109_v31 = vld [vmem:[%s9688_s3 + $0x518] sm:$0xff] }
  0x7e   : > { %4059 = vmatpush1.bf16.msra.mxu0 %v4058_v11  ;;  %4117 = vmatprep.subr.bf16.mxu1 %v4116_v63  ;;  %v573_v11 = vld [vmem:[%s9686_s1 + $0x770] sm:$0xff]  ;;  %v990_v63 = vld [vmem:[%s9688_s3 + $0x160] sm:$0xff] }
  0x7f   : > { %4061 = vmatprep.subr.bf16.mxu0 %v4060_v14  ;;  %v4138_v14 = vpack.c.bf16 %v995_v9, %v988_v42  ;;  %v4122_v15 = vpack.c.bf16 %v573_v11, %v565_v7  ;;  %v1073_v7 = vld [vmem:[%s9688_s3 + $0x3f8] sm:$0xff]  ;;  %v4394_v42 = vpack.c.bf16 %v997_v0, %v990_v63  ;;  %v4396_v9 = vpack.c.bf16 %v1012_v3, %v1005_v1  ;;  %v1011_v11 = vld [vmem:[%s9688_s3 + $0x208] sm:$0xff]  ;;  %v1082_v63 = vld [vmem:[%s9688_s3 + $0x440] sm:$0xff] }
  0x80   : > { %v1128_v1 = vld [vmem:[%s9688_s3 + $0x5b0] sm:$0xff]  ;;  %v1143_v3 = vld [vmem:[%s9688_s3 + $0x628] sm:$0xff] }
  0x81   : > { %4119 = vmatpush1.bf16.msra.mxu1 %v4118_v6  ;;  %v1065_v6 = vld [vmem:[%s9688_s3 + $0x3b8] sm:$0xff] }
  0x82   : > { %4063 = vmatpush1.bf16.msra.mxu0 %v4062_v21  ;;  %4121 = vmatprep.subr.bf16.mxu1 %v4120_v10  ;;  %v582_v21 = vld [vmem:[%s9686_s1 + $0x7b8] sm:$0x7]  ;;  %v1004_v10 = vld [vmem:[%s9688_s3 + $0x1d0] sm:$0xff] }
  0x83   : > { %3698 = vmatprep.subr.msk.mxu0 %vm629_vm1, %v580_v26  ;;  %v963_v26 = vld [vmem:[%s9688_s3 + $0x88] sm:$0xff] }
  0x84   : > { %v4384_v37 = vpack.c.bf16 %v970_v28, %v963_v26  ;;  %v1040_v26 = vld [vmem:[%s9688_s3 + $0x2f0] sm:$0xff]  ;;  %v1086_v28 = vld [vmem:[%s9688_s3 + $0x460] sm:$0xff] }
  0x85   : > { %4123 = vmatpush1.bf16.msra.mxu1 %v4122_v15 }
  0x86   : > { %3699 = vmatpush1.msk.msra.mxu0 %vm629_vm1, %v579_v29  ;;  %v4144_v29 = vpack.c.bf16 %v1024_v20, %v1017_v19  ;;  %3701 = vmatprep.subr.msk.mxu1 %vm629_vm1, %v582_v21  ;;  %v1094_v19 = vld [vmem:[%s9688_s3 + $0x4a0] sm:$0xff]  ;;  %v4398_v20 = vpack.c.bf16 %v1011_v11, %v1004_v10  ;;  %v1096_v10 = vld [vmem:[%s9688_s3 + $0x4b0] sm:$0xff] }
  0x87   : > { %861 = vmatmul.mubr.f32.vlgmr.msra.gmra.mrb[2].mxu0 %v5728_v41  ;;  %4125 = vmatprep.subr.bf16.mxu0 %v4124_v44  ;;  %v984_v44 = vld [vmem:[%s9688_s3 + $0x130] sm:$0xff] }
  0x88   : > { %4127 = vmatpush1.bf16.msra.mxu0 %v4126_v45  ;;  %v4148_v45 = vpack.c.bf16 %v1038_v35, %v1031_v34  ;;  %v4388_v51 = vpack.c.bf16 %v984_v44, %v977_v40  ;;  %v1032_v34 = vld [vmem:[%s9688_s3 + $0x2b0] sm:$0xff]  ;;  %v1039_v35 = vld [vmem:[%s9688_s3 + $0x2e8] sm:$0xff] }
  0x89   : > { %4129 = vmatprep.subr.bf16.mxu0 %v4128_v48  ;;  %3702 = vmatpush1.msk.msra.mxu1 %vm629_vm1, %v581_v32  ;;  %v1045_v48 = vld [vmem:[%s9688_s3 + $0x318] sm:$0xff]  ;;  %v4402_v32 = vpack.c.bf16 %v1025_v23, %v1018_v22  ;;  %v1100_v40 = vld [vmem:[%s9688_s3 + $0x4d0] sm:$0xff]  ;;  %v1115_v44 = vld [vmem:[%s9688_s3 + $0x548] sm:$0xff]  ;;  %v4406_v46 = vpack.c.bf16 %v1039_v35, %v1032_v34 }
  0x8a   : > { %4381 = vmatprep.subr.bf16.mxu1 %v4380_v33  ;;  %932 = vmatmul.mubr.f32.vlgmr.msra.gmra.mrb[2].mxu1 %v5728_v41  ;;  %v983_v41 = vld [vmem:[%s9688_s3 + $0x128] sm:$0xff]  ;;  %v4152_v56 = vpack.c.bf16 %v1052_v49, %v1045_v48  ;;  %v4404_v33 = vpack.c.bf16 %v1040_v26, %v1033_v24  ;;  %v1046_v48 = vld [vmem:[%s9688_s3 + $0x320] sm:$0xff]  ;;  %v1053_v49 = vld [vmem:[%s9688_s3 + $0x358] sm:$0xff] }
  0x8b   : > { %4383 = vmatpush1.bf16.msra.mxu1 %v4382_v36  ;;  %v4390_v61 = vpack.c.bf16 %v983_v41, %v976_v52  ;;  %v1047_v36 = vld [vmem:[%s9688_s3 + $0x328] sm:$0xff]  ;;  %v1068_v52 = vld [vmem:[%s9688_s3 + $0x3d0] sm:$0xff]  ;;  %v1110_v22 = vld [vmem:[%s9688_s3 + $0x520] sm:$0xff] }
  0x8c   : > { %4131 = vmatpush1.bf16.msra.mxu0 %v4130_v57  ;;  %4385 = vmatprep.subr.bf16.mxu1 %v4384_v37  ;;  %v1044_v57 = vld [vmem:[%s9688_s3 + $0x310] sm:$0xff]  ;;  %v4408_v47 = vpack.c.bf16 %v1054_v38, %v1047_v36  ;;  %v1171_v26 = vld [vmem:[%s9688_s3 + $0x708] sm:$0xff]  ;;  %v4426_v36 = vpack.c.bf16 %v1109_v31, %v1102_v30 }
  0x8d   : > { %4133 = vmatprep.subr.bf16.mxu0 %v4132_v60  ;;  %v1066_v60 = vld [vmem:[%s9688_s3 + $0x3c0] sm:$0xff]  ;;  %v4154_v2 = vpack.c.bf16 %v1051_v58, %v1044_v57  ;;  %v4410_v57 = vpack.c.bf16 %v1053_v49, %v1046_v48  ;;  %v1156_v24 = vld [vmem:[%s9688_s3 + $0x690] sm:$0xff]  ;;  %v1145_v48 = vld [vmem:[%s9688_s3 + $0x638] sm:$0xff] }
  0x8e   : > { %v4156_v4 = vpack.c.bf16 %v1066_v60, %v1059_v59  ;;  %v1060_v59 = vld [vmem:[%s9688_s3 + $0x390] sm:$0xff]  ;;  %v1067_v60 = vld [vmem:[%s9688_s3 + $0x3c8] sm:$0xff] }
  0x8f   : > { %4387 = vmatpush1.bf16.msra.mxu1 %v4386_v50  ;;  %v1061_v50 = vld [vmem:[%s9688_s3 + $0x398] sm:$0xff]  ;;  %v1124_v34 = vld [vmem:[%s9688_s3 + $0x590] sm:$0xff] }
  0x90   : > { %4135 = vmatpush1.bf16.msra.mxu0 %v4134_v5  ;;  %4389 = vmatprep.subr.bf16.mxu1 %v4388_v51  ;;  %v1058_v5 = vld [vmem:[%s9688_s3 + $0x380] sm:$0xff]  ;;  %v4412_v58 = vpack.c.bf16 %v1068_v52, %v1061_v50  ;;  %v1116_v38 = vld [vmem:[%s9688_s3 + $0x550] sm:$0xff] }
  0x91   : > { %4137 = vmatprep.subr.bf16.mxu0 %v4136_v8  ;;  %v1080_v8 = vld [vmem:[%s9688_s3 + $0x430] sm:$0xff]  ;;  %v4158_v13 = vpack.c.bf16 %v1065_v6, %v1058_v5  ;;  %v4414_v5 = vpack.c.bf16 %v1067_v60, %v1060_v59  ;;  %v1173_v59 = vld [vmem:[%s9688_s3 + $0x718] sm:$0xff] }
  0x92   : > { %v4160_v15 = vpack.c.bf16 %v1080_v8, %v1073_v7  ;;  %v1074_v7 = vld [vmem:[%s9688_s3 + $0x400] sm:$0xff]  ;;  %v1081_v8 = vld [vmem:[%s9688_s3 + $0x438] sm:$0xff]  ;;  %v1152_v49 = vld [vmem:[%s9688_s3 + $0x670] sm:$0xff] }
  0x93   : > { %4391 = vmatpush1.bf16.msra.mxu1 %v4390_v61  ;;  %v1075_v61 = vld [vmem:[%s9688_s3 + $0x408] sm:$0xff]  ;;  %v1144_v52 = vld [vmem:[%s9688_s3 + $0x630] sm:$0xff] }
  0x94   : > { %4139 = vmatpush1.bf16.msra.mxu0 %v4138_v14  ;;  %4393 = vmatprep.subr.bf16.mxu1 %v4392_v62  ;;  %v1026_v14 = vld [vmem:[%s9688_s3 + $0x280] sm:$0xff]  ;;  %v4416_v6 = vpack.c.bf16 %v1082_v63, %v1075_v61  ;;  %v1180_v60 = vld [vmem:[%s9688_s3 + $0x750] sm:$0xff]  ;;  %v585_v63 = vlaneseq }
  0x95   : > { %4141 = vmatprep.subr.bf16.mxu0 %v4140_v16  ;;  %v1072_v16 = vld [vmem:[%s9688_s3 + $0x3f0] sm:$0xff]  ;;  %v4400_v21 = vpack.c.bf16 %v1026_v14, %v1019_v12  ;;  %v1142_v12 = vld [vmem:[%s9688_s3 + $0x620] sm:$0xff]  ;;  %v1157_v14 = vld [vmem:[%s9688_s3 + $0x698] sm:$0xff] }
  0x96   : > { %v4162_v25 = vpack.c.bf16 %v1079_v17, %v1072_v16  ;;  %v4418_v16 = vpack.c.bf16 %v1081_v8, %v1074_v7  ;;  %v1170_v7 = vld [vmem:[%s9688_s3 + $0x700] sm:$0xff]  ;;  %v1177_v8 = vld [vmem:[%s9688_s3 + $0x738] sm:$0xff]  ;;  %v1208_v30 = vld [vmem:[%s9688_s3 + $0x830] sm:$0xff] }
  0x97   : > { %4395 = vmatpush1.bf16.msra.mxu1 %v4394_v42  ;;  %v1089_v42 = vld [vmem:[%s9688_s3 + $0x478] sm:$0xff] }
  0x98   : > { %4143 = vmatpush1.bf16.msra.mxu0 %v4142_v27  ;;  %4397 = vmatprep.subr.bf16.mxu1 %v4396_v9  ;;  %v4164_v27 = vpack.c.bf16 %v1094_v19, %v1087_v18  ;;  %v4420_v17 = vpack.c.bf16 %v1096_v10, %v1089_v42  ;;  %v1088_v18 = vld [vmem:[%s9688_s3 + $0x470] sm:$0xff]  ;;  %v1095_v19 = vld [vmem:[%s9688_s3 + $0x4a8] sm:$0xff] }
  0x99   : > { %4145 = vmatprep.subr.bf16.mxu0 %v4144_v29  ;;  %v1093_v29 = vld [vmem:[%s9688_s3 + $0x498] sm:$0xff]  ;;  %v1172_v10 = vld [vmem:[%s9688_s3 + $0x710] sm:$0xff] }
  0x9a   : > { %v4166_v37 = vpack.c.bf16 %v1093_v29, %v1086_v28  ;;  %v4422_v28 = vpack.c.bf16 %v1095_v19, %v1088_v18  ;;  %v4190_v18 = vpack.c.bf16 %v1177_v8, %v1170_v7  ;;  %v1243_v7 = vld [vmem:[%s9688_s3 + $0x948] sm:$0xff]  ;;  %v1250_v8 = vld [vmem:[%s9688_s3 + $0x980] sm:$0xff] }
  0x9b   : > { %4399 = vmatpush1.bf16.msra.mxu1 %v4398_v20  ;;  %v1103_v20 = vld [vmem:[%s9688_s3 + $0x4e8] sm:$0xff] }
  0x9c   : > { %4147 = vmatpush1.bf16.msra.mxu0 %v4146_v43  ;;  %4401 = vmatprep.subr.bf16.mxu1 %v4400_v21  ;;  %v1107_v43 = vld [vmem:[%s9688_s3 + $0x508] sm:$0xff]  ;;  %v4424_v29 = vpack.c.bf16 %v1110_v22, %v1103_v20  ;;  %v1184_v20 = vld [vmem:[%s9688_s3 + $0x770] sm:$0xff] }
  0x9d   : > { %4149 = vmatprep.subr.bf16.mxu0 %v4148_v45  ;;  %v1122_v45 = vld [vmem:[%s9688_s3 + $0x580] sm:$0xff]  ;;  %v4170_v51 = vpack.c.bf16 %v1107_v43, %v1100_v40  ;;  %v1131_v40 = vld [vmem:[%s9688_s3 + $0x5c8] sm:$0xff] }
  0x9e   : > { %v4172_v41 = vpack.c.bf16 %v1122_v45, %v1115_v44  ;;  %v1138_v43 = vld [vmem:[%s9688_s3 + $0x600] sm:$0xff] }
  0x9f   : > { %4403 = vmatpush1.bf16.msra.mxu1 %v4402_v32  ;;  %v4432_v45 = vpack.c.bf16 %v1138_v43, %v1131_v40  ;;  %v1220_v40 = vld [vmem:[%s9688_s3 + $0x890] sm:$0xff]  ;;  %v1215_v43 = vld [vmem:[%s9688_s3 + $0x868] sm:$0xff] }
  0xa0   : > { %4151 = vmatpush1.bf16.msra.mxu0 %v4150_v54  ;;  %4405 = vmatprep.subr.bf16.mxu1 %v4404_v33  ;;  %v1121_v54 = vld [vmem:[%s9688_s3 + $0x578] sm:$0xff] }
  0xa1   : > { %4153 = vmatprep.subr.bf16.mxu0 %v4152_v56  ;;  %v1136_v56 = vld [vmem:[%s9688_s3 + $0x5f0] sm:$0xff]  ;;  %v4174_v62 = vpack.c.bf16 %v1121_v54, %v1114_v53  ;;  %v1117_v33 = vld [vmem:[%s9688_s3 + $0x558] sm:$0xff]  ;;  %v1159_v53 = vld [vmem:[%s9688_s3 + $0x6a8] sm:$0xff] }
  0xa2   : > { %v4176_v0 = vpack.c.bf16 %v1136_v56, %v1129_v55  ;;  %v1166_v54 = vld [vmem:[%s9688_s3 + $0x6e0] sm:$0xff] }
  0xa3   : > { %4407 = vmatpush1.bf16.msra.mxu1 %v4406_v46  ;;  %v1130_v46 = vld [vmem:[%s9688_s3 + $0x5c0] sm:$0xff]  ;;  %v4440_v56 = vpack.c.bf16 %v1166_v54, %v1159_v53  ;;  %v1229_v54 = vld [vmem:[%s9688_s3 + $0x8d8] sm:$0xff] }
  0xa4   : > { %4155 = vmatpush1.bf16.msra.mxu0 %v4154_v2  ;;  %4409 = vmatprep.subr.bf16.mxu1 %v4408_v47  ;;  %v1135_v2 = vld [vmem:[%s9688_s3 + $0x5e8] sm:$0xff]  ;;  %v1137_v47 = vld [vmem:[%s9688_s3 + $0x5f8] sm:$0xff]  ;;  %v1234_v53 = vld [vmem:[%s9688_s3 + $0x900] sm:$0xff] }
  0xa5   : > { %4157 = vmatprep.subr.bf16.mxu0 %v4156_v4  ;;  %v1150_v4 = vld [vmem:[%s9688_s3 + $0x660] sm:$0xff]  ;;  %v4178_v9 = vpack.c.bf16 %v1135_v2, %v1128_v1  ;;  %v4434_v50 = vpack.c.bf16 %v1137_v47, %v1130_v46  ;;  %v1212_v47 = vld [vmem:[%s9688_s3 + $0x850] sm:$0xff] }
  0xa6   : > { %v4180_v11 = vpack.c.bf16 %v1150_v4, %v1143_v3  ;;  %v6551_v2 = vld [vmem:[%s9687_s2] sm:$0xff] }
  0xa7   : > { %4411 = vmatpush1.bf16.msra.mxu1 %v4410_v57  ;;  %v1158_v57 = vld [vmem:[%s9688_s3 + $0x6a0] sm:$0xff] }
  0xa8   : > { %4159 = vmatpush1.bf16.msra.mxu0 %v4158_v13  ;;  %4413 = vmatprep.subr.bf16.mxu1 %v4412_v58  ;;  %v1149_v13 = vld [vmem:[%s9688_s3 + $0x658] sm:$0xff] }
  0xa9   : > { %4161 = vmatprep.subr.bf16.mxu0 %v4160_v15  ;;  %v1164_v15 = vld [vmem:[%s9688_s3 + $0x6d0] sm:$0xff]  ;;  %v4182_v21 = vpack.c.bf16 %v1149_v13, %v1142_v12  ;;  %v1165_v58 = vld [vmem:[%s9688_s3 + $0x6d8] sm:$0xff] }
  0xaa   : > { %v4184_v23 = vpack.c.bf16 %v1164_v15, %v1157_v14  ;;  %v4442_v61 = vpack.c.bf16 %v1165_v58, %v1158_v57  ;;  %v1185_v12 = vld [vmem:[%s9688_s3 + $0x778] sm:$0xff]  ;;  %v1192_v14 = vld [vmem:[%s9688_s3 + $0x7b0] sm:$0xff]  ;;  %v1187_v15 = vld [vmem:[%s9688_s3 + $0x788] sm:$0xff] }
  0xab   : > { %4415 = vmatpush1.bf16.msra.mxu1 %v4414_v5 }
  0xac   : > { %4163 = vmatpush1.bf16.msra.mxu0 %v4162_v25  ;;  %4417 = vmatprep.subr.bf16.mxu1 %v4416_v6  ;;  %v1163_v25 = vld [vmem:[%s9688_s3 + $0x6c8] sm:$0xff] }
  0xad   : > { %4165 = vmatprep.subr.bf16.mxu0 %v4164_v27  ;;  %v1178_v27 = vld [vmem:[%s9688_s3 + $0x740] sm:$0xff]  ;;  %v4186_v32 = vpack.c.bf16 %v1163_v25, %v1156_v24 }
  0xae   : > { %v4188_v35 = vpack.c.bf16 %v1178_v27, %v1171_v26  ;;  %v1186_v25 = vld [vmem:[%s9688_s3 + $0x780] sm:$0xff]  ;;  %v1193_v26 = vld [vmem:[%s9688_s3 + $0x7b8] sm:$0xff]  ;;  %v1199_v27 = vld [vmem:[%s9688_s3 + $0x7e8] sm:$0xff] }
  0xaf   : > { %4419 = vmatpush1.bf16.msra.mxu1 %v4418_v16  ;;  %v1194_v16 = vld [vmem:[%s9688_s3 + $0x7c0] sm:$0xff] }
  0xb0   : > { %4167 = vmatpush1.bf16.msra.mxu0 %v4166_v37  ;;  %4421 = vmatprep.subr.bf16.mxu1 %v4420_v17  ;;  %v4428_v37 = vpack.c.bf16 %v1124_v34, %v1117_v33  ;;  %v4448_v24 = vpack.c.bf16 %v1194_v16, %v1187_v15  ;;  %v1198_v33 = vld [vmem:[%s9688_s3 + $0x7e0] sm:$0xff]  ;;  %v1205_v34 = vld [vmem:[%s9688_s3 + $0x818] sm:$0xff] }
  0xb1   : > { %4169 = vmatprep.subr.bf16.mxu0 %v4168_v39  ;;  %v1123_v39 = vld [vmem:[%s9688_s3 + $0x588] sm:$0xff]  ;;  %v1242_v15 = vld [vmem:[%s9688_s3 + $0x940] sm:$0xff]  ;;  %v1249_v16 = vld [vmem:[%s9688_s3 + $0x978] sm:$0xff] }
  0xb2   : > { %v4430_v44 = vpack.c.bf16 %v1123_v39, %v1116_v38  ;;  %v1207_v38 = vld [vmem:[%s9688_s3 + $0x828] sm:$0xff]  ;;  %v1213_v39 = vld [vmem:[%s9688_s3 + $0x858] sm:$0xff] }
  0xb3   : > { %4423 = vmatpush1.bf16.msra.mxu1 %v4422_v28  ;;  %v1206_v28 = vld [vmem:[%s9688_s3 + $0x820] sm:$0xff] }
  0xb4   : > { %4171 = vmatpush1.bf16.msra.mxu0 %v4170_v51  ;;  %4425 = vmatprep.subr.bf16.mxu1 %v4424_v29  ;;  %v4436_v51 = vpack.c.bf16 %v1152_v49, %v1145_v48  ;;  %v1201_v29 = vld [vmem:[%s9688_s3 + $0x7f8] sm:$0xff]  ;;  %v1219_v48 = vld [vmem:[%s9688_s3 + $0x888] sm:$0xff]  ;;  %v4200_v49 = vpack.c.bf16 %v1220_v40, %v1213_v39 }
  0xb5   : > { %4173 = vmatprep.subr.bf16.mxu0 %v4172_v41  ;;  %v1151_v41 = vld [vmem:[%s9688_s3 + $0x668] sm:$0xff]  ;;  %v4202_v57 = vpack.c.bf16 %v1219_v48, %v1212_v47  ;;  %v1270_v47 = vld [vmem:[%s9688_s3 + $0xa20] sm:$0xff]  ;;  %v1277_v48 = vld [vmem:[%s9688_s3 + $0xa58] sm:$0xff] }
  0xb6   : > { %v4438_v55 = vpack.c.bf16 %v1151_v41, %v1144_v52  ;;  %v1221_v52 = vld [vmem:[%s9688_s3 + $0x898] sm:$0xff]  ;;  %v1227_v41 = vld [vmem:[%s9688_s3 + $0x8c8] sm:$0xff] }
  0xb7   : > { %4427 = vmatpush1.bf16.msra.mxu1 %v4426_v36  ;;  %v4452_v36 = vpack.c.bf16 %v1208_v30, %v1201_v29  ;;  %v1261_v29 = vld [vmem:[%s9688_s3 + $0x9d8] sm:$0xff] }
  0xb8   : > { %4175 = vmatpush1.bf16.msra.mxu0 %v4174_v62  ;;  %4429 = vmatprep.subr.bf16.mxu1 %v4428_v37  ;;  %v4444_v62 = vpack.c.bf16 %v1180_v60, %v1173_v59  ;;  %v1200_v37 = vld [vmem:[%s9688_s3 + $0x7f0] sm:$0xff]  ;;  %v1226_v59 = vld [vmem:[%s9688_s3 + $0x8c0] sm:$0xff]  ;;  %v1233_v60 = vld [vmem:[%s9688_s3 + $0x8f8] sm:$0xff] }
  0xb9   : > { %4177 = vmatprep.subr.bf16.mxu0 %v4176_v0  ;;  %v6543_v0 = vshrl.u32 %v585_v63, 7  ;;  %v4454_v46 = vpack.c.bf16 %v1207_v38, %v1200_v37  ;;  %v1228_v63 = vld [vmem:[%s9688_s3 + $0x8d0] sm:$0xff]  ;;  %v1271_v37 = vld [vmem:[%s9688_s3 + $0xa28] sm:$0xff]  ;;  %v1278_v38 = vld [vmem:[%s9688_s3 + $0xa60] sm:$0xff] }
  0xbb   : > { %4431 = vmatpush1.bf16.msra.mxu1 %v4430_v44  ;;  %v6546_v1 = vsub.s32 0, %v6543_v0  ;;  %v6554_v3 = vsub.s32 1, %v6543_v0  ;;  %v1222_v44 = vld [vmem:[%s9688_s3 + $0x8a0] sm:$0xff] }
  0xbc   : > { %4179 = vmatpush1.bf16.msra.mxu0 %v4178_v9  ;;  %4433 = vmatprep.subr.bf16.mxu1 %v4432_v45  ;;  %v4198_v45 = vpack.c.bf16 %v1205_v34, %v1198_v33  ;;  %v1263_v33 = vld [vmem:[%s9688_s3 + $0x9e8] sm:$0xff]  ;;  %v1269_v34 = vld [vmem:[%s9688_s3 + $0xa18] sm:$0xff] }
  0xbd   : > { %4181 = vmatprep.subr.bf16.mxu0 %v4180_v11  ;;  %v588_v4 = vrot.slane %v6551_v2, %v6546_v1  ;;  %v592_v5 = vrot.slane %v6551_v2, %v6554_v3  ;;  %v1179_v11 = vld [vmem:[%s9688_s3 + $0x748] sm:$0xff] }
  0xbe   : > { %v4446_v19 = vpack.c.bf16 %v1179_v11, %v1172_v10  ;;  %v1240_v11 = vld [vmem:[%s9688_s3 + $0x930] sm:$0xff] }
  0xbf   : > { %4435 = vmatpush1.bf16.msra.mxu1 %v4434_v50  ;;  %v4456_v50 = vpack.c.bf16 %v1222_v44, %v1215_v43  ;;  %v1268_v43 = vld [vmem:[%s9688_s3 + $0xa10] sm:$0xff]  ;;  %v1275_v44 = vld [vmem:[%s9688_s3 + $0xa48] sm:$0xff] }
  0xc0   : > { %4183 = vmatpush1.bf16.msra.mxu0 %v4182_v21  ;;  %4437 = vmatprep.subr.bf16.mxu1 %v4436_v51  ;;  %v1191_v21 = vld [vmem:[%s9688_s3 + $0x7a8] sm:$0xff]  ;;  %v1214_v51 = vld [vmem:[%s9688_s3 + $0x860] sm:$0xff] }
  0xc1   : > { %4185 = vmatprep.subr.bf16.mxu0 %v4184_v23  ;;  %v4192_v23 = vpack.c.bf16 %v1192_v14, %v1185_v12  ;;  %v4194_v31 = vpack.c.bf16 %v1191_v21, %v1184_v20  ;;  %v4458_v58 = vpack.c.bf16 %v1221_v52, %v1214_v51  ;;  %v1247_v12 = vld [vmem:[%s9688_s3 + $0x968] sm:$0xff]  ;;  %v4464_v14 = vpack.c.bf16 %v1250_v8, %v1243_v7  ;;  %v1262_v20 = vld [vmem:[%s9688_s3 + $0x9e0] sm:$0xff]  ;;  %v1257_v21 = vld [vmem:[%s9688_s3 + $0x9b8] sm:$0xff] }
  0xc2   : > { %v1285_v51 = vld [vmem:[%s9688_s3 + $0xa98] sm:$0xff]  ;;  %v1292_v52 = vld [vmem:[%s9688_s3 + $0xad0] sm:$0xff]  ;;  %v1303_v8 = vld [vmem:[%s9688_s3 + $0xb28] sm:$0xff] }
  0xc3   : > { %4439 = vmatpush1.bf16.msra.mxu1 %v4438_v55  ;;  %v1236_v55 = vld [vmem:[%s9688_s3 + $0x910] sm:$0xff] }
  0xc4   : > { %4187 = vmatpush1.bf16.msra.mxu0 %v4186_v32  ;;  %4441 = vmatprep.subr.bf16.mxu1 %v4440_v56  ;;  %v4450_v32 = vpack.c.bf16 %v1193_v26, %v1186_v25  ;;  %v599_v56 = vsub.s32 3, %v6543_v0  ;;  %v4210_v26 = vpack.c.bf16 %v1247_v12, %v1240_v11  ;;  %v1296_v7 = vld [vmem:[%s9688_s3 + $0xaf0] sm:$0xff]  ;;  %v1305_v11 = vld [vmem:[%s9688_s3 + $0xb38] sm:$0xff]  ;;  %v1311_v12 = vld [vmem:[%s9688_s3 + $0xb68] sm:$0xff] }
  0xc5   : > { %4189 = vmatprep.subr.bf16.mxu0 %v4188_v35  ;;  %v4196_v35 = vpack.c.bf16 %v1206_v28, %v1199_v27  ;;  %v4466_v27 = vpack.c.bf16 %v1249_v16, %v1242_v15  ;;  %v1254_v28 = vld [vmem:[%s9688_s3 + $0x9a0] sm:$0xff]  ;;  %v1320_v15 = vld [vmem:[%s9688_s3 + $0xbb0] sm:$0xff]  ;;  %v4226_v16 = vpack.c.bf16 %v1303_v8, %v1296_v7  ;;  %v1369_v8 = vld [vmem:[%s9688_s3 + $0xd38] sm:$0xff] }
  0xc6   : > { %v4214_v39 = vpack.c.bf16 %v1261_v29, %v1254_v28  ;;  %v1332_v28 = vld [vmem:[%s9688_s3 + $0xc10] sm:$0xff]  ;;  %v1327_v29 = vld [vmem:[%s9688_s3 + $0xbe8] sm:$0xff]  ;;  %v1374_v7 = vld [vmem:[%s9688_s3 + $0xd60] sm:$0xff] }
  0xc7   : > { %4443 = vmatpush1.bf16.msra.mxu1 %v4442_v61  ;;  %v4204_v61 = vpack.c.bf16 %v1234_v53, %v1227_v41  ;;  %v4218_v41 = vpack.c.bf16 %v1275_v44, %v1268_v43  ;;  %v4474_v53 = vpack.c.bf16 %v1277_v48, %v1270_v47  ;;  %v1346_v43 = vld [vmem:[%s9688_s3 + $0xc80] sm:$0xff]  ;;  %v1341_v44 = vld [vmem:[%s9688_s3 + $0xc58] sm:$0xff] }
  0xc8   : > { %4445 = vmatprep.subr.bf16.mxu1 %v4444_v62  ;;  %v4460_v62 = vpack.c.bf16 %v1236_v55, %v1229_v54  ;;  %v1282_v54 = vld [vmem:[%s9688_s3 + $0xa80] sm:$0xff]  ;;  %v1289_v55 = vld [vmem:[%s9688_s3 + $0xab8] sm:$0xff] }
  0xc9   : > { %v1338_v48 = vld [vmem:[%s9688_s3 + $0xc40] sm:$0xff] }
 0x11c   : > { %v720_v6 = vpop.f32.mrb[0].mxu0 }
 0x11d   : > { %v721_v42 = vadd.f32 %v720_v6, %v588_v4  ;;  %v722_v9 = vpop.f32.mrb[1].mxu0  ;;  %v1235_v4 = vld [vmem:[%s9688_s3 + $0x908] sm:$0xff]  ;;  %v1248_v6 = vld [vmem:[%s9688_s3 + $0x970] sm:$0xff] }
 0x11e   : > { %v723_v13 = vadd.f32 %v722_v9, %v592_v5  ;;  %v1241_v5 = vld [vmem:[%s9688_s3 + $0x938] sm:$0xff]  ;;  %v4206_v9 = vpack.c.bf16 %v1233_v60, %v1226_v59  ;;  %v4462_v10 = vpack.c.bf16 %v1235_v4, %v1228_v63  ;;  %v1284_v59 = vld [vmem:[%s9688_s3 + $0xa90] sm:$0xff]  ;;  %v1291_v60 = vld [vmem:[%s9688_s3 + $0xac8] sm:$0xff] }
 0x11f   : > { %v6592_v22 = vmax.f32 %v721_v42, 0.0  ;;  %v600_v42 = vrot.slane %v6551_v2, %v599_v56  ;;  %v1299_v63 = vld [vmem:[%s9688_s3 + $0xb08] sm:$0xff]  ;;  %v1306_v4 = vld [vmem:[%s9688_s3 + $0xb40] sm:$0xff] }
 0x120   : > { %v6584_v17 = vmax.f32 %v723_v13, 0.0  ;;  %v4208_v13 = vpack.c.bf16 %v1248_v6, %v1241_v5  ;;  %v4222_v5 = vpack.c.bf16 %v1289_v55, %v1282_v54  ;;  %v4478_v6 = vpack.c.bf16 %v1291_v60, %v1284_v59  ;;  %v1360_v54 = vld [vmem:[%s9688_s3 + $0xcf0] sm:$0xff]  ;;  %v1355_v55 = vld [vmem:[%s9688_s3 + $0xcc8] sm:$0xff] }
 0x121   : > { %v1352_v60 = vld [vmem:[%s9688_s3 + $0xcb0] sm:$0xff] }
 0x122   : > { %1943 = vmatprep.mubr.f32.mxu0 %v6584_v17  ;;  %2227 = vmatprep.mubr.f32.mxu1 %v6584_v17 }
 0x123   : > { %1944 = vmatmul.mubr.f32.vlgmr.msra.gmra.mrb[4].mxu0 %v6592_v22  ;;  %2228 = vmatmul.mubr.f32.vlgmr.msra.gmra.mrb[4].mxu1 %v6592_v22 }
 0x124   : > { %4191 = vmatpush1.bf16.msra.mxu0 %v4190_v18  ;;  %4447 = vmatpush1.bf16.msra.mxu1 %v4446_v19  ;;  %v1255_v18 = vld [vmem:[%s9688_s3 + $0x9a8] sm:$0xff]  ;;  %v6707_v19 = vpop.f32.mrb[0].mxu1 }
 0x125   : > { %4193 = vmatprep.subr.bf16.mxu0 %v4192_v23  ;;  %4449 = vmatprep.subr.bf16.mxu1 %v4448_v24  ;;  %v1264_v23 = vld [vmem:[%s9688_s3 + $0x9f0] sm:$0xff]  ;;  %v793_v24 = vpop.f32.mrb[1].mxu1  ;;  %v4212_v30 = vpack.c.bf16 %v1262_v20, %v1255_v18  ;;  %v1310_v20 = vld [vmem:[%s9688_s3 + $0xb60] sm:$0xff] }
 0x126   : > { %v794_v25 = vadd.f32 %v793_v24, %v600_v42 }
 0x128   : > { %4195 = vmatpush1.bf16.msra.mxu0 %v4194_v31  ;;  %4451 = vmatpush1.bf16.msra.mxu1 %v4450_v32  ;;  %v4468_v31 = vpack.c.bf16 %v1264_v23, %v1257_v21  ;;  %v1256_v32 = vld [vmem:[%s9688_s3 + $0x9b0] sm:$0xff]  ;;  %v1317_v21 = vld [vmem:[%s9688_s3 + $0xb98] sm:$0xff] }
 0x129   : > { %4197 = vmatprep.subr.bf16.mxu0 %v4196_v35  ;;  %4453 = vmatprep.subr.bf16.mxu1 %v4452_v36  ;;  %v6733_v35 = vmax.f32 %v794_v25, 0.0  ;;  %v1276_v36 = vld [vmem:[%s9688_s3 + $0xa50] sm:$0xff]  ;;  %v4470_v40 = vpack.c.bf16 %v1263_v33, %v1256_v32 }
 0x12a   : > { %v1312_v25 = vld [vmem:[%s9688_s3 + $0xb70] sm:$0xff] }
 0x12b   : > { %2014 = vmatprep.mubr.f32.mxu0 %v6733_v35  ;;  %2298 = vmatprep.mubr.f32.mxu1 %v6733_v35  ;;  %v1324_v33 = vld [vmem:[%s9688_s3 + $0xbd0] sm:$0xff] }
 0x12c   : > { %4199 = vmatpush1.bf16.msra.mxu0 %v4198_v45  ;;  %4455 = vmatpush1.bf16.msra.mxu1 %v4454_v46  ;;  %v4216_v45 = vpack.c.bf16 %v1276_v36, %v1269_v34  ;;  %v4472_v46 = vpack.c.bf16 %v1278_v38, %v1271_v37  ;;  %v1331_v34 = vld [vmem:[%s9688_s3 + $0xc08] sm:$0xff]  ;;  %v1326_v38 = vld [vmem:[%s9688_s3 + $0xbe0] sm:$0xff] }
 0x12d   : > { %4201 = vmatprep.subr.bf16.mxu0 %v4200_v49  ;;  %4457 = vmatprep.subr.bf16.mxu1 %v4456_v50  ;;  %v1283_v49 = vld [vmem:[%s9688_s3 + $0xa88] sm:$0xff]  ;;  %v1290_v50 = vld [vmem:[%s9688_s3 + $0xac0] sm:$0xff] }
 0x130   : > { %4203 = vmatpush1.bf16.msra.mxu0 %v4202_v57  ;;  %4459 = vmatpush1.bf16.msra.mxu1 %v4458_v58  ;;  %v4220_v57 = vpack.c.bf16 %v1290_v50, %v1283_v49  ;;  %v4476_v58 = vpack.c.bf16 %v1292_v52, %v1285_v51  ;;  %v1345_v49 = vld [vmem:[%s9688_s3 + $0xc78] sm:$0xff]  ;;  %v1340_v52 = vld [vmem:[%s9688_s3 + $0xc50] sm:$0xff] }
 0x131   : > { %4205 = vmatprep.subr.bf16.mxu0 %v4204_v61  ;;  %4461 = vmatprep.subr.bf16.mxu1 %v4460_v62  ;;  %v1297_v61 = vld [vmem:[%s9688_s3 + $0xaf8] sm:$0xff]  ;;  %v1304_v62 = vld [vmem:[%s9688_s3 + $0xb30] sm:$0xff] }
 0x132   : > { %v4224_v42 = vpack.c.bf16 %v1304_v62, %v1297_v61  ;;  %v1359_v61 = vld [vmem:[%s9688_s3 + $0xce8] sm:$0xff] }
 0x134   : > { %4207 = vmatpush1.bf16.msra.mxu0 %v4206_v9  ;;  %4463 = vmatpush1.bf16.msra.mxu1 %v4462_v10  ;;  %v4480_v9 = vpack.c.bf16 %v1306_v4, %v1299_v63  ;;  %v1298_v10 = vld [vmem:[%s9688_s3 + $0xb00] sm:$0xff] }
 0x135   : > { %4209 = vmatprep.subr.bf16.mxu0 %v4208_v13  ;;  %4465 = vmatprep.subr.bf16.mxu1 %v4464_v14  ;;  %v1318_v13 = vld [vmem:[%s9688_s3 + $0xba0] sm:$0xff]  ;;  %v1313_v14 = vld [vmem:[%s9688_s3 + $0xb78] sm:$0xff]  ;;  %v4482_v18 = vpack.c.bf16 %v1305_v11, %v1298_v10  ;;  %v4242_v10 = vpack.c.bf16 %v1359_v61, %v1352_v60  ;;  %v1408_v60 = vld [vmem:[%s9688_s3 + $0xe70] sm:$0xff] }
 0x136   : > { %v4228_v23 = vpack.c.bf16 %v1318_v13, %v1311_v12  ;;  %v4484_v24 = vpack.c.bf16 %v1320_v15, %v1313_v14  ;;  %v1354_v4 = vld [vmem:[%s9688_s3 + $0xcc0] sm:$0xff]  ;;  %v1373_v13 = vld [vmem:[%s9688_s3 + $0xd58] sm:$0xff]  ;;  %v1415_v61 = vld [vmem:[%s9688_s3 + $0xea8] sm:$0xff] }
 0x137   : > { %v1366_v12 = vld [vmem:[%s9688_s3 + $0xd20] sm:$0xff] }
 0x138   : > { %4211 = vmatpush1.bf16.msra.mxu0 %v4210_v26  ;;  %4467 = vmatpush1.bf16.msra.mxu1 %v4466_v27  ;;  %v1319_v26 = vld [vmem:[%s9688_s3 + $0xba8] sm:$0xff]  ;;  %v1325_v27 = vld [vmem:[%s9688_s3 + $0xbd8] sm:$0xff] }
 0x139   : > { %4213 = vmatprep.subr.bf16.mxu0 %v4212_v30  ;;  %4469 = vmatprep.subr.bf16.mxu1 %v4468_v31  ;;  %v1334_v30 = vld [vmem:[%s9688_s3 + $0xc20] sm:$0xff]  ;;  %v4230_v31 = vpack.c.bf16 %v1317_v21, %v1310_v20  ;;  %v4486_v32 = vpack.c.bf16 %v1319_v26, %v1312_v25  ;;  %v4232_v36 = vpack.c.bf16 %v1332_v28, %v1325_v27  ;;  %v1381_v20 = vld [vmem:[%s9688_s3 + $0xd98] sm:$0xff]  ;;  %v1388_v21 = vld [vmem:[%s9688_s3 + $0xdd0] sm:$0xff]  ;;  %v607_v25 = vsub.s32 5, %v6543_v0 }
 0x13a   : > { %v4488_v37 = vpack.c.bf16 %v1334_v30, %v1327_v29  ;;  %v4246_v27 = vpack.c.bf16 %v1373_v13, %v1366_v12  ;;  %v1380_v29 = vld [vmem:[%s9688_s3 + $0xd90] sm:$0xff]  ;;  %v1387_v30 = vld [vmem:[%s9688_s3 + $0xdc8] sm:$0xff]  ;;  %v1422_v13 = vld [vmem:[%s9688_s3 + $0xee0] sm:$0xff] }
 0x13c   : > { %4215 = vmatpush1.bf16.msra.mxu0 %v4214_v39  ;;  %4471 = vmatpush1.bf16.msra.mxu1 %v4470_v40  ;;  %v1333_v39 = vld [vmem:[%s9688_s3 + $0xc18] sm:$0xff]  ;;  %v1339_v40 = vld [vmem:[%s9688_s3 + $0xc48] sm:$0xff] }
 0x13d   : > { %4217 = vmatprep.subr.bf16.mxu0 %v4216_v45  ;;  %4473 = vmatprep.subr.bf16.mxu1 %v4472_v46  ;;  %v1348_v45 = vld [vmem:[%s9688_s3 + $0xc90] sm:$0xff]  ;;  %v4234_v46 = vpack.c.bf16 %v1331_v34, %v1324_v33  ;;  %v4490_v47 = vpack.c.bf16 %v1333_v39, %v1326_v38  ;;  %v4236_v50 = vpack.c.bf16 %v1346_v43, %v1339_v40  ;;  %v1382_v33 = vld [vmem:[%s9688_s3 + $0xda0] sm:$0xff]  ;;  %v1389_v34 = vld [vmem:[%s9688_s3 + $0xdd8] sm:$0xff] }
 0x13e   : > { %v4492_v51 = vpack.c.bf16 %v1348_v45, %v1341_v44  ;;  %v1397_v38 = vld [vmem:[%s9688_s3 + $0xe18] sm:$0xff]  ;;  %v1404_v39 = vld [vmem:[%s9688_s3 + $0xe50] sm:$0xff]  ;;  %v608_v40 = vrot.slane %v6551_v2, %v607_v25  ;;  %v4250_v45 = vpack.c.bf16 %v1387_v30, %v1380_v29  ;;  %v1443_v30 = vld [vmem:[%s9688_s3 + $0xf88] sm:$0xff] }
 0x13f   : > { %v1436_v29 = vld [vmem:[%s9688_s3 + $0xf50] sm:$0xff] }
 0x140   : > { %4219 = vmatpush1.bf16.msra.mxu0 %v4218_v41  ;;  %4475 = vmatpush1.bf16.msra.mxu1 %v4474_v53  ;;  %v1347_v41 = vld [vmem:[%s9688_s3 + $0xc88] sm:$0xff]  ;;  %v1353_v53 = vld [vmem:[%s9688_s3 + $0xcb8] sm:$0xff] }
 0x141   : > { %4221 = vmatprep.subr.bf16.mxu0 %v4220_v57  ;;  %4477 = vmatprep.subr.bf16.mxu1 %v4476_v58  ;;  %v1362_v57 = vld [vmem:[%s9688_s3 + $0xd00] sm:$0xff]  ;;  %v4238_v58 = vpack.c.bf16 %v1345_v49, %v1338_v48  ;;  %v4494_v59 = vpack.c.bf16 %v1347_v41, %v1340_v52  ;;  %v4240_v62 = vpack.c.bf16 %v1360_v54, %v1353_v53  ;;  %v1401_v48 = vld [vmem:[%s9688_s3 + $0xe38] sm:$0xff]  ;;  %v1416_v41 = vld [vmem:[%s9688_s3 + $0xeb0] sm:$0xff] }
 0x142   : > { %v4496_v63 = vpack.c.bf16 %v1362_v57, %v1355_v55  ;;  %v1409_v52 = vld [vmem:[%s9688_s3 + $0xe78] sm:$0xff]  ;;  %v1411_v53 = vld [vmem:[%s9688_s3 + $0xe88] sm:$0xff]  ;;  %v1418_v54 = vld [vmem:[%s9688_s3 + $0xec0] sm:$0xff] }
 0x144   : > { %4223 = vmatpush1.bf16.msra.mxu0 %v4222_v5  ;;  %4479 = vmatpush1.bf16.msra.mxu1 %v4478_v6  ;;  %v1361_v5 = vld [vmem:[%s9688_s3 + $0xcf8] sm:$0xff]  ;;  %v1367_v6 = vld [vmem:[%s9688_s3 + $0xd28] sm:$0xff] }
 0x145   : > { %4225 = vmatprep.subr.bf16.mxu0 %v4224_v42  ;;  %4481 = vmatprep.subr.bf16.mxu1 %v4480_v9  ;;  %v1376_v42 = vld [vmem:[%s9688_s3 + $0xd70] sm:$0xff]  ;;  %v595_v9 = vsub.s32 2, %v6543_v0  ;;  %v4498_v11 = vpack.c.bf16 %v1361_v5, %v1354_v4  ;;  %v4244_v14 = vpack.c.bf16 %v1374_v7, %v1367_v6  ;;  %v1410_v4 = vld [vmem:[%s9688_s3 + $0xe80] sm:$0xff]  ;;  %v1417_v5 = vld [vmem:[%s9688_s3 + $0xeb8] sm:$0xff] }
 0x146   : > { %v4500_v15 = vpack.c.bf16 %v1376_v42, %v1369_v8  ;;  %v1423_v6 = vld [vmem:[%s9688_s3 + $0xee8] sm:$0xff]  ;;  %v1430_v7 = vld [vmem:[%s9688_s3 + $0xf20] sm:$0xff]  ;;  %v1425_v8 = vld [vmem:[%s9688_s3 + $0xef8] sm:$0xff]  ;;  %v4514_v12 = vpack.c.bf16 %v1417_v5, %v1410_v4 }
 0x147   : > { %v596_v26 = vrot.slane %v6551_v2, %v595_v9  ;;  %v1432_v42 = vld [vmem:[%s9688_s3 + $0xf30] sm:$0xff]  ;;  %v1479_v4 = vld [vmem:[%s9688_s3 + $0x10a8] sm:$0xff]  ;;  %v1486_v5 = vld [vmem:[%s9688_s3 + $0x10e0] sm:$0xff] }
 0x148   : > { %4227 = vmatpush1.bf16.msra.mxu0 %v4226_v16  ;;  %4483 = vmatpush1.bf16.msra.mxu1 %v4482_v18  ;;  %v1368_v16 = vld [vmem:[%s9688_s3 + $0xd30] sm:$0xff]  ;;  %v1375_v18 = vld [vmem:[%s9688_s3 + $0xd68] sm:$0xff] }
 0x149   : > { %4229 = vmatprep.subr.bf16.mxu0 %v4228_v23  ;;  %4485 = vmatprep.subr.bf16.mxu1 %v4484_v24  ;;  %v1383_v23 = vld [vmem:[%s9688_s3 + $0xda8] sm:$0xff]  ;;  %v1390_v24 = vld [vmem:[%s9688_s3 + $0xde0] sm:$0xff]  ;;  %v4502_v28 = vpack.c.bf16 %v1375_v18, %v1368_v16  ;;  %v792_v43 = vadd.f32 %v6707_v19, %v596_v26  ;;  %v1396_v19 = vld [vmem:[%s9688_s3 + $0xe10] sm:$0xff]  ;;  %v4516_v16 = vpack.c.bf16 %v1432_v42, %v1425_v8 }
 0x14a   : > { %v1424_v18 = vld [vmem:[%s9688_s3 + $0xef0] sm:$0xff]  ;;  %v1446_v26 = vld [vmem:[%s9688_s3 + $0xfa0] sm:$0xff] }
 0x14b   : > { %v6997_v57 = vmax.f32 %v792_v43, 0.0 }
 0x14c   : > { %4231 = vmatpush1.bf16.msra.mxu0 %v4230_v31  ;;  %4487 = vmatpush1.bf16.msra.mxu1 %v4486_v32  ;;  %v4248_v31 = vpack.c.bf16 %v1388_v21, %v1381_v20  ;;  %v4504_v32 = vpack.c.bf16 %v1390_v24, %v1383_v23  ;;  %v1431_v20 = vld [vmem:[%s9688_s3 + $0xf28] sm:$0xff]  ;;  %v1437_v21 = vld [vmem:[%s9688_s3 + $0xf58] sm:$0xff]  ;;  %v1444_v23 = vld [vmem:[%s9688_s3 + $0xf90] sm:$0xff] }
 0x14d   : > { %4233 = vmatprep.subr.bf16.mxu0 %v4232_v36  ;;  %4489 = vmatprep.subr.bf16.mxu1 %v4488_v37  ;;  %v1395_v36 = vld [vmem:[%s9688_s3 + $0xe08] sm:$0xff]  ;;  %v1402_v37 = vld [vmem:[%s9688_s3 + $0xe40] sm:$0xff] }
 0x14e   : > { %v4252_v2 = vpack.c.bf16 %v1402_v37, %v1395_v36  ;;  %v1439_v24 = vld [vmem:[%s9688_s3 + $0xf68] sm:$0xff]  ;;  %v1458_v37 = vld [vmem:[%s9688_s3 + $0x1000] sm:$0xff] }
 0x14f   : > { %v1451_v36 = vld [vmem:[%s9688_s3 + $0xfc8] sm:$0xff] }
 0x150   : > { %4235 = vmatpush1.bf16.msra.mxu0 %v4234_v46  ;;  %4491 = vmatpush1.bf16.msra.mxu1 %v4490_v47  ;;  %v4506_v46 = vpack.c.bf16 %v1389_v34, %v1382_v33  ;;  %v1394_v47 = vld [vmem:[%s9688_s3 + $0xe00] sm:$0xff]  ;;  %v1445_v34 = vld [vmem:[%s9688_s3 + $0xf98] sm:$0xff] }
 0x151   : > { %4237 = vmatprep.subr.bf16.mxu0 %v4236_v50  ;;  %4493 = vmatprep.subr.bf16.mxu1 %v4492_v51  ;;  %v4508_v50 = vpack.c.bf16 %v1404_v39, %v1397_v38  ;;  %v1403_v51 = vld [vmem:[%s9688_s3 + $0xe48] sm:$0xff]  ;;  %v1438_v33 = vld [vmem:[%s9688_s3 + $0xf60] sm:$0xff]  ;;  %v1453_v38 = vld [vmem:[%s9688_s3 + $0xfd8] sm:$0xff] }
 0x152   : > { %v1460_v39 = vld [vmem:[%s9688_s3 + $0x1010] sm:$0xff]  ;;  %v4522_v43 = vpack.c.bf16 %v1445_v34, %v1438_v33  ;;  %v1507_v33 = vld [vmem:[%s9688_s3 + $0x1188] sm:$0xff]  ;;  %v1514_v34 = vld [vmem:[%s9688_s3 + $0x11c0] sm:$0xff] }
 0x154   : > { %4239 = vmatpush1.bf16.msra.mxu0 %v4238_v58  ;;  %4495 = vmatpush1.bf16.msra.mxu1 %v4494_v59  ;;  %v4254_v58 = vpack.c.bf16 %v1401_v48, %v1394_v47  ;;  %v4510_v59 = vpack.c.bf16 %v1403_v51, %v1396_v19  ;;  %v4268_v47 = vpack.c.bf16 %v1458_v37, %v1451_v36  ;;  %v1472_v19 = vld [vmem:[%s9688_s3 + $0x1070] sm:$0xff]  ;;  %v1467_v51 = vld [vmem:[%s9688_s3 + $0x1048] sm:$0xff]  ;;  %v1509_v36 = vld [vmem:[%s9688_s3 + $0x1198] sm:$0xff] }
 0x155   : > { %4241 = vmatprep.subr.bf16.mxu0 %v4240_v62  ;;  %4497 = vmatprep.subr.bf16.mxu1 %v4496_v63  ;;  %v4256_v62 = vpack.c.bf16 %v1416_v41, %v1409_v52  ;;  %v4512_v63 = vpack.c.bf16 %v1418_v54, %v1411_v53  ;;  %v4524_v48 = vpack.c.bf16 %v1460_v39, %v1453_v38  ;;  %v1474_v52 = vld [vmem:[%s9688_s3 + $0x1080] sm:$0xff]  ;;  %v1516_v37 = vld [vmem:[%s9688_s3 + $0x11d0] sm:$0xff] }
 0x158   : > { %4243 = vmatpush1.bf16.msra.mxu0 %v4242_v10  ;;  %4499 = vmatpush1.bf16.msra.mxu1 %v4498_v11  ;;  %v4258_v11 = vpack.c.bf16 %v1415_v61, %v1408_v60  ;;  %v4528_v61 = vpack.c.bf16 %v1474_v52, %v1467_v51 }
 0x159   : > { %4245 = vmatprep.subr.bf16.mxu0 %v4244_v14  ;;  %4501 = vmatprep.subr.bf16.mxu1 %v4500_v15  ;;  %v1429_v14 = vld [vmem:[%s9688_s3 + $0xf18] sm:$0xff]  ;;  %v4260_v15 = vpack.c.bf16 %v1430_v7, %v1423_v6  ;;  %v1488_v7 = vld [vmem:[%s9688_s3 + $0x10f0] sm:$0xff] }
 0x15a   : > { %v6971_v44 = vpop.f32.mrb[2].mxu0  ;;  %v1481_v6 = vld [vmem:[%s9688_s3 + $0x10b8] sm:$0xff] }
 0x15b   : > { %v864_v49 = vpop.f32.mrb[3].mxu0 }
 0x15c   : > { %4247 = vmatpush1.bf16.msra.mxu0 %v4246_v27  ;;  %4503 = vmatpush1.bf16.msra.mxu1 %v4502_v28  ;;  %v865_v55 = vadd.f32 %v864_v49, %v608_v40  ;;  %v4262_v27 = vpack.c.bf16 %v1429_v14, %v1422_v13  ;;  %v4518_v28 = vpack.c.bf16 %v1431_v20, %v1424_v18  ;;  %v1452_v49 = vld [vmem:[%s9688_s3 + $0xfd0] sm:$0xff]  ;;  %v1493_v18 = vld [vmem:[%s9688_s3 + $0x1118] sm:$0xff] }
 0x15d   : > { %4249 = vmatprep.subr.bf16.mxu0 %v4248_v31  ;;  %4505 = vmatprep.subr.bf16.mxu1 %v4504_v32  ;;  %v4264_v31 = vpack.c.bf16 %v1444_v23, %v1437_v21  ;;  %v4520_v32 = vpack.c.bf16 %v1446_v26, %v1439_v24  ;;  %v4266_v40 = vpack.c.bf16 %v1443_v30, %v1436_v29  ;;  %v7101_v41 = vpop.f32.mrb[2].mxu1  ;;  %v1500_v20 = vld [vmem:[%s9688_s3 + $0x1150] sm:$0xff]  ;;  %v1495_v21 = vld [vmem:[%s9688_s3 + $0x1128] sm:$0xff]  ;;  %v1502_v23 = vld [vmem:[%s9688_s3 + $0x1160] sm:$0xff] }
 0x15e   : > { %v7023_v10 = vmax.f32 %v865_v55, 0.0  ;;  %v1464_v55 = vld [vmem:[%s9688_s3 + $0x1030] sm:$0xff]  ;;  %v4276_v13 = vpack.c.bf16 %v1486_v5, %v1479_v4  ;;  %v4532_v14 = vpack.c.bf16 %v1488_v7, %v1481_v6  ;;  %v4280_v29 = vpack.c.bf16 %v1500_v20, %v1493_v18  ;;  %v1537_v4 = vld [vmem:[%s9688_s3 + $0x1278] sm:$0xff]  ;;  %v1551_v18 = vld [vmem:[%s9688_s3 + $0x12e8] sm:$0xff] }
 0x15f   : > { %v4536_v30 = vpack.c.bf16 %v1502_v23, %v1495_v21  ;;  %v1544_v5 = vld [vmem:[%s9688_s3 + $0x12b0] sm:$0xff]  ;;  %v1558_v20 = vld [vmem:[%s9688_s3 + $0x1320] sm:$0xff] }
 0x160   : > { %4251 = vmatpush1.bf16.msra.mxu0 %v4250_v45  ;;  %4507 = vmatpush1.bf16.msra.mxu1 %v4506_v46  ;;  %v1450_v45 = vld [vmem:[%s9688_s3 + $0xfc0] sm:$0xff]  ;;  %v1457_v46 = vld [vmem:[%s9688_s3 + $0xff8] sm:$0xff] }
 0x161   : > { %4253 = vmatprep.subr.bf16.mxu0 %v4252_v2  ;;  %4509 = vmatprep.subr.bf16.mxu1 %v4508_v50  ;;  %v1459_v2 = vld [vmem:[%s9688_s3 + $0x1008] sm:$0xff]  ;;  %v1465_v50 = vld [vmem:[%s9688_s3 + $0x1038] sm:$0xff]  ;;  %v4270_v53 = vpack.c.bf16 %v1457_v46, %v1450_v45  ;;  %v4284_v45 = vpack.c.bf16 %v1514_v34, %v1507_v33  ;;  %v4540_v46 = vpack.c.bf16 %v1516_v37, %v1509_v36  ;;  %v1572_v34 = vld [vmem:[%s9688_s3 + $0x1390] sm:$0xff] }
 0x162   : > { %v4526_v54 = vpack.c.bf16 %v1459_v2, %v1452_v49  ;;  %v4272_v60 = vpack.c.bf16 %v1472_v19, %v1465_v50  ;;  %v1521_v49 = vld [vmem:[%s9688_s3 + $0x11f8] sm:$0xff]  ;;  %v1528_v2 = vld [vmem:[%s9688_s3 + $0x1230] sm:$0xff]  ;;  %v1523_v50 = vld [vmem:[%s9688_s3 + $0x1208] sm:$0xff] }
 0x163   : > { %2015 = vmatmul.mubr.f32.vlgmr.msra.gmra.mrb[4].mxu0 %v6997_v57  ;;  %2299 = vmatmul.mubr.f32.vlgmr.msra.gmra.mrb[4].mxu1 %v6997_v57  ;;  %v1530_v19 = vld [vmem:[%s9688_s3 + $0x1240] sm:$0xff]  ;;  %v1565_v33 = vld [vmem:[%s9688_s3 + $0x1358] sm:$0xff] }
 0x164   : > { %4255 = vmatpush1.bf16.msra.mxu0 %v4254_v58  ;;  %4511 = vmatpush1.bf16.msra.mxu1 %v4510_v59  ;;  %v1471_v58 = vld [vmem:[%s9688_s3 + $0x1068] sm:$0xff]  ;;  %v7109_v59 = vpop.f32.mrb[3].mxu1 }
 0x165   : > { %4257 = vmatprep.subr.bf16.mxu0 %v4256_v62  ;;  %4513 = vmatprep.subr.bf16.mxu1 %v4512_v63  ;;  %v1466_v62 = vld [vmem:[%s9688_s3 + $0x1040] sm:$0xff]  ;;  %v1473_v63 = vld [vmem:[%s9688_s3 + $0x1078] sm:$0xff]  ;;  %v4274_v8 = vpack.c.bf16 %v1471_v58, %v1464_v55  ;;  %v4288_v55 = vpack.c.bf16 %v1528_v2, %v1521_v49  ;;  %v4544_v58 = vpack.c.bf16 %v1530_v19, %v1523_v50  ;;  %v1579_v49 = vld [vmem:[%s9688_s3 + $0x13c8] sm:$0xff] }
 0x166   : > { %2085 = vmatprep.mubr.f32.mxu0 %v7023_v10  ;;  %2369 = vmatprep.mubr.f32.mxu1 %v7023_v10  ;;  %v4530_v42 = vpack.c.bf16 %v1473_v63, %v1466_v62  ;;  %v1535_v62 = vld [vmem:[%s9688_s3 + $0x1268] sm:$0xff]  ;;  %v1542_v63 = vld [vmem:[%s9688_s3 + $0x12a0] sm:$0xff] }
 0x167   : > { %v1586_v2 = vld [vmem:[%s9688_s3 + $0x1400] sm:$0xff] }
 0x168   : > { %4259 = vmatpush1.bf16.msra.mxu0 %v4258_v11  ;;  %4515 = vmatpush1.bf16.msra.mxu1 %v4514_v12  ;;  %v1478_v11 = vld [vmem:[%s9688_s3 + $0x10a0] sm:$0xff]  ;;  %v1485_v12 = vld [vmem:[%s9688_s3 + $0x10d8] sm:$0xff] }
 0x169   : > { %4261 = vmatprep.subr.bf16.mxu0 %v4260_v15  ;;  %4517 = vmatprep.subr.bf16.mxu1 %v4516_v16  ;;  %v1480_v15 = vld [vmem:[%s9688_s3 + $0x10b0] sm:$0xff]  ;;  %v1487_v16 = vld [vmem:[%s9688_s3 + $0x10e8] sm:$0xff]  ;;  %v4278_v24 = vpack.c.bf16 %v1485_v12, %v1478_v11  ;;  %v4292_v11 = vpack.c.bf16 %v1542_v63, %v1535_v62  ;;  %v4548_v12 = vpack.c.bf16 %v1544_v5, %v1537_v4  ;;  %v1593_v62 = vld [vmem:[%s9688_s3 + $0x1438] sm:$0xff]  ;;  %v603_v4 = vsub.s32 4, %v6543_v0 }
 0x16a   : > { %v4534_v26 = vpack.c.bf16 %v1487_v16, %v1480_v15  ;;  %v1549_v15 = vld [vmem:[%s9688_s3 + $0x12d8] sm:$0xff]  ;;  %v1556_v16 = vld [vmem:[%s9688_s3 + $0x1310] sm:$0xff] }
 0x16b   : > { %v1600_v63 = vld [vmem:[%s9688_s3 + $0x1470] sm:$0xff] }
 0x16c   : > { %4263 = vmatpush1.bf16.msra.mxu0 %v4262_v27  ;;  %4519 = vmatpush1.bf16.msra.mxu1 %v4518_v28  ;;  %v1492_v27 = vld [vmem:[%s9688_s3 + $0x1110] sm:$0xff]  ;;  %v1499_v28 = vld [vmem:[%s9688_s3 + $0x1148] sm:$0xff] }
 0x16d   : > { %4265 = vmatprep.subr.bf16.mxu0 %v4264_v31  ;;  %4521 = vmatprep.subr.bf16.mxu1 %v4520_v32  ;;  %v1494_v31 = vld [vmem:[%s9688_s3 + $0x1120] sm:$0xff]  ;;  %v1501_v32 = vld [vmem:[%s9688_s3 + $0x1158] sm:$0xff]  ;;  %v4282_v38 = vpack.c.bf16 %v1499_v28, %v1492_v27  ;;  %v4296_v27 = vpack.c.bf16 %v1556_v16, %v1549_v15  ;;  %v4552_v28 = vpack.c.bf16 %v1558_v20, %v1551_v18  ;;  %v1612_v15 = vld [vmem:[%s9688_s3 + $0x14d0] sm:$0xff]  ;;  %v615_v20 = vsub.s32 7, %v6543_v0 }
 0x16e   : > { %v4538_v39 = vpack.c.bf16 %v1501_v32, %v1494_v31  ;;  %v1563_v31 = vld [vmem:[%s9688_s3 + $0x1348] sm:$0xff]  ;;  %v1570_v32 = vld [vmem:[%s9688_s3 + $0x1380] sm:$0xff] }
 0x16f   : > { %v1607_v16 = vld [vmem:[%s9688_s3 + $0x14a8] sm:$0xff]  ;;  %v1614_v18 = vld [vmem:[%s9688_s3 + $0x14e0] sm:$0xff] }
 0x170   : > { %4267 = vmatpush1.bf16.msra.mxu0 %v4266_v40  ;;  %4523 = vmatpush1.bf16.msra.mxu1 %v4522_v43  ;;  %v1506_v40 = vld [vmem:[%s9688_s3 + $0x1180] sm:$0xff]  ;;  %v1513_v43 = vld [vmem:[%s9688_s3 + $0x11b8] sm:$0xff] }
 0x171   : > { %4269 = vmatprep.subr.bf16.mxu0 %v4268_v47  ;;  %4525 = vmatprep.subr.bf16.mxu1 %v4524_v48  ;;  %v1508_v47 = vld [vmem:[%s9688_s3 + $0x1190] sm:$0xff]  ;;  %v1515_v48 = vld [vmem:[%s9688_s3 + $0x11c8] sm:$0xff]  ;;  %v4286_v51 = vpack.c.bf16 %v1513_v43, %v1506_v40  ;;  %v4300_v40 = vpack.c.bf16 %v1570_v32, %v1563_v31  ;;  %v4556_v43 = vpack.c.bf16 %v1572_v34, %v1565_v33  ;;  %v1606_v31 = vld [vmem:[%s9688_s3 + $0x14a0] sm:$0xff] }
 0x172   : > { %v4542_v52 = vpack.c.bf16 %v1515_v48, %v1508_v47  ;;  %v1577_v47 = vld [vmem:[%s9688_s3 + $0x13b8] sm:$0xff]  ;;  %v1584_v48 = vld [vmem:[%s9688_s3 + $0x13f0] sm:$0xff]  ;;  %v1619_v33 = vld [vmem:[%s9688_s3 + $0x1508] sm:$0xff] }
 0x173   : > { %v1613_v32 = vld [vmem:[%s9688_s3 + $0x14d8] sm:$0xff]  ;;  %v1626_v34 = vld [vmem:[%s9688_s3 + $0x1540] sm:$0xff] }
 0x174   : > { %4271 = vmatpush1.bf16.msra.mxu0 %v4270_v53  ;;  %4527 = vmatpush1.bf16.msra.mxu1 %v4526_v54  ;;  %v1520_v53 = vld [vmem:[%s9688_s3 + $0x11f0] sm:$0xff]  ;;  %v1527_v54 = vld [vmem:[%s9688_s3 + $0x1228] sm:$0xff] }
 0x175   : > { %4273 = vmatprep.subr.bf16.mxu0 %v4272_v60  ;;  %4529 = vmatprep.subr.bf16.mxu1 %v4528_v61  ;;  %v1522_v60 = vld [vmem:[%s9688_s3 + $0x1200] sm:$0xff]  ;;  %v1529_v61 = vld [vmem:[%s9688_s3 + $0x1238] sm:$0xff]  ;;  %v4290_v6 = vpack.c.bf16 %v1527_v54, %v1520_v53  ;;  %v4304_v53 = vpack.c.bf16 %v1584_v48, %v1577_v47  ;;  %v4560_v54 = vpack.c.bf16 %v1586_v2, %v1579_v49  ;;  %v1627_v49 = vld [vmem:[%s9688_s3 + $0x1548] sm:$0xff] }
 0x176   : > { %v4546_v7 = vpack.c.bf16 %v1529_v61, %v1522_v60  ;;  %v1591_v60 = vld [vmem:[%s9688_s3 + $0x1428] sm:$0xff]  ;;  %v1598_v61 = vld [vmem:[%s9688_s3 + $0x1460] sm:$0xff]  ;;  %v4316_v47 = vpack.c.bf16 %v1626_v34, %v1619_v33  ;;  %v1633_v2 = vld [vmem:[%s9688_s3 + $0x1578] sm:$0xff] }
 0x177   : > { %v1662_v34 = vld [vmem:[%s9688_s3 + $0x1660] sm:$0xff] }
 0x178   : > { %4275 = vmatpush1.bf16.msra.mxu0 %v4274_v8  ;;  %4531 = vmatpush1.bf16.msra.mxu1 %v4530_v42  ;;  %v1534_v8 = vld [vmem:[%s9688_s3 + $0x1260] sm:$0xff]  ;;  %v1541_v42 = vld [vmem:[%s9688_s3 + $0x1298] sm:$0xff] }
 0x179   : > { %4277 = vmatprep.subr.bf16.mxu0 %v4276_v13  ;;  %4533 = vmatprep.subr.bf16.mxu1 %v4532_v14  ;;  %v1536_v13 = vld [vmem:[%s9688_s3 + $0x1270] sm:$0xff]  ;;  %v1543_v14 = vld [vmem:[%s9688_s3 + $0x12a8] sm:$0xff]  ;;  %v4294_v21 = vpack.c.bf16 %v1541_v42, %v1534_v8  ;;  %v1597_v8 = vld [vmem:[%s9688_s3 + $0x1458] sm:$0xff]  ;;  %v4308_v42 = vpack.c.bf16 %v1598_v61, %v1591_v60 }
 0x17a   : > { %v4550_v23 = vpack.c.bf16 %v1543_v14, %v1536_v13  ;;  %v1599_v13 = vld [vmem:[%s9688_s3 + $0x1468] sm:$0xff]  ;;  %v1605_v14 = vld [vmem:[%s9688_s3 + $0x1498] sm:$0xff] }
 0x17b   : > { %v1639_v60 = vld [vmem:[%s9688_s3 + $0x15a8] sm:$0xff] }
 0x17c   : > { %4279 = vmatpush1.bf16.msra.mxu0 %v4278_v24  ;;  %4535 = vmatpush1.bf16.msra.mxu1 %v4534_v26  ;;  %v1548_v24 = vld [vmem:[%s9688_s3 + $0x12d0] sm:$0xff]  ;;  %v1555_v26 = vld [vmem:[%s9688_s3 + $0x1308] sm:$0xff] }
 0x17d   : > { %4281 = vmatprep.subr.bf16.mxu0 %v4280_v29  ;;  %4537 = vmatprep.subr.bf16.mxu1 %v4536_v30  ;;  %v1550_v29 = vld [vmem:[%s9688_s3 + $0x12e0] sm:$0xff]  ;;  %v1557_v30 = vld [vmem:[%s9688_s3 + $0x1318] sm:$0xff]  ;;  %v4298_v36 = vpack.c.bf16 %v1555_v26, %v1548_v24 }
 0x17e   : > { %v4554_v37 = vpack.c.bf16 %v1557_v30, %v1550_v29  ;;  %v4312_v29 = vpack.c.bf16 %v1612_v15, %v1605_v14  ;;  %v4568_v30 = vpack.c.bf16 %v1614_v18, %v1607_v16  ;;  %v1653_v14 = vld [vmem:[%s9688_s3 + $0x1618] sm:$0xff]  ;;  %v1648_v18 = vld [vmem:[%s9688_s3 + $0x15f0] sm:$0xff] }
 0x180   : > { %4283 = vmatpush1.bf16.msra.mxu0 %v4282_v38  ;;  %4539 = vmatpush1.bf16.msra.mxu1 %v4538_v39  ;;  %v1562_v38 = vld [vmem:[%s9688_s3 + $0x1340] sm:$0xff]  ;;  %v1569_v39 = vld [vmem:[%s9688_s3 + $0x1378] sm:$0xff] }
 0x181   : > { %4285 = vmatprep.subr.bf16.mxu0 %v4284_v45  ;;  %4541 = vmatprep.subr.bf16.mxu1 %v4540_v46  ;;  %v1564_v45 = vld [vmem:[%s9688_s3 + $0x1350] sm:$0xff]  ;;  %v1571_v46 = vld [vmem:[%s9688_s3 + $0x1388] sm:$0xff]  ;;  %v4302_v50 = vpack.c.bf16 %v1569_v39, %v1562_v38 }
 0x182   : > { %v4558_v19 = vpack.c.bf16 %v1571_v46, %v1564_v45  ;;  %v1618_v45 = vld [vmem:[%s9688_s3 + $0x1500] sm:$0xff]  ;;  %v1625_v46 = vld [vmem:[%s9688_s3 + $0x1538] sm:$0xff] }
 0x184   : > { %4287 = vmatpush1.bf16.msra.mxu0 %v4286_v51  ;;  %4543 = vmatpush1.bf16.msra.mxu1 %v4542_v52  ;;  %v1576_v51 = vld [vmem:[%s9688_s3 + $0x13b0] sm:$0xff]  ;;  %v1583_v52 = vld [vmem:[%s9688_s3 + $0x13e8] sm:$0xff] }
 0x185   : > { %4289 = vmatprep.subr.bf16.mxu0 %v4288_v55  ;;  %4545 = vmatprep.subr.bf16.mxu1 %v4544_v58  ;;  %v1578_v55 = vld [vmem:[%s9688_s3 + $0x13c0] sm:$0xff]  ;;  %v1585_v58 = vld [vmem:[%s9688_s3 + $0x13f8] sm:$0xff]  ;;  %v4306_v5 = vpack.c.bf16 %v1583_v52, %v1576_v51 }
 0x186   : > { %v1642_v51 = vld [vmem:[%s9688_s3 + $0x15c0] sm:$0xff] }
 0x188   : > { %4291 = vmatpush1.bf16.msra.mxu0 %v4290_v6  ;;  %4547 = vmatpush1.bf16.msra.mxu1 %v4546_v7  ;;  %v4562_v6 = vpack.c.bf16 %v1585_v58, %v1578_v55  ;;  %v1590_v7 = vld [vmem:[%s9688_s3 + $0x1420] sm:$0xff]  ;;  %v1632_v58 = vld [vmem:[%s9688_s3 + $0x1570] sm:$0xff] }
 0x189   : > { %4293 = vmatprep.subr.bf16.mxu0 %v4292_v11  ;;  %4549 = vmatprep.subr.bf16.mxu1 %v4548_v12  ;;  %v4564_v11 = vpack.c.bf16 %v1600_v63, %v1593_v62  ;;  %v1592_v12 = vld [vmem:[%s9688_s3 + $0x1430] sm:$0xff]  ;;  %v4310_v24 = vpack.c.bf16 %v1597_v8, %v1590_v7  ;;  %v1641_v63 = vld [vmem:[%s9688_s3 + $0x15b8] sm:$0xff] }
 0x18a   : > { %v4566_v26 = vpack.c.bf16 %v1599_v13, %v1592_v12  ;;  %v1649_v7 = vld [vmem:[%s9688_s3 + $0x15f8] sm:$0xff]  ;;  %v1656_v8 = vld [vmem:[%s9688_s3 + $0x1630] sm:$0xff]  ;;  %v1646_v13 = vld [vmem:[%s9688_s3 + $0x15e0] sm:$0xff] }
 0x18b   : > { %v4580_v16 = vpack.c.bf16 %v1656_v8, %v1649_v7  ;;  %v1705_v7 = vld [vmem:[%s9688_s3 + $0x17b8] sm:$0xff]  ;;  %v1712_v8 = vld [vmem:[%s9688_s3 + $0x17f0] sm:$0xff] }
 0x18c   : > { %4295 = vmatpush1.bf16.msra.mxu0 %v4294_v21  ;;  %4551 = vmatpush1.bf16.msra.mxu1 %v4550_v23  ;;  %v7350_v21 = vld [vmem:[%s9687_s2] sm:$0xff] }
 0x18d   : > { %4297 = vmatprep.subr.bf16.mxu0 %v4296_v27  ;;  %4553 = vmatprep.subr.bf16.mxu1 %v4552_v28  ;;  %v604_v23 = vrot.slane %v7350_v21, %v603_v4  ;;  %v1604_v27 = vld [vmem:[%s9688_s3 + $0x1490] sm:$0xff]  ;;  %v1611_v28 = vld [vmem:[%s9688_s3 + $0x14c8] sm:$0xff]  ;;  %v616_v38 = vrot.slane %v7350_v21, %v615_v20 }
 0x18e   : > { %v1655_v20 = vld [vmem:[%s9688_s3 + $0x1628] sm:$0xff] }
 0x18f   : > { %v863_v39 = vadd.f32 %v6971_v44, %v604_v23  ;;  %v1620_v44 = vld [vmem:[%s9688_s3 + $0x1510] sm:$0xff]  ;;  %v936_v52 = vadd.f32 %v7109_v59, %v616_v38  ;;  %v1634_v59 = vld [vmem:[%s9688_s3 + $0x1580] sm:$0xff]  ;;  %v1661_v23 = vld [vmem:[%s9688_s3 + $0x1658] sm:$0xff] }
 0x190   : > { %4299 = vmatpush1.bf16.msra.mxu0 %v4298_v36  ;;  %4555 = vmatpush1.bf16.msra.mxu1 %v4554_v37  ;;  %v1621_v36 = vld [vmem:[%s9688_s3 + $0x1518] sm:$0xff]  ;;  %v1628_v37 = vld [vmem:[%s9688_s3 + $0x1550] sm:$0xff]  ;;  %v4574_v55 = vpack.c.bf16 %v1627_v49, %v1620_v44  ;;  %v4578_v12 = vpack.c.bf16 %v1641_v63, %v1634_v59  ;;  %v1682_v38 = vld [vmem:[%s9688_s3 + $0x1700] sm:$0xff] }
 0x191   : > { %4301 = vmatprep.subr.bf16.mxu0 %v4300_v40  ;;  %4557 = vmatprep.subr.bf16.mxu1 %v4556_v43  ;;  %v4314_v40 = vpack.c.bf16 %v1611_v28, %v1604_v27  ;;  %v4570_v43 = vpack.c.bf16 %v1613_v32, %v1606_v31  ;;  %v4572_v48 = vpack.c.bf16 %v1628_v37, %v1621_v36  ;;  %v1670_v27 = vld [vmem:[%s9688_s3 + $0x16a0] sm:$0xff]  ;;  %v1667_v31 = vld [vmem:[%s9688_s3 + $0x1688] sm:$0xff]  ;;  %v1669_v36 = vld [vmem:[%s9688_s3 + $0x1698] sm:$0xff] }
 0x192   : > { %v4326_v28 = vpack.c.bf16 %v1653_v14, %v1646_v13  ;;  %v1675_v37 = vld [vmem:[%s9688_s3 + $0x16c8] sm:$0xff]  ;;  %v1676_v49 = vld [vmem:[%s9688_s3 + $0x16d0] sm:$0xff]  ;;  %v1690_v59 = vld [vmem:[%s9688_s3 + $0x1740] sm:$0xff] }
 0x193   : > { %v1697_v63 = vld [vmem:[%s9688_s3 + $0x1778] sm:$0xff]  ;;  %v1702_v13 = vld [vmem:[%s9688_s3 + $0x17a0] sm:$0xff] }
 0x194   : > { %4303 = vmatpush1.bf16.msra.mxu0 %v4302_v50  ;;  %4559 = vmatpush1.bf16.msra.mxu1 %v4558_v19  ;;  %v1640_v50 = vld [vmem:[%s9688_s3 + $0x15b0] sm:$0xff]  ;;  %v1635_v19 = vld [vmem:[%s9688_s3 + $0x1588] sm:$0xff]  ;;  %v1709_v14 = vld [vmem:[%s9688_s3 + $0x17d8] sm:$0xff] }
 0x195   : > { %4305 = vmatprep.subr.bf16.mxu0 %v4304_v53  ;;  %4561 = vmatprep.subr.bf16.mxu1 %v4560_v54  ;;  %v7406_v53 = vmax.f32 %v863_v39, 0.0  ;;  %v4318_v54 = vpack.c.bf16 %v1625_v46, %v1618_v45  ;;  %v4320_v61 = vpack.c.bf16 %v1640_v50, %v1633_v2  ;;  %v4576_v62 = vpack.c.bf16 %v1642_v51, %v1635_v19  ;;  %v1677_v39 = vld [vmem:[%s9688_s3 + $0x16d8] sm:$0xff]  ;;  %v1674_v46 = vld [vmem:[%s9688_s3 + $0x16c0] sm:$0xff]  ;;  %v1683_v2 = vld [vmem:[%s9688_s3 + $0x1708] sm:$0xff] }
 0x196   : > { %v4586_v45 = vpack.c.bf16 %v1669_v36, %v1662_v34  ;;  %v1689_v50 = vld [vmem:[%s9688_s3 + $0x1738] sm:$0xff]  ;;  %v1696_v19 = vld [vmem:[%s9688_s3 + $0x1770] sm:$0xff]  ;;  %v1691_v51 = vld [vmem:[%s9688_s3 + $0x1748] sm:$0xff] }
 0x197   : > { %v1718_v34 = vld [vmem:[%s9688_s3 + $0x1820] sm:$0xff]  ;;  %v1725_v36 = vld [vmem:[%s9688_s3 + $0x1858] sm:$0xff] }
 0x198   : > { %4307 = vmatpush1.bf16.msra.mxu0 %v4306_v5  ;;  %4563 = vmatpush1.bf16.msra.mxu1 %v4562_v6  ;;  %v1647_v5 = vld [vmem:[%s9688_s3 + $0x15e8] sm:$0xff]  ;;  %v1654_v6 = vld [vmem:[%s9688_s3 + $0x1620] sm:$0xff] }
 0x199   : > { %4309 = vmatprep.subr.bf16.mxu0 %v4308_v42  ;;  %4565 = vmatprep.subr.bf16.mxu1 %v4564_v11  ;;  %v7432_v42 = vmax.f32 %v936_v52, 0.0  ;;  %v4322_v11 = vpack.c.bf16 %v1639_v60, %v1632_v58  ;;  %v4324_v15 = vpack.c.bf16 %v1654_v6, %v1647_v5  ;;  %v1698_v52 = vld [vmem:[%s9688_s3 + $0x1780] sm:$0xff]  ;;  %v1688_v58 = vld [vmem:[%s9688_s3 + $0x1730] sm:$0xff]  ;;  %v1695_v60 = vld [vmem:[%s9688_s3 + $0x1768] sm:$0xff] }
 0x19a   : > { %v1703_v5 = vld [vmem:[%s9688_s3 + $0x17a8] sm:$0xff]  ;;  %v1710_v6 = vld [vmem:[%s9688_s3 + $0x17e0] sm:$0xff] }
 0x19c   : > { %4311 = vmatpush1.bf16.msra.mxu0 %v4310_v24  ;;  %4567 = vmatpush1.bf16.msra.mxu1 %v4566_v26  ;;  %v1668_v24 = vld [vmem:[%s9688_s3 + $0x1690] sm:$0xff]  ;;  %v1663_v26 = vld [vmem:[%s9688_s3 + $0x1668] sm:$0xff] }
 0x19d   : > { %4313 = vmatprep.subr.bf16.mxu0 %v4312_v29  ;;  %4569 = vmatprep.subr.bf16.mxu1 %v4568_v30  ;;  %v4582_v29 = vpack.c.bf16 %v1655_v20, %v1648_v18  ;;  %v1660_v30 = vld [vmem:[%s9688_s3 + $0x1650] sm:$0xff]  ;;  %v4328_v32 = vpack.c.bf16 %v1668_v24, %v1661_v23  ;;  %v4584_v33 = vpack.c.bf16 %v1670_v27, %v1663_v26  ;;  %v1711_v20 = vld [vmem:[%s9688_s3 + $0x17e8] sm:$0xff]  ;;  %v1717_v23 = vld [vmem:[%s9688_s3 + $0x1818] sm:$0xff] }
 0x19e   : > { %v1704_v18 = vld [vmem:[%s9688_s3 + $0x17b0] sm:$0xff]  ;;  %v1719_v26 = vld [vmem:[%s9688_s3 + $0x1828] sm:$0xff]  ;;  %v1726_v27 = vld [vmem:[%s9688_s3 + $0x1860] sm:$0xff] }
 0x19f   : > { %v1724_v24 = vld [vmem:[%s9688_s3 + $0x1850] sm:$0xff] }
 0x1a0   : > { %4315 = vmatpush1.bf16.msra.mxu0 %v4314_v40  ;;  %4571 = vmatpush1.bf16.msra.mxu1 %v4570_v43  ;;  %v1684_v40 = vld [vmem:[%s9688_s3 + $0x1710] sm:$0xff]  ;;  %v4330_v43 = vpack.c.bf16 %v1667_v31, %v1660_v30  ;;  %v1723_v31 = vld [vmem:[%s9688_s3 + $0x1848] sm:$0xff] }
 0x1a1   : > { %4317 = vmatprep.subr.bf16.mxu0 %v4316_v47  ;;  %4573 = vmatprep.subr.bf16.mxu1 %v4572_v48  ;;  %v1681_v47 = vld [vmem:[%s9688_s3 + $0x16f8] sm:$0xff]  ;;  %v4332_v48 = vpack.c.bf16 %v1682_v38, %v1675_v37  ;;  %v4588_v44 = vpack.c.bf16 %v1684_v40, %v1677_v39  ;;  %v1716_v30 = vld [vmem:[%s9688_s3 + $0x1810] sm:$0xff]  ;;  %v1731_v37 = vld [vmem:[%s9688_s3 + $0x1888] sm:$0xff] }
 0x1a2   : > { %v1738_v38 = vld [vmem:[%s9688_s3 + $0x18c0] sm:$0xff]  ;;  %v1733_v39 = vld [vmem:[%s9688_s3 + $0x1898] sm:$0xff]  ;;  %v1740_v40 = vld [vmem:[%s9688_s3 + $0x18d0] sm:$0xff] }
 0x1a3   : > { %2086 = vmatmul.mubr.f32.vlgmr.msra.gmra.mrb[4].mxu0 %v7406_v53  ;;  %2370 = vmatmul.mubr.f32.vlgmr.msra.gmra.mrb[4].mxu1 %v7406_v53 }
 0x1a4   : > { %4319 = vmatpush1.bf16.msra.mxu0 %v4318_v54  ;;  %4575 = vmatpush1.bf16.msra.mxu1 %v4574_v55  ;;  %v4334_v54 = vpack.c.bf16 %v1681_v47, %v1674_v46  ;;  %v4590_v55 = vpack.c.bf16 %v1683_v2, %v1676_v49  ;;  %v1730_v46 = vld [vmem:[%s9688_s3 + $0x1880] sm:$0xff]  ;;  %v1737_v47 = vld [vmem:[%s9688_s3 + $0x18b8] sm:$0xff]  ;;  %v1732_v49 = vld [vmem:[%s9688_s3 + $0x1890] sm:$0xff] }
 0x1a5   : > { %4321 = vmatprep.subr.bf16.mxu0 %v4320_v61  ;;  %4577 = vmatprep.subr.bf16.mxu1 %v4576_v62  ;;  %v4336_v61 = vpack.c.bf16 %v1696_v19, %v1689_v50  ;;  %v4592_v62 = vpack.c.bf16 %v1698_v52, %v1691_v51  ;;  %v1739_v2 = vld [vmem:[%s9688_s3 + $0x18c8] sm:$0xff]  ;;  %v1745_v50 = vld [vmem:[%s9688_s3 + $0x18f8] sm:$0xff]  ;;  %v1752_v19 = vld [vmem:[%s9688_s3 + $0x1930] sm:$0xff] }
 0x1a6   : > { %2156 = vmatprep.mubr.f32.mxu0 %v7432_v42  ;;  %2440 = vmatprep.mubr.f32.mxu1 %v7432_v42  ;;  %v1747_v51 = vld [vmem:[%s9688_s3 + $0x1908] sm:$0xff]  ;;  %v1754_v52 = vld [vmem:[%s9688_s3 + $0x1940] sm:$0xff] }
 0x1a8   : > { %4323 = vmatpush1.bf16.msra.mxu0 %v4322_v11  ;;  %4579 = vmatpush1.bf16.msra.mxu1 %v4578_v12  ;;  %v4338_v11 = vpack.c.bf16 %v1695_v60, %v1688_v58  ;;  %v4594_v12 = vpack.c.bf16 %v1697_v63, %v1690_v59  ;;  %v1744_v58 = vld [vmem:[%s9688_s3 + $0x18f0] sm:$0xff]  ;;  %v1751_v60 = vld [vmem:[%s9688_s3 + $0x1928] sm:$0xff]  ;;  %v1746_v59 = vld [vmem:[%s9688_s3 + $0x1900] sm:$0xff] }
 0x1a9   : > { %4325 = vmatprep.subr.bf16.mxu0 %v4324_v15  ;;  %4581 = vmatprep.subr.bf16.mxu1 %v4580_v16  ;;  %v4340_v15 = vpack.c.bf16 %v1710_v6, %v1703_v5  ;;  %v4596_v16 = vpack.c.bf16 %v1712_v8, %v1705_v7  ;;  %v1753_v63 = vld [vmem:[%s9688_s3 + $0x1938] sm:$0xff]  ;;  %v1759_v5 = vld [vmem:[%s9688_s3 + $0x1968] sm:$0xff]  ;;  %v1766_v6 = vld [vmem:[%s9688_s3 + $0x19a0] sm:$0xff] }
 0x1aa   : > { %v1761_v7 = vld [vmem:[%s9688_s3 + $0x1978] sm:$0xff]  ;;  %v1768_v8 = vld [vmem:[%s9688_s3 + $0x19b0] sm:$0xff] }
 0x1ac   : > { %4327 = vmatpush1.bf16.msra.mxu0 %v4326_v28  ;;  %4583 = vmatpush1.bf16.msra.mxu1 %v4582_v29  ;;  %v4342_v28 = vpack.c.bf16 %v1709_v14, %v1702_v13  ;;  %v4598_v29 = vpack.c.bf16 %v1711_v20, %v1704_v18  ;;  %v1758_v13 = vld [vmem:[%s9688_s3 + $0x1960] sm:$0xff]  ;;  %v1765_v14 = vld [vmem:[%s9688_s3 + $0x1998] sm:$0xff]  ;;  %v1760_v18 = vld [vmem:[%s9688_s3 + $0x1970] sm:$0xff] }
 0x1ad   : > { %4329 = vmatprep.subr.bf16.mxu0 %v4328_v32  ;;  %4585 = vmatprep.subr.bf16.mxu1 %v4584_v33  ;;  %v4344_v32 = vpack.c.bf16 %v1724_v24, %v1717_v23  ;;  %v4600_v33 = vpack.c.bf16 %v1726_v27, %v1719_v26  ;;  %v1767_v20 = vld [vmem:[%s9688_s3 + $0x19a8] sm:$0xff]  ;;  %v1773_v23 = vld [vmem:[%s9688_s3 + $0x19d8] sm:$0xff]  ;;  %v1780_v24 = vld [vmem:[%s9688_s3 + $0x1a10] sm:$0xff] }
 0x1ae   : > { %v1775_v26 = vld [vmem:[%s9688_s3 + $0x19e8] sm:$0xff]  ;;  %v1782_v27 = vld [vmem:[%s9688_s3 + $0x1a20] sm:$0xff] }
 0x1b0   : > { %4331 = vmatpush1.bf16.msra.mxu0 %v4330_v43  ;;  %4587 = vmatpush1.bf16.msra.mxu1 %v4586_v45  ;;  %v4346_v43 = vpack.c.bf16 %v1723_v31, %v1716_v30  ;;  %v4602_v45 = vpack.c.bf16 %v1725_v36, %v1718_v34  ;;  %v1772_v30 = vld [vmem:[%s9688_s3 + $0x19d0] sm:$0xff]  ;;  %v1779_v31 = vld [vmem:[%s9688_s3 + $0x1a08] sm:$0xff]  ;;  %v1774_v34 = vld [vmem:[%s9688_s3 + $0x19e0] sm:$0xff] }
 0x1b1   : > { %4333 = vmatprep.subr.bf16.mxu0 %v4332_v48  ;;  %4589 = vmatprep.subr.bf16.mxu1 %v4588_v44  ;;  %v4348_v48 = vpack.c.bf16 %v1738_v38, %v1731_v37  ;;  %v4604_v44 = vpack.c.bf16 %v1740_v40, %v1733_v39  ;;  %v1781_v36 = vld [vmem:[%s9688_s3 + $0x1a18] sm:$0xff]  ;;  %v1787_v37 = vld [vmem:[%s9688_s3 + $0x1a48] sm:$0xff]  ;;  %v1794_v38 = vld [vmem:[%s9688_s3 + $0x1a80] sm:$0xff] }
 0x1b2   : > { %v1789_v39 = vld [vmem:[%s9688_s3 + $0x1a58] sm:$0xff]  ;;  %v1796_v40 = vld [vmem:[%s9688_s3 + $0x1a90] sm:$0xff] }
 0x1b4   : > { %4335 = vmatpush1.bf16.msra.mxu0 %v4334_v54  ;;  %4591 = vmatpush1.bf16.msra.mxu1 %v4590_v55  ;;  %v4350_v54 = vpack.c.bf16 %v1737_v47, %v1730_v46  ;;  %v4606_v55 = vpack.c.bf16 %v1739_v2, %v1732_v49  ;;  %v1786_v46 = vld [vmem:[%s9688_s3 + $0x1a40] sm:$0xff]  ;;  %v1793_v47 = vld [vmem:[%s9688_s3 + $0x1a78] sm:$0xff]  ;;  %v1788_v49 = vld [vmem:[%s9688_s3 + $0x1a50] sm:$0xff] }
 0x1b5   : > { %4337 = vmatprep.subr.bf16.mxu0 %v4336_v61  ;;  %4593 = vmatprep.subr.bf16.mxu1 %v4592_v62  ;;  %v4352_v61 = vpack.c.bf16 %v1752_v19, %v1745_v50  ;;  %v4608_v62 = vpack.c.bf16 %v1754_v52, %v1747_v51  ;;  %v1795_v2 = vld [vmem:[%s9688_s3 + $0x1a88] sm:$0xff]  ;;  %v1801_v50 = vld [vmem:[%s9688_s3 + $0x1ab8] sm:$0xff]  ;;  %v1808_v19 = vld [vmem:[%s9688_s3 + $0x1af0] sm:$0xff] }
 0x1b6   : > { %v1803_v51 = vld [vmem:[%s9688_s3 + $0x1ac8] sm:$0xff]  ;;  %v1810_v52 = vld [vmem:[%s9688_s3 + $0x1b00] sm:$0xff] }
 0x1b8   : > { %4339 = vmatpush1.bf16.msra.mxu0 %v4338_v11  ;;  %4595 = vmatpush1.bf16.msra.mxu1 %v4594_v12  ;;  %v4354_v11 = vpack.c.bf16 %v1751_v60, %v1744_v58  ;;  %v4610_v12 = vpack.c.bf16 %v1753_v63, %v1746_v59  ;;  %v1800_v58 = vld [vmem:[%s9688_s3 + $0x1ab0] sm:$0xff]  ;;  %v1807_v60 = vld [vmem:[%s9688_s3 + $0x1ae8] sm:$0xff]  ;;  %v1802_v59 = vld [vmem:[%s9688_s3 + $0x1ac0] sm:$0xff] }
 0x1b9   : > { %4341 = vmatprep.subr.bf16.mxu0 %v4340_v15  ;;  %4597 = vmatprep.subr.bf16.mxu1 %v4596_v16  ;;  %v4356_v15 = vpack.c.bf16 %v1766_v6, %v1759_v5  ;;  %v4612_v16 = vpack.c.bf16 %v1768_v8, %v1761_v7  ;;  %v1809_v63 = vld [vmem:[%s9688_s3 + $0x1af8] sm:$0xff]  ;;  %v1815_v5 = vld [vmem:[%s9688_s3 + $0x1b28] sm:$0xff]  ;;  %v1822_v6 = vld [vmem:[%s9688_s3 + $0x1b60] sm:$0xff] }
 0x1ba   : > { %v1817_v7 = vld [vmem:[%s9688_s3 + $0x1b38] sm:$0xff]  ;;  %v1824_v8 = vld [vmem:[%s9688_s3 + $0x1b70] sm:$0xff] }
 0x1bc   : > { %4343 = vmatpush1.bf16.msra.mxu0 %v4342_v28  ;;  %4599 = vmatpush1.bf16.msra.mxu1 %v4598_v29  ;;  %v4358_v28 = vpack.c.bf16 %v1765_v14, %v1758_v13  ;;  %v4614_v29 = vpack.c.bf16 %v1767_v20, %v1760_v18  ;;  %v4626_v13 = vpack.c.bf16 %v1809_v63, %v1802_v59  ;;  %v1814_v14 = vld [vmem:[%s9688_s3 + $0x1b20] sm:$0xff]  ;;  %v1816_v20 = vld [vmem:[%s9688_s3 + $0x1b30] sm:$0xff] }
 0x1bd   : > { %4345 = vmatprep.subr.bf16.mxu0 %v4344_v32  ;;  %4601 = vmatprep.subr.bf16.mxu1 %v4600_v33  ;;  %v4360_v32 = vpack.c.bf16 %v1780_v24, %v1773_v23  ;;  %v4616_v33 = vpack.c.bf16 %v1782_v27, %v1775_v26  ;;  %v4628_v18 = vpack.c.bf16 %v1824_v8, %v1817_v7  ;;  %v1823_v23 = vld [vmem:[%s9688_s3 + $0x1b68] sm:$0xff]  ;;  %v1829_v24 = vld [vmem:[%s9688_s3 + $0x1b98] sm:$0xff]  ;;  %v1836_v26 = vld [vmem:[%s9688_s3 + $0x1bd0] sm:$0xff] }
 0x1be   : > { %v1831_v27 = vld [vmem:[%s9688_s3 + $0x1ba8] sm:$0xff]  ;;  %v1190_v59 = vld [vmem:[%s9688_s3 + $0x7a0] sm:$0xff] }
 0x1bf   : > { %v979_v7 = vld [vmem:[%s9688_s3 + $0x108] sm:$0xff]  ;;  %v986_v8 = vld [vmem:[%s9688_s3 + $0x140] sm:$0xff] }
 0x1c0   : > { %4347 = vmatpush1.bf16.msra.mxu0 %v4346_v43  ;;  %4603 = vmatpush1.bf16.msra.mxu1 %v4602_v45  ;;  %v4362_v43 = vpack.c.bf16 %v1779_v31, %v1772_v30  ;;  %v4618_v45 = vpack.c.bf16 %v1781_v36, %v1774_v34  ;;  %v4630_v31 = vpack.c.bf16 %v1823_v23, %v1816_v20  ;;  %v985_v20 = vld [vmem:[%s9688_s3 + $0x138] sm:$0xff]  ;;  %v1204_v23 = vld [vmem:[%s9688_s3 + $0x810] sm:$0xff] }
 0x1c1   : > { %4349 = vmatprep.subr.bf16.mxu0 %v4348_v48  ;;  %4605 = vmatprep.subr.bf16.mxu1 %v4604_v44  ;;  %v4364_v48 = vpack.c.bf16 %v1794_v38, %v1787_v37  ;;  %v4620_v44 = vpack.c.bf16 %v1796_v40, %v1789_v39  ;;  %v4376_v34 = vpack.c.bf16 %v1836_v26, %v1829_v24  ;;  %v1837_v37 = vld [vmem:[%s9688_s3 + $0x1bd8] sm:$0xff]  ;;  %v951_v38 = vld [vmem:[%s9688_s3 + $0x28] sm:$0xff]  ;;  %v958_v39 = vld [vmem:[%s9688_s3 + $0x60] sm:$0xff] }
 0x1c2   : > { %v1288_v40 = vld [vmem:[%s9688_s3 + $0xab0] sm:$0xff]  ;;  %v1211_v26 = vld [vmem:[%s9688_s3 + $0x848] sm:$0xff] }
 0x1c4   : > { %4351 = vmatpush1.bf16.msra.mxu0 %v4350_v54  ;;  %4607 = vmatpush1.bf16.msra.mxu1 %v4606_v55  ;;  %v4366_v54 = vpack.c.bf16 %v1793_v47, %v1786_v46  ;;  %v4622_v55 = vpack.c.bf16 %v1795_v2, %v1788_v49  ;;  %v950_v49 = vld [vmem:[%s9688_s3 + $0x20] sm:$0xff]  ;;  %v957_v2 = vld [vmem:[%s9688_s3 + $0x58] sm:$0xff] }
 0x1c5   : > { %4353 = vmatprep.subr.bf16.mxu0 %v4352_v61  ;;  %4609 = vmatprep.subr.bf16.mxu1 %v4608_v62  ;;  %v4368_v61 = vpack.c.bf16 %v1808_v19, %v1801_v50  ;;  %v4624_v62 = vpack.c.bf16 %v1810_v52, %v1803_v51  ;;  %v1183_v50 = vld [vmem:[%s9688_s3 + $0x768] sm:$0xff]  ;;  %v965_v19 = vld [vmem:[%s9688_s3 + $0x98] sm:$0xff]  ;;  %v972_v52 = vld [vmem:[%s9688_s3 + $0xd0] sm:$0xff] }
 0x1c6   : > { %v4640_v63 = vpack.c.bf16 %v972_v52, %v965_v19  ;;  %v1021_v19 = vld [vmem:[%s9688_s3 + $0x258] sm:$0xff]  ;;  %v1028_v52 = vld [vmem:[%s9688_s3 + $0x290] sm:$0xff] }
 0x1c8   : > { %4355 = vmatpush1.bf16.msra.mxu0 %v4354_v11  ;;  %4611 = vmatpush1.bf16.msra.mxu1 %v4610_v12  ;;  %v611_v11 = vsub.s32 6, %v6543_v0  ;;  %v4370_v12 = vpack.c.bf16 %v1807_v60, %v1800_v58  ;;  %v4638_v58 = vpack.c.bf16 %v957_v2, %v950_v49  ;;  %v1013_v49 = vld [vmem:[%s9688_s3 + $0x218] sm:$0xff]  ;;  %v1232_v2 = vld [vmem:[%s9688_s3 + $0x8f0] sm:$0xff]  ;;  %v3533_v0 = vld [vmem:[%s9692_s7 + $0x68] sm:$0xff] }
 0x1c9   : > { %4357 = vmatprep.subr.bf16.mxu0 %v4356_v15  ;;  %4613 = vmatprep.subr.bf16.mxu1 %v4612_v16  ;;  %v1821_v15 = vld [vmem:[%s9688_s3 + $0x1b58] sm:$0xff]  ;;  %v4372_v16 = vpack.c.bf16 %v1822_v6, %v1815_v5 }
 0x1ca   : > { %v4374_v30 = vpack.c.bf16 %v1821_v15, %v1814_v14  ;;  %v1197_v6 = vld [vmem:[%s9688_s3 + $0x7d8] sm:$0xff] }
 0x1cb   : > { %v4930_v15 = vpack.c.bf16 %v1197_v6, %v1190_v59  ;;  %v1027_v59 = vld [vmem:[%s9688_s3 + $0x288] sm:$0xff]  ;;  %v1253_v6 = vld [vmem:[%s9688_s3 + $0x998] sm:$0xff] }
 0x1cc   : > { %4359 = vmatpush1.bf16.msra.mxu0 %v4358_v28  ;;  %4615 = vmatpush1.bf16.msra.mxu1 %v4614_v29  ;;  %v1838_v28 = vld [vmem:[%s9688_s3 + $0x1be0] sm:$0xff]  ;;  %v612_v29 = vrot.slane %v7350_v21, %v611_v11 }
 0x1cd   : > { %4361 = vmatprep.subr.bf16.mxu0 %v4360_v32  ;;  %4617 = vmatprep.subr.bf16.mxu1 %v4616_v33  ;;  %v1828_v32 = vld [vmem:[%s9688_s3 + $0x1b90] sm:$0xff]  ;;  %v1835_v33 = vld [vmem:[%s9688_s3 + $0x1bc8] sm:$0xff]  ;;  %v4632_v36 = vpack.c.bf16 %v1838_v28, %v1831_v27  ;;  %v1830_v21 = vld [vmem:[%s9688_s3 + $0x1ba0] sm:$0xff] }
 0x1ce   : > { %v4378_v46 = vpack.c.bf16 %v1835_v33, %v1828_v32  ;;  %v4634_v47 = vpack.c.bf16 %v1837_v37, %v1830_v21  ;;  %v993_v27 = vld [vmem:[%s9688_s3 + $0x178] sm:$0xff]  ;;  %v1000_v28 = vld [vmem:[%s9688_s3 + $0x1b0] sm:$0xff]  ;;  %v4934_v32 = vpack.c.bf16 %v1211_v26, %v1204_v23  ;;  %v1218_v21 = vld [vmem:[%s9688_s3 + $0x880] sm:$0xff] }
 0x1cf   : > { %v4648_v33 = vpack.c.bf16 %v1000_v28, %v993_v27  ;;  %v1260_v23 = vld [vmem:[%s9688_s3 + $0x9d0] sm:$0xff]  ;;  %v1267_v26 = vld [vmem:[%s9688_s3 + $0xa08] sm:$0xff]  ;;  %v1049_v27 = vld [vmem:[%s9688_s3 + $0x338] sm:$0xff] }
 0x1d0   : > { %4363 = vmatpush1.bf16.msra.mxu0 %v4362_v43  ;;  %4619 = vmatpush1.bf16.msra.mxu1 %v4618_v45  ;;  %v1295_v43 = vld [vmem:[%s9688_s3 + $0xae8] sm:$0xff]  ;;  %v934_v45 = vadd.f32 %v7101_v41, %v612_v29  ;;  %v1176_v41 = vld [vmem:[%s9688_s3 + $0x730] sm:$0xff]  ;;  %v1330_v29 = vld [vmem:[%s9688_s3 + $0xc00] sm:$0xff] }
 0x1d1   : > { %4365 = vmatprep.subr.bf16.mxu0 %v4364_v48  ;;  %4621 = vmatprep.subr.bf16.mxu1 %v4620_v44  ;;  %v4636_v48 = vpack.c.bf16 %v958_v39, %v951_v38  ;;  %v4924_v44 = vpack.c.bf16 %v1295_v43, %v1288_v40  ;;  %v4926_v60 = vpack.c.bf16 %v1183_v50, %v1176_v41  ;;  %v1225_v38 = vld [vmem:[%s9688_s3 + $0x8b8] sm:$0xff]  ;;  %v1007_v39 = vld [vmem:[%s9688_s3 + $0x1e8] sm:$0xff]  ;;  %v1014_v40 = vld [vmem:[%s9688_s3 + $0x220] sm:$0xff] }
 0x1d2   : > { %v7794_v51 = vmax.f32 %v934_v45, 0.0  ;;  %v1344_v43 = vld [vmem:[%s9688_s3 + $0xc70] sm:$0xff]  ;;  %v1351_v45 = vld [vmem:[%s9688_s3 + $0xca8] sm:$0xff] }
 0x1d3   : > { %v4940_v41 = vpack.c.bf16 %v1351_v45, %v1344_v43  ;;  %v1239_v50 = vld [vmem:[%s9688_s3 + $0x928] sm:$0xff]  ;;  %v1056_v28 = vld [vmem:[%s9688_s3 + $0x370] sm:$0xff] }
 0x1d4   : > { %4367 = vmatpush1.bf16.msra.mxu0 %v4366_v54  ;;  %4623 = vmatpush1.bf16.msra.mxu1 %v4622_v55  ;;  %v1302_v54 = vld [vmem:[%s9688_s3 + $0xb20] sm:$0xff]  ;;  %v1309_v55 = vld [vmem:[%s9688_s3 + $0xb58] sm:$0xff]  ;;  %v1512_v43 = vld [vmem:[%s9688_s3 + $0x11b0] sm:$0xff] }
 0x1d5   : > { %4369 = vmatprep.subr.bf16.mxu0 %v4368_v61  ;;  %4625 = vmatprep.subr.bf16.mxu1 %v4624_v62  ;;  %v964_v61 = vld [vmem:[%s9688_s3 + $0x90] sm:$0xff]  ;;  %v971_v62 = vld [vmem:[%s9688_s3 + $0xc8] sm:$0xff]  ;;  %v4928_v5 = vpack.c.bf16 %v1309_v55, %v1302_v54  ;;  %v1358_v54 = vld [vmem:[%s9688_s3 + $0xce0] sm:$0xff] }
 0x1d6   : > { %v4642_v14 = vpack.c.bf16 %v971_v62, %v964_v61  ;;  %v1365_v55 = vld [vmem:[%s9688_s3 + $0xd18] sm:$0xff]  ;;  %v4656_v61 = vpack.c.bf16 %v1028_v52, %v1021_v19  ;;  %v1020_v62 = vld [vmem:[%s9688_s3 + $0x250] sm:$0xff]  ;;  %v1519_v45 = vld [vmem:[%s9688_s3 + $0x11e8] sm:$0xff] }
 0x1d7   : > { %v1077_v19 = vld [vmem:[%s9688_s3 + $0x418] sm:$0xff]  ;;  %v1084_v52 = vld [vmem:[%s9688_s3 + $0x450] sm:$0xff] }
 0x1d8   : > { %4371 = vmatpush1.bf16.msra.mxu0 %v4370_v12  ;;  %4627 = vmatpush1.bf16.msra.mxu1 %v4626_v13  ;;  %v1316_v12 = vld [vmem:[%s9688_s3 + $0xb90] sm:$0xff]  ;;  %v1323_v13 = vld [vmem:[%s9688_s3 + $0xbc8] sm:$0xff] }
 0x1d9   : > { %4373 = vmatprep.subr.bf16.mxu0 %v4372_v16  ;;  %4629 = vmatprep.subr.bf16.mxu1 %v4628_v18  ;;  %v4644_v16 = vpack.c.bf16 %v986_v8, %v979_v7  ;;  %v978_v18 = vld [vmem:[%s9688_s3 + $0x100] sm:$0xff]  ;;  %v4932_v24 = vpack.c.bf16 %v1323_v13, %v1316_v12  ;;  %v1035_v7 = vld [vmem:[%s9688_s3 + $0x2c8] sm:$0xff]  ;;  %v1372_v12 = vld [vmem:[%s9688_s3 + $0xd50] sm:$0xff] }
 0x1da   : > { %v1042_v8 = vld [vmem:[%s9688_s3 + $0x300] sm:$0xff]  ;;  %v1379_v13 = vld [vmem:[%s9688_s3 + $0xd88] sm:$0xff] }
 0x1dc   : > { %4375 = vmatpush1.bf16.msra.mxu0 %v4374_v30  ;;  %4631 = vmatpush1.bf16.msra.mxu1 %v4630_v31  ;;  %v1337_v30 = vld [vmem:[%s9688_s3 + $0xc38] sm:$0xff]  ;;  %v4646_v31 = vpack.c.bf16 %v985_v20, %v978_v18  ;;  %v1034_v18 = vld [vmem:[%s9688_s3 + $0x2c0] sm:$0xff] }
 0x1dd   : > { %4377 = vmatprep.subr.bf16.mxu0 %v4376_v34  ;;  %4633 = vmatprep.subr.bf16.mxu1 %v4632_v36  ;;  %v992_v34 = vld [vmem:[%s9688_s3 + $0x170] sm:$0xff]  ;;  %v999_v36 = vld [vmem:[%s9688_s3 + $0x1a8] sm:$0xff]  ;;  %v4936_v37 = vpack.c.bf16 %v1337_v30, %v1330_v29  ;;  %v1041_v20 = vld [vmem:[%s9688_s3 + $0x2f8] sm:$0xff] }
 0x1de   : > { %v1386_v29 = vld [vmem:[%s9688_s3 + $0xdc0] sm:$0xff]  ;;  %v1393_v30 = vld [vmem:[%s9688_s3 + $0xdf8] sm:$0xff] }
 0x1e0   : > { %4379 = vmatpush1.bf16.msra.mxu0 %v4378_v46  ;;  %4635 = vmatpush1.bf16.msra.mxu1 %v4634_v47  ;;  %v4650_v46 = vpack.c.bf16 %v999_v36, %v992_v34  ;;  %v4938_v47 = vpack.c.bf16 %v1225_v38, %v1218_v21  ;;  %v1048_v34 = vld [vmem:[%s9688_s3 + $0x330] sm:$0xff]  ;;  %v1055_v36 = vld [vmem:[%s9688_s3 + $0x368] sm:$0xff]  ;;  %v1274_v21 = vld [vmem:[%s9688_s3 + $0xa40] sm:$0xff] }
 0x1e1   : > { %4637 = vmatprep.subr.bf16.mxu0 %v4636_v48  ;;  %4925 = vmatprep.subr.bf16.mxu1 %v4924_v44  ;;  %v4652_v48 = vpack.c.bf16 %v1014_v40, %v1007_v39  ;;  %v1006_v44 = vld [vmem:[%s9688_s3 + $0x1e0] sm:$0xff]  ;;  %v1281_v38 = vld [vmem:[%s9688_s3 + $0xa78] sm:$0xff]  ;;  %v1063_v39 = vld [vmem:[%s9688_s3 + $0x3a8] sm:$0xff] }
 0x1e2   : > { %v1070_v40 = vld [vmem:[%s9688_s3 + $0x3e0] sm:$0xff] }
 0x1e3   : > { %2157 = vmatmul.mubr.f32.vlgmr.msra.gmra.mrb[4].mxu0 %v7794_v51  ;;  %2441 = vmatmul.mubr.f32.vlgmr.msra.gmra.mrb[4].mxu1 %v7794_v51 }
 0x1e4   : > { %4639 = vmatpush1.bf16.msra.mxu0 %v4638_v58  ;;  %2511 = vmatprep.mubr.f32.mxu0 %v6584_v17  ;;  %v4654_v58 = vpack.c.bf16 %v1013_v49, %v1006_v44  ;;  %v1062_v44 = vld [vmem:[%s9688_s3 + $0x3a0] sm:$0xff]  ;;  %v1069_v49 = vld [vmem:[%s9688_s3 + $0x3d8] sm:$0xff] }
 0x1e5   : > { %4927 = vmatpush3.bf16.msra.mxu1 %v4926_v60  ;;  %2865 = vmatprep.mubr.f32.mxu1 %v6733_v35  ;;  %v4942_v60 = vpack.c.bf16 %v1239_v50, %v1232_v2  ;;  %v4956_v2 = vpack.c.bf16 %v1519_v45, %v1512_v43  ;;  %v1407_v50 = vld [vmem:[%s9688_s3 + $0xe68] sm:$0xff]  ;;  %v1568_v43 = vld [vmem:[%s9688_s3 + $0x1370] sm:$0xff] }
 0x1e6   : > { %4641 = vmatprep.subr.bf16.mxu0 %v4640_v63  ;;  %4929 = vmatprep.subr.bf16.mxu1 %v4928_v5  ;;  %v1246_v63 = vld [vmem:[%s9688_s3 + $0x960] sm:$0xff]  ;;  %v4944_v5 = vpack.c.bf16 %v1365_v55, %v1358_v54  ;;  %v1533_v55 = vld [vmem:[%s9688_s3 + $0x1258] sm:$0xff]  ;;  %v1575_v45 = vld [vmem:[%s9688_s3 + $0x13a8] sm:$0xff] }
 0x1e7   : > { %v1526_v54 = vld [vmem:[%s9688_s3 + $0x1220] sm:$0xff] }
 0x1e8   : > { %4643 = vmatpush1.bf16.msra.mxu0 %v4642_v14  ;;  %v4658_v14 = vpack.c.bf16 %v1027_v59, %v1020_v62  ;;  %v1083_v62 = vld [vmem:[%s9688_s3 + $0x448] sm:$0xff]  ;;  %v1414_v59 = vld [vmem:[%s9688_s3 + $0xea0] sm:$0xff] }
 0x1e9   : > { %4931 = vmatpush3.bf16.msra.mxu1 %v4930_v15  ;;  %4645 = vmatprep.subr.bf16.mxu0 %v4644_v16  ;;  %v4946_v15 = vpack.c.bf16 %v1253_v6, %v1246_v63  ;;  %v4660_v16 = vpack.c.bf16 %v1042_v8, %v1035_v7  ;;  %v4672_v63 = vpack.c.bf16 %v1084_v52, %v1077_v19  ;;  %v1421_v6 = vld [vmem:[%s9688_s3 + $0xed8] sm:$0xff]  ;;  %v1091_v7 = vld [vmem:[%s9688_s3 + $0x488] sm:$0xff]  ;;  %v1098_v8 = vld [vmem:[%s9688_s3 + $0x4c0] sm:$0xff] }
 0x1ea   : > { %4933 = vmatprep.subr.bf16.mxu1 %v4932_v24  ;;  %v4948_v24 = vpack.c.bf16 %v1379_v13, %v1372_v12  ;;  %v1540_v12 = vld [vmem:[%s9688_s3 + $0x1290] sm:$0xff]  ;;  %v1547_v13 = vld [vmem:[%s9688_s3 + $0x12c8] sm:$0xff]  ;;  %v1133_v19 = vld [vmem:[%s9688_s3 + $0x5d8] sm:$0xff] }
 0x1eb   : > { %v1140_v52 = vld [vmem:[%s9688_s3 + $0x610] sm:$0xff] }
 0x1ec   : > { %4647 = vmatpush1.bf16.msra.mxu0 %v4646_v31  ;;  %v4662_v31 = vpack.c.bf16 %v1041_v20, %v1034_v18  ;;  %v1090_v18 = vld [vmem:[%s9688_s3 + $0x480] sm:$0xff]  ;;  %v1097_v20 = vld [vmem:[%s9688_s3 + $0x4b8] sm:$0xff] }
 0x1ed   : > { %4935 = vmatpush3.bf16.msra.mxu1 %v4934_v32  ;;  %4649 = vmatprep.subr.bf16.mxu0 %v4648_v33  ;;  %v4950_v32 = vpack.c.bf16 %v1267_v26, %v1260_v23  ;;  %v4664_v33 = vpack.c.bf16 %v1056_v28, %v1049_v27  ;;  %v1428_v23 = vld [vmem:[%s9688_s3 + $0xf10] sm:$0xff]  ;;  %v1435_v26 = vld [vmem:[%s9688_s3 + $0xf48] sm:$0xff]  ;;  %v1105_v27 = vld [vmem:[%s9688_s3 + $0x4f8] sm:$0xff] }
 0x1ee   : > { %4937 = vmatprep.subr.bf16.mxu1 %v4936_v37  ;;  %v4952_v37 = vpack.c.bf16 %v1393_v30, %v1386_v29  ;;  %v1112_v28 = vld [vmem:[%s9688_s3 + $0x530] sm:$0xff]  ;;  %v1554_v29 = vld [vmem:[%s9688_s3 + $0x1300] sm:$0xff]  ;;  %v1561_v30 = vld [vmem:[%s9688_s3 + $0x1338] sm:$0xff] }
 0x1f0   : > { %4651 = vmatpush1.bf16.msra.mxu0 %v4650_v46  ;;  %v4666_v46 = vpack.c.bf16 %v1055_v36, %v1048_v34  ;;  %v1104_v34 = vld [vmem:[%s9688_s3 + $0x4f0] sm:$0xff]  ;;  %v1111_v36 = vld [vmem:[%s9688_s3 + $0x528] sm:$0xff] }
 0x1f1   : > { %4939 = vmatpush3.bf16.msra.mxu1 %v4938_v47  ;;  %4653 = vmatprep.subr.bf16.mxu0 %v4652_v48  ;;  %v4954_v47 = vpack.c.bf16 %v1281_v38, %v1274_v21  ;;  %v4668_v48 = vpack.c.bf16 %v1070_v40, %v1063_v39  ;;  %v1442_v21 = vld [vmem:[%s9688_s3 + $0xf80] sm:$0xff]  ;;  %v1449_v38 = vld [vmem:[%s9688_s3 + $0xfb8] sm:$0xff]  ;;  %v1119_v39 = vld [vmem:[%s9688_s3 + $0x568] sm:$0xff] }
 0x1f2   : > { %4941 = vmatprep.subr.bf16.mxu1 %v4940_v41  ;;  %v1400_v41 = vld [vmem:[%s9688_s3 + $0xe30] sm:$0xff]  ;;  %v1126_v40 = vld [vmem:[%s9688_s3 + $0x5a0] sm:$0xff] }
 0x1f4   : > { %4655 = vmatpush1.bf16.msra.mxu0 %v4654_v58  ;;  %v4670_v58 = vpack.c.bf16 %v1069_v49, %v1062_v44  ;;  %v1118_v44 = vld [vmem:[%s9688_s3 + $0x560] sm:$0xff]  ;;  %v1125_v49 = vld [vmem:[%s9688_s3 + $0x598] sm:$0xff] }
 0x1f5   : > { %4943 = vmatpush3.bf16.msra.mxu1 %v4942_v60  ;;  %4657 = vmatprep.subr.bf16.mxu0 %v4656_v61  ;;  %v4958_v60 = vpack.c.bf16 %v1407_v50, %v1400_v41  ;;  %v1076_v61 = vld [vmem:[%s9688_s3 + $0x410] sm:$0xff]  ;;  %v4972_v41 = vpack.c.bf16 %v1575_v45, %v1568_v43  ;;  %v1463_v50 = vld [vmem:[%s9688_s3 + $0x1028] sm:$0xff] }
 0x1f6   : > { %4945 = vmatprep.subr.bf16.mxu1 %v4944_v5  ;;  %v4960_v5 = vpack.c.bf16 %v1533_v55, %v1526_v54  ;;  %v1582_v54 = vld [vmem:[%s9688_s3 + $0x13e0] sm:$0xff]  ;;  %v1589_v55 = vld [vmem:[%s9688_s3 + $0x1418] sm:$0xff]  ;;  %v1736_v43 = vld [vmem:[%s9688_s3 + $0x18b0] sm:$0xff] }
 0x1f7   : > { %v1743_v45 = vld [vmem:[%s9688_s3 + $0x18e8] sm:$0xff] }
 0x1f8   : > { %4659 = vmatpush1.bf16.msra.mxu0 %v4658_v14  ;;  %v4674_v14 = vpack.c.bf16 %v1083_v62, %v1076_v61  ;;  %v4688_v61 = vpack.c.bf16 %v1140_v52, %v1133_v19  ;;  %v1132_v62 = vld [vmem:[%s9688_s3 + $0x5d0] sm:$0xff]  ;;  %v1189_v19 = vld [vmem:[%s9688_s3 + $0x798] sm:$0xff] }
 0x1f9   : > { %4947 = vmatpush3.bf16.msra.mxu1 %v4946_v15  ;;  %4661 = vmatprep.subr.bf16.mxu0 %v4660_v16  ;;  %v4962_v15 = vpack.c.bf16 %v1421_v6, %v1414_v59  ;;  %v4676_v16 = vpack.c.bf16 %v1098_v8, %v1091_v7  ;;  %v1139_v59 = vld [vmem:[%s9688_s3 + $0x608] sm:$0xff]  ;;  %v1477_v6 = vld [vmem:[%s9688_s3 + $0x1098] sm:$0xff]  ;;  %v1154_v8 = vld [vmem:[%s9688_s3 + $0x680] sm:$0xff] }
 0x1fa   : > { %4949 = vmatprep.subr.bf16.mxu1 %v4948_v24  ;;  %v4964_v24 = vpack.c.bf16 %v1547_v13, %v1540_v12  ;;  %v1147_v7 = vld [vmem:[%s9688_s3 + $0x648] sm:$0xff]  ;;  %v1596_v12 = vld [vmem:[%s9688_s3 + $0x1450] sm:$0xff] }
 0x1fb   : > { %v1603_v13 = vld [vmem:[%s9688_s3 + $0x1488] sm:$0xff]  ;;  %v1196_v52 = vld [vmem:[%s9688_s3 + $0x7d0] sm:$0xff] }
 0x1fc   : > { %4663 = vmatpush1.bf16.msra.mxu0 %v4662_v31  ;;  %v4678_v31 = vpack.c.bf16 %v1097_v20, %v1090_v18  ;;  %v1146_v18 = vld [vmem:[%s9688_s3 + $0x640] sm:$0xff]  ;;  %v1153_v20 = vld [vmem:[%s9688_s3 + $0x678] sm:$0xff] }
 0x1fd   : > { %4951 = vmatpush3.bf16.msra.mxu1 %v4950_v32  ;;  %4665 = vmatprep.subr.bf16.mxu0 %v4664_v33  ;;  %v4966_v32 = vpack.c.bf16 %v1435_v26, %v1428_v23  ;;  %v4680_v33 = vpack.c.bf16 %v1112_v28, %v1105_v27  ;;  %v1484_v23 = vld [vmem:[%s9688_s3 + $0x10d0] sm:$0xff]  ;;  %v1491_v26 = vld [vmem:[%s9688_s3 + $0x1108] sm:$0xff]  ;;  %v1161_v27 = vld [vmem:[%s9688_s3 + $0x6b8] sm:$0xff] }
 0x1fe   : > { %4953 = vmatprep.subr.bf16.mxu1 %v4952_v37  ;;  %v4968_v37 = vpack.c.bf16 %v1561_v30, %v1554_v29  ;;  %v1168_v28 = vld [vmem:[%s9688_s3 + $0x6f0] sm:$0xff]  ;;  %v1610_v29 = vld [vmem:[%s9688_s3 + $0x14c0] sm:$0xff]  ;;  %v1617_v30 = vld [vmem:[%s9688_s3 + $0x14f8] sm:$0xff] }
 0x200   : > { %4667 = vmatpush1.bf16.msra.mxu0 %v4666_v46  ;;  %v4682_v46 = vpack.c.bf16 %v1111_v36, %v1104_v34  ;;  %v1160_v34 = vld [vmem:[%s9688_s3 + $0x6b0] sm:$0xff]  ;;  %v1167_v36 = vld [vmem:[%s9688_s3 + $0x6e8] sm:$0xff] }
 0x201   : > { %4955 = vmatpush3.bf16.msra.mxu1 %v4954_v47  ;;  %4669 = vmatprep.subr.bf16.mxu0 %v4668_v48  ;;  %v4970_v47 = vpack.c.bf16 %v1449_v38, %v1442_v21  ;;  %v4684_v48 = vpack.c.bf16 %v1126_v40, %v1119_v39  ;;  %v1498_v21 = vld [vmem:[%s9688_s3 + $0x1140] sm:$0xff]  ;;  %v1505_v38 = vld [vmem:[%s9688_s3 + $0x1178] sm:$0xff]  ;;  %v1175_v39 = vld [vmem:[%s9688_s3 + $0x728] sm:$0xff] }
 0x202   : > { %4957 = vmatprep.subr.bf16.mxu1 %v4956_v2  ;;  %v1456_v2 = vld [vmem:[%s9688_s3 + $0xff0] sm:$0xff]  ;;  %v1182_v40 = vld [vmem:[%s9688_s3 + $0x760] sm:$0xff] }
 0x204   : > { %2866 = vmatmul.mubr.f32.vlgmr.msra.gmra.mrb[6].mxu1 %v6997_v57  ;;  %4671 = vmatpush1.bf16.msra.mxu0 %v4670_v58  ;;  %v4686_v58 = vpack.c.bf16 %v1125_v49, %v1118_v44  ;;  %v1174_v44 = vld [vmem:[%s9688_s3 + $0x720] sm:$0xff]  ;;  %v1181_v49 = vld [vmem:[%s9688_s3 + $0x758] sm:$0xff] }
 0x205   : > { %4959 = vmatpush3.bf16.msra.mxu1 %v4958_v60  ;;  %2935 = vmatprep.mubr.f32.mxu1 %v7023_v10  ;;  %v4974_v60 = vpack.c.bf16 %v1463_v50, %v1456_v2  ;;  %v4988_v2 = vpack.c.bf16 %v1743_v45, %v1736_v43  ;;  %v1631_v50 = vld [vmem:[%s9688_s3 + $0x1568] sm:$0xff] }
 0x206   : > { %4673 = vmatprep.subr.bf16.mxu0 %v4672_v63  ;;  %4961 = vmatprep.subr.bf16.mxu1 %v4960_v5  ;;  %v1470_v63 = vld [vmem:[%s9688_s3 + $0x1060] sm:$0xff]  ;;  %v4976_v5 = vpack.c.bf16 %v1589_v55, %v1582_v54  ;;  %v4702_v54 = vpack.c.bf16 %v1181_v49, %v1174_v44  ;;  %v1799_v43 = vld [vmem:[%s9688_s3 + $0x1aa8] sm:$0xff]  ;;  %v1237_v44 = vld [vmem:[%s9688_s3 + $0x918] sm:$0xff] }
 0x207   : > { %v1750_v55 = vld [vmem:[%s9688_s3 + $0x1920] sm:$0xff]  ;;  %v1680_v49 = vld [vmem:[%s9688_s3 + $0x16f0] sm:$0xff] }
 0x208   : > { %4675 = vmatpush1.bf16.msra.mxu0 %v4674_v14  ;;  %v4690_v14 = vpack.c.bf16 %v1139_v59, %v1132_v62  ;;  %v1195_v62 = vld [vmem:[%s9688_s3 + $0x7c8] sm:$0xff]  ;;  %v1638_v59 = vld [vmem:[%s9688_s3 + $0x15a0] sm:$0xff] }
 0x209   : > { %4963 = vmatpush3.bf16.msra.mxu1 %v4962_v15  ;;  %4677 = vmatprep.subr.bf16.mxu0 %v4676_v16  ;;  %v4978_v15 = vpack.c.bf16 %v1477_v6, %v1470_v63  ;;  %v4692_v16 = vpack.c.bf16 %v1154_v8, %v1147_v7  ;;  %v4704_v63 = vpack.c.bf16 %v1196_v52, %v1189_v19  ;;  %v1203_v6 = vld [vmem:[%s9688_s3 + $0x808] sm:$0xff]  ;;  %v1210_v7 = vld [vmem:[%s9688_s3 + $0x840] sm:$0xff]  ;;  %v1252_v19 = vld [vmem:[%s9688_s3 + $0x990] sm:$0xff] }
 0x20a   : > { %4965 = vmatprep.subr.bf16.mxu1 %v4964_v24  ;;  %v4980_v24 = vpack.c.bf16 %v1603_v13, %v1596_v12  ;;  %v1764_v12 = vld [vmem:[%s9688_s3 + $0x1990] sm:$0xff]  ;;  %v1771_v13 = vld [vmem:[%s9688_s3 + $0x19c8] sm:$0xff]  ;;  %v1806_v52 = vld [vmem:[%s9688_s3 + $0x1ae0] sm:$0xff] }
 0x20c   : > { %4679 = vmatpush1.bf16.msra.mxu0 %v4678_v31  ;;  %v4694_v31 = vpack.c.bf16 %v1153_v20, %v1146_v18  ;;  %v1202_v18 = vld [vmem:[%s9688_s3 + $0x800] sm:$0xff]  ;;  %v1209_v20 = vld [vmem:[%s9688_s3 + $0x838] sm:$0xff] }
 0x20d   : > { %4967 = vmatpush3.bf16.msra.mxu1 %v4966_v32  ;;  %4681 = vmatprep.subr.bf16.mxu0 %v4680_v33  ;;  %v4982_v32 = vpack.c.bf16 %v1491_v26, %v1484_v23  ;;  %v4696_v33 = vpack.c.bf16 %v1168_v28, %v1161_v27  ;;  %v1652_v23 = vld [vmem:[%s9688_s3 + $0x1610] sm:$0xff]  ;;  %v1217_v26 = vld [vmem:[%s9688_s3 + $0x878] sm:$0xff]  ;;  %v1778_v28 = vld [vmem:[%s9688_s3 + $0x1a00] sm:$0xff] }
 0x20e   : > { %4969 = vmatprep.subr.bf16.mxu1 %v4968_v37  ;;  %v4984_v37 = vpack.c.bf16 %v1617_v30, %v1610_v29  ;;  %v1224_v27 = vld [vmem:[%s9688_s3 + $0x8b0] sm:$0xff]  ;;  %v1785_v29 = vld [vmem:[%s9688_s3 + $0x1a38] sm:$0xff]  ;;  %v4710_v30 = vpack.c.bf16 %v1209_v20, %v1202_v18 }
 0x20f   : > { %v1265_v18 = vld [vmem:[%s9688_s3 + $0x9f8] sm:$0xff]  ;;  %v1708_v20 = vld [vmem:[%s9688_s3 + $0x17d0] sm:$0xff] }
 0x210   : > { %4683 = vmatpush1.bf16.msra.mxu0 %v4682_v46  ;;  %v4698_v46 = vpack.c.bf16 %v1167_v36, %v1160_v34  ;;  %v1223_v34 = vld [vmem:[%s9688_s3 + $0x8a8] sm:$0xff]  ;;  %v1666_v36 = vld [vmem:[%s9688_s3 + $0x1680] sm:$0xff] }
 0x211   : > { %4971 = vmatpush3.bf16.msra.mxu1 %v4970_v47  ;;  %4685 = vmatprep.subr.bf16.mxu0 %v4684_v48  ;;  %v4986_v47 = vpack.c.bf16 %v1505_v38, %v1498_v21  ;;  %v4700_v48 = vpack.c.bf16 %v1182_v40, %v1175_v39  ;;  %v5000_v21 = vpack.c.bf16 %v1785_v29, %v1778_v28  ;;  %v1231_v38 = vld [vmem:[%s9688_s3 + $0x8e8] sm:$0xff]  ;;  %v1238_v39 = vld [vmem:[%s9688_s3 + $0x920] sm:$0xff]  ;;  %v1792_v40 = vld [vmem:[%s9688_s3 + $0x1a70] sm:$0xff] }
 0x212   : > { %4973 = vmatprep.subr.bf16.mxu1 %v4972_v41  ;;  %v1624_v41 = vld [vmem:[%s9688_s3 + $0x1530] sm:$0xff]  ;;  %v1841_v28 = vld [vmem:[%s9688_s3 + $0x1bf8] sm:$0xff] }
 0x214   : > { %4687 = vmatpush1.bf16.msra.mxu0 %v4686_v58  ;;  %v1757_v58 = vld [vmem:[%s9688_s3 + $0x1958] sm:$0xff] }
 0x215   : > { %4975 = vmatpush3.bf16.msra.mxu1 %v4974_v60  ;;  %4689 = vmatprep.subr.bf16.mxu0 %v4688_v61  ;;  %v4990_v60 = vpack.c.bf16 %v1631_v50, %v1624_v41  ;;  %v1188_v61 = vld [vmem:[%s9688_s3 + $0x790] sm:$0xff]  ;;  %v4992_v8 = vpack.c.bf16 %v1757_v58, %v1750_v55  ;;  %v1687_v41 = vld [vmem:[%s9688_s3 + $0x1728] sm:$0xff]  ;;  %v1245_v50 = vld [vmem:[%s9688_s3 + $0x958] sm:$0xff] }
 0x216   : > { %4977 = vmatprep.subr.bf16.mxu1 %v4976_v5  ;;  %v1645_v5 = vld [vmem:[%s9688_s3 + $0x15d8] sm:$0xff]  ;;  %v5006_v58 = vpack.c.bf16 %v1687_v41, %v1680_v49  ;;  %v1308_v49 = vld [vmem:[%s9688_s3 + $0xb50] sm:$0xff]  ;;  %v3018_v41 = vld [vmem:[%s9690_s5] sm:$0xff] }
 0x218   : > { %4691 = vmatpush1.bf16.msra.mxu0 %v4690_v14  ;;  %v4706_v14 = vpack.c.bf16 %v1195_v62, %v1188_v61  ;;  %v1244_v61 = vld [vmem:[%s9688_s3 + $0x950] sm:$0xff]  ;;  %v1251_v62 = vld [vmem:[%s9688_s3 + $0x988] sm:$0xff] }
 0x219   : > { %4979 = vmatpush3.bf16.msra.mxu1 %v4978_v15  ;;  %4693 = vmatprep.subr.bf16.mxu0 %v4692_v16  ;;  %v4994_v15 = vpack.c.bf16 %v1645_v5, %v1638_v59  ;;  %v4708_v16 = vpack.c.bf16 %v1210_v7, %v1203_v6  ;;  %v1694_v59 = vld [vmem:[%s9688_s3 + $0x1760] sm:$0xff]  ;;  %v1701_v5 = vld [vmem:[%s9688_s3 + $0x1798] sm:$0xff]  ;;  %v1259_v6 = vld [vmem:[%s9688_s3 + $0x9c8] sm:$0xff] }
 0x21a   : > { %4981 = vmatprep.subr.bf16.mxu1 %v4980_v24  ;;  %v4996_v24 = vpack.c.bf16 %v1771_v13, %v1764_v12  ;;  %v1266_v7 = vld [vmem:[%s9688_s3 + $0xa00] sm:$0xff]  ;;  %v1827_v12 = vld [vmem:[%s9688_s3 + $0x1b88] sm:$0xff]  ;;  %v4722_v13 = vpack.c.bf16 %v1251_v62, %v1244_v61 }
 0x21b   : > { %v1315_v61 = vld [vmem:[%s9688_s3 + $0xb88] sm:$0xff] }
 0x21c   : > { %4695 = vmatpush1.bf16.msra.mxu0 %v4694_v31 }
 0x21d   : > { %4983 = vmatpush3.bf16.msra.mxu1 %v4982_v32  ;;  %4697 = vmatprep.subr.bf16.mxu0 %v4696_v33  ;;  %v4712_v32 = vpack.c.bf16 %v1224_v27, %v1217_v26  ;;  %v1216_v33 = vld [vmem:[%s9688_s3 + $0x870] sm:$0xff]  ;;  %v1834_v27 = vld [vmem:[%s9688_s3 + $0x1bc0] sm:$0xff] }
 0x21e   : > { %4985 = vmatprep.subr.bf16.mxu1 %v4984_v37  ;;  %v1673_v37 = vld [vmem:[%s9688_s3 + $0x16b8] sm:$0xff]  ;;  %v4714_v45 = vpack.c.bf16 %v1223_v34, %v1216_v33  ;;  %v1280_v26 = vld [vmem:[%s9688_s3 + $0xa70] sm:$0xff]  ;;  %v1279_v33 = vld [vmem:[%s9688_s3 + $0xa68] sm:$0xff] }
 0x21f   : > { %v1722_v34 = vld [vmem:[%s9688_s3 + $0x1840] sm:$0xff] }
 0x220   : > { %4699 = vmatpush1.bf16.msra.mxu0 %v4698_v46  ;;  %v5002_v46 = vpack.c.bf16 %v1673_v37, %v1666_v36  ;;  %v5016_v36 = vpack.c.bf16 %v1841_v28, %v1834_v27  ;;  %v1287_v37 = vld [vmem:[%s9688_s3 + $0xaa8] sm:$0xff]  ;;  %v3033_v27 = vld [vmem:[%s9690_s5 + $0x78] sm:$0xff] }
 0x221   : > { %4987 = vmatpush3.bf16.msra.mxu1 %v4986_v47  ;;  %4701 = vmatprep.subr.bf16.mxu0 %v4700_v48  ;;  %v4716_v47 = vpack.c.bf16 %v1238_v39, %v1231_v38  ;;  %v1230_v48 = vld [vmem:[%s9688_s3 + $0x8e0] sm:$0xff]  ;;  %v3019_v39 = vld [vmem:[%s9690_s5 + $0x8] sm:$0xff] }
 0x222   : > { %4989 = vmatprep.subr.bf16.mxu1 %v4988_v2  ;;  %v5004_v2 = vpack.c.bf16 %v1799_v43, %v1792_v40  ;;  %v4718_v55 = vpack.c.bf16 %v1237_v44, %v1230_v48  ;;  %v1294_v38 = vld [vmem:[%s9688_s3 + $0xae0] sm:$0xff]  ;;  %v3021_v40 = vld [vmem:[%s9690_s5 + $0x18] sm:$0xff] }
 0x223   : > { %2512 = vmatmul.mubr.f32.vlgmr.msra.gmra.mrb[6].mxu0 %v6592_v22  ;;  %v1293_v48 = vld [vmem:[%s9688_s3 + $0xad8] sm:$0xff] }
 0x224   : > { %2936 = vmatmul.mubr.f32.vlgmr.msra.gmra.mrb[8].mxu1 %v7406_v53  ;;  %4703 = vmatpush1.bf16.msra.mxu0 %v4702_v54  ;;  %v1813_v54 = vld [vmem:[%s9688_s3 + $0x1b18] sm:$0xff] }
 0x225   : > { %2582 = vmatprep.mubr.f32.mxu0 %v6733_v35  ;;  %4991 = vmatpush3.bf16.msra.mxu1 %v4990_v60  ;;  %v1659_v35 = vld [vmem:[%s9688_s3 + $0x1648] sm:$0xff]  ;;  %v4720_v60 = vpack.c.bf16 %v1252_v19, %v1245_v50  ;;  %v1301_v44 = vld [vmem:[%s9688_s3 + $0xb18] sm:$0xff]  ;;  %v3020_v50 = vld [vmem:[%s9690_s5 + $0x10] sm:$0xff] }
 0x226   : > { %3005 = vmatprep.mubr.f32.mxu1 %v7432_v42  ;;  %4705 = vmatprep.subr.bf16.mxu0 %v4704_v63  ;;  %v4998_v31 = vpack.c.bf16 %v1659_v35, %v1652_v23  ;;  %v5008_v63 = vpack.c.bf16 %v1813_v54, %v1806_v52  ;;  %v1273_v35 = vld [vmem:[%s9688_s3 + $0xa38] sm:$0xff]  ;;  %v3023_v19 = vld [vmem:[%s9690_s5 + $0x28] sm:$0xff]  ;;  %v5022_v62 = vpack.c.bf16 %v3020_v50, %v3018_v41  ;;  %v3036_v41 = vld [vmem:[%s9690_s5 + $0x90] sm:$0xff] }
 0x227   : > { %4993 = vmatprep.subr.bf16.mxu1 %v4992_v8  ;;  %v1820_v8 = vld [vmem:[%s9688_s3 + $0x1b50] sm:$0xff]  ;;  %v3025_v52 = vld [vmem:[%s9690_s5 + $0x38] sm:$0xff]  ;;  %v3039_v50 = vld [vmem:[%s9690_s5 + $0xa8] sm:$0xff] }
 0x228   : > { %4707 = vmatpush1.bf16.msra.mxu0 %v4706_v14  ;;  %v5010_v14 = vpack.c.bf16 %v1701_v5, %v1694_v59  ;;  %v5012_v23 = vpack.c.bf16 %v1827_v12, %v1820_v8  ;;  %v1322_v59 = vld [vmem:[%s9688_s3 + $0xbc0] sm:$0xff]  ;;  %v3029_v8 = vld [vmem:[%s9690_s5 + $0x58] sm:$0xff] }
 0x229   : > { %4995 = vmatpush3.bf16.msra.mxu1 %v4994_v15  ;;  %4709 = vmatprep.subr.bf16.mxu0 %v4708_v16  ;;  %v4724_v15 = vpack.c.bf16 %v1266_v7, %v1259_v6  ;;  %v1258_v16 = vld [vmem:[%s9688_s3 + $0x9c0] sm:$0xff]  ;;  %v3024_v6 = vld [vmem:[%s9690_s5 + $0x30] sm:$0xff]  ;;  %v3027_v7 = vld [vmem:[%s9690_s5 + $0x48] sm:$0xff] }
 0x22a   : > { %4997 = vmatprep.subr.bf16.mxu1 %v4996_v24  ;;  %v1715_v24 = vld [vmem:[%s9688_s3 + $0x1808] sm:$0xff]  ;;  %v4726_v29 = vpack.c.bf16 %v1265_v18, %v1258_v16  ;;  %v3022_v5 = vld [vmem:[%s9690_s5 + $0x20] sm:$0xff]  ;;  %v1329_v16 = vld [vmem:[%s9688_s3 + $0xbf8] sm:$0xff] }
 0x22b   : > { %v5026_v18 = vpack.c.bf16 %v3024_v6, %v3022_v5  ;;  %v3040_v5 = vld [vmem:[%s9690_s5 + $0xb0] sm:$0xff]  ;;  %v3043_v6 = vld [vmem:[%s9690_s5 + $0xc8] sm:$0xff] }
 0x22c   : > { %4711 = vmatpush1.bf16.msra.mxu0 %v4710_v30  ;;  %v5014_v30 = vpack.c.bf16 %v1715_v24, %v1708_v20  ;;  %v1336_v20 = vld [vmem:[%s9688_s3 + $0xc30] sm:$0xff]  ;;  %v3026_v24 = vld [vmem:[%s9690_s5 + $0x40] sm:$0xff] }
 0x22d   : > { %4999 = vmatpush3.bf16.msra.mxu1 %v4998_v31  ;;  %4713 = vmatprep.subr.bf16.mxu0 %v4712_v32  ;;  %v4728_v31 = vpack.c.bf16 %v1280_v26, %v1273_v35  ;;  %v1272_v32 = vld [vmem:[%s9688_s3 + $0xa30] sm:$0xff]  ;;  %v3031_v26 = vld [vmem:[%s9690_s5 + $0x68] sm:$0xff] }
 0x22e   : > { %5001 = vmatprep.subr.bf16.mxu1 %v5000_v21  ;;  %v1729_v21 = vld [vmem:[%s9688_s3 + $0x1878] sm:$0xff]  ;;  %v4730_v43 = vpack.c.bf16 %v1279_v33, %v1272_v32  ;;  %v3028_v35 = vld [vmem:[%s9690_s5 + $0x50] sm:$0xff]  ;;  %v1343_v32 = vld [vmem:[%s9688_s3 + $0xc68] sm:$0xff] }
 0x22f   : > { %v5030_v33 = vpack.c.bf16 %v3028_v35, %v3026_v24  ;;  %v3044_v24 = vld [vmem:[%s9690_s5 + $0xd0] sm:$0xff]  ;;  %v3047_v35 = vld [vmem:[%s9690_s5 + $0xe8] sm:$0xff] }
 0x230   : > { %4715 = vmatpush1.bf16.msra.mxu0 %v4714_v45  ;;  %v5018_v45 = vpack.c.bf16 %v1729_v21, %v1722_v34  ;;  %v1350_v34 = vld [vmem:[%s9688_s3 + $0xca0] sm:$0xff] }
 0x231   : > { %5003 = vmatpush3.bf16.msra.mxu1 %v5002_v46  ;;  %4717 = vmatprep.subr.bf16.mxu0 %v4716_v47  ;;  %v4732_v46 = vpack.c.bf16 %v1294_v38, %v1287_v37  ;;  %v1286_v47 = vld [vmem:[%s9688_s3 + $0xaa0] sm:$0xff]  ;;  %v3032_v37 = vld [vmem:[%s9690_s5 + $0x70] sm:$0xff]  ;;  %v3035_v38 = vld [vmem:[%s9690_s5 + $0x88] sm:$0xff] }
 0x232   : > { %5005 = vmatprep.subr.bf16.mxu1 %v5004_v2  ;;  %v5020_v2 = vpack.c.bf16 %v3021_v40, %v3019_v39  ;;  %v4734_v54 = vpack.c.bf16 %v1293_v48, %v1286_v47  ;;  %v3030_v21 = vld [vmem:[%s9690_s5 + $0x60] sm:$0xff]  ;;  %v3037_v39 = vld [vmem:[%s9690_s5 + $0x98] sm:$0xff] }
 0x233   : > { %v1357_v47 = vld [vmem:[%s9688_s3 + $0xcd8] sm:$0xff]  ;;  %v5034_v48 = vpack.c.bf16 %v3032_v37, %v3030_v21  ;;  %v3048_v21 = vld [vmem:[%s9690_s5 + $0xf0] sm:$0xff]  ;;  %v3051_v37 = vld [vmem:[%s9690_s5 + $0x108] sm:$0xff] }
 0x234   : > { %4719 = vmatpush1.bf16.msra.mxu0 %v4718_v55  ;;  %v4736_v55 = vpack.c.bf16 %v1308_v49, %v1301_v44  ;;  %v1364_v44 = vld [vmem:[%s9688_s3 + $0xd10] sm:$0xff]  ;;  %v5036_v49 = vpack.c.bf16 %v3037_v39, %v3035_v38  ;;  %v3053_v38 = vld [vmem:[%s9690_s5 + $0x118] sm:$0xff] }
 0x235   : > { %5007 = vmatpush3.bf16.msra.mxu1 %v5006_v58  ;;  %4721 = vmatprep.subr.bf16.mxu0 %v4720_v60  ;;  %v1300_v58 = vld [vmem:[%s9688_s3 + $0xb10] sm:$0xff]  ;;  %v1307_v60 = vld [vmem:[%s9688_s3 + $0xb48] sm:$0xff] }
 0x236   : > { %5009 = vmatprep.subr.bf16.mxu1 %v5008_v63  ;;  %v5024_v63 = vpack.c.bf16 %v3025_v52, %v3023_v19  ;;  %v4738_v12 = vpack.c.bf16 %v1307_v60, %v1300_v58  ;;  %v3041_v19 = vld [vmem:[%s9690_s5 + $0xb8] sm:$0xff]  ;;  %v1363_v58 = vld [vmem:[%s9688_s3 + $0xd08] sm:$0xff] }
 0x237   : > { %v1371_v60 = vld [vmem:[%s9688_s3 + $0xd48] sm:$0xff] }
 0x238   : > { %4723 = vmatpush1.bf16.msra.mxu0 %v4722_v13  ;;  %v4740_v13 = vpack.c.bf16 %v1322_v59, %v1315_v61  ;;  %v5040_v59 = vpack.c.bf16 %v3041_v19, %v3039_v50  ;;  %v3057_v50 = vld [vmem:[%s9690_s5 + $0x138] sm:$0xff] }
 0x239   : > { %5011 = vmatpush3.bf16.msra.mxu1 %v5010_v14  ;;  %4725 = vmatprep.subr.bf16.mxu0 %v4724_v15  ;;  %v1314_v14 = vld [vmem:[%s9688_s3 + $0xb80] sm:$0xff]  ;;  %v1321_v15 = vld [vmem:[%s9688_s3 + $0xbb8] sm:$0xff] }
 0x23a   : > { %5013 = vmatprep.subr.bf16.mxu1 %v5012_v23  ;;  %v5028_v23 = vpack.c.bf16 %v3029_v8, %v3027_v7  ;;  %v4742_v28 = vpack.c.bf16 %v1321_v15, %v1314_v14  ;;  %v3045_v7 = vld [vmem:[%s9690_s5 + $0xd8] sm:$0xff] }
 0x23b   : > { %v1377_v14 = vld [vmem:[%s9688_s3 + $0xd78] sm:$0xff] }
 0x23c   : > { %4727 = vmatpush1.bf16.msra.mxu0 %v4726_v29  ;;  %v4744_v29 = vpack.c.bf16 %v1336_v20, %v1329_v16  ;;  %v1385_v15 = vld [vmem:[%s9688_s3 + $0xdb8] sm:$0xff]  ;;  %v5044_v20 = vpack.c.bf16 %v3045_v7, %v3043_v6 }
 0x23d   : > { %5015 = vmatpush3.bf16.msra.mxu1 %v5014_v30  ;;  %4729 = vmatprep.subr.bf16.mxu0 %v4728_v31  ;;  %v1328_v30 = vld [vmem:[%s9688_s3 + $0xbf0] sm:$0xff]  ;;  %v1335_v31 = vld [vmem:[%s9688_s3 + $0xc28] sm:$0xff]  ;;  %v3061_v6 = vld [vmem:[%s9690_s5 + $0x158] sm:$0xff] }
 0x23e   : > { %5017 = vmatprep.subr.bf16.mxu1 %v5016_v36  ;;  %v5032_v36 = vpack.c.bf16 %v3033_v27, %v3031_v26  ;;  %v4746_v40 = vpack.c.bf16 %v1335_v31, %v1328_v30  ;;  %v3049_v26 = vld [vmem:[%s9690_s5 + $0xf8] sm:$0xff]  ;;  %v1391_v30 = vld [vmem:[%s9688_s3 + $0xde8] sm:$0xff] }
 0x23f   : > { %v1399_v31 = vld [vmem:[%s9688_s3 + $0xe28] sm:$0xff] }
 0x240   : > { %4731 = vmatpush1.bf16.msra.mxu0 %v4730_v43  ;;  %v4748_v43 = vpack.c.bf16 %v1350_v34, %v1343_v32  ;;  %v5048_v34 = vpack.c.bf16 %v3049_v26, %v3047_v35  ;;  %v1440_v26 = vld [vmem:[%s9688_s3 + $0xf70] sm:$0xff] }
 0x241   : > { %5019 = vmatpush3.bf16.msra.mxu1 %v5018_v45  ;;  %4733 = vmatprep.subr.bf16.mxu0 %v4732_v46  ;;  %v1342_v45 = vld [vmem:[%s9688_s3 + $0xc60] sm:$0xff]  ;;  %v1349_v46 = vld [vmem:[%s9688_s3 + $0xc98] sm:$0xff] }
 0x242   : > { %5021 = vmatprep.subr.bf16.mxu1 %v5020_v2  ;;  %v3034_v2 = vld [vmem:[%s9690_s5 + $0x80] sm:$0xff]  ;;  %v4750_v52 = vpack.c.bf16 %v1349_v46, %v1342_v45  ;;  %v1405_v45 = vld [vmem:[%s9688_s3 + $0xe58] sm:$0xff] }
 0x243   : > { %v5038_v61 = vpack.c.bf16 %v3036_v41, %v3034_v2  ;;  %v1413_v46 = vld [vmem:[%s9688_s3 + $0xe98] sm:$0xff]  ;;  %v3052_v2 = vld [vmem:[%s9690_s5 + $0x110] sm:$0xff]  ;;  %v3055_v41 = vld [vmem:[%s9690_s5 + $0x128] sm:$0xff] }
 0x244   : > { %3006 = vmatmul.mubr.f32.vlgmr.msra.gmra.mrb[10].mxu1 %v7794_v51  ;;  %4735 = vmatpush1.bf16.msra.mxu0 %v4734_v54  ;;  %v4752_v54 = vpack.c.bf16 %v1364_v44, %v1357_v47  ;;  %v5052_v44 = vpack.c.bf16 %v3053_v38, %v3051_v37  ;;  %v1454_v38 = vld [vmem:[%s9688_s3 + $0xfe0] sm:$0xff] }
 0x245   : > { %4737 = vmatprep.subr.bf16.mxu0 %v4736_v55  ;;  %5023 = vmatpush1.bf16.msra.mxu1 %v5022_v62  ;;  %v1356_v55 = vld [vmem:[%s9688_s3 + $0xcd0] sm:$0xff]  ;;  %v1378_v62 = vld [vmem:[%s9688_s3 + $0xd80] sm:$0xff] }
 0x246   : > { %5025 = vmatprep.subr.bf16.mxu1 %v5024_v63  ;;  %v3038_v63 = vld [vmem:[%s9690_s5 + $0xa0] sm:$0xff]  ;;  %v4754_v8 = vpack.c.bf16 %v1363_v58, %v1356_v55  ;;  %v1419_v55 = vld [vmem:[%s9688_s3 + $0xec8] sm:$0xff] }
 0x247   : > { %v5042_v16 = vpack.c.bf16 %v3040_v5, %v3038_v63  ;;  %v1427_v58 = vld [vmem:[%s9688_s3 + $0xf08] sm:$0xff]  ;;  %v3056_v63 = vld [vmem:[%s9690_s5 + $0x130] sm:$0xff] }
 0x248   : > { %4739 = vmatpush1.bf16.msra.mxu0 %v4738_v12  ;;  %v4756_v12 = vpack.c.bf16 %v1378_v62, %v1371_v60  ;;  %v5056_v62 = vpack.c.bf16 %v3057_v50, %v3055_v41  ;;  %v3059_v5 = vld [vmem:[%s9690_s5 + $0x148] sm:$0xff]  ;;  %v1468_v50 = vld [vmem:[%s9688_s3 + $0x1050] sm:$0xff] }
 0x249   : > { %4741 = vmatprep.subr.bf16.mxu0 %v4740_v13  ;;  %5027 = vmatpush1.bf16.msra.mxu1 %v5026_v18  ;;  %v1370_v13 = vld [vmem:[%s9688_s3 + $0xd40] sm:$0xff]  ;;  %v1392_v18 = vld [vmem:[%s9688_s3 + $0xdf0] sm:$0xff] }
 0x24a   : > { %5029 = vmatprep.subr.bf16.mxu1 %v5028_v23  ;;  %v3042_v23 = vld [vmem:[%s9690_s5 + $0xc0] sm:$0xff]  ;;  %v4758_v27 = vpack.c.bf16 %v1377_v14, %v1370_v13  ;;  %v1441_v13 = vld [vmem:[%s9688_s3 + $0xf78] sm:$0xff] }
 0x24b   : > { %v5046_v32 = vpack.c.bf16 %v3044_v24, %v3042_v23  ;;  %v3065_v23 = vld [vmem:[%s9690_s5 + $0x178] sm:$0xff] }
 0x24c   : > { %4743 = vmatpush1.bf16.msra.mxu0 %v4742_v28  ;;  %v4760_v28 = vpack.c.bf16 %v1392_v18, %v1385_v15  ;;  %v5060_v15 = vpack.c.bf16 %v3061_v6, %v3059_v5  ;;  %v3060_v18 = vld [vmem:[%s9690_s5 + $0x150] sm:$0xff]  ;;  %v1482_v6 = vld [vmem:[%s9688_s3 + $0x10c0] sm:$0xff] }
 0x24d   : > { %4745 = vmatprep.subr.bf16.mxu0 %v4744_v29  ;;  %5031 = vmatpush1.bf16.msra.mxu1 %v5030_v33  ;;  %v1384_v29 = vld [vmem:[%s9688_s3 + $0xdb0] sm:$0xff]  ;;  %v1406_v33 = vld [vmem:[%s9688_s3 + $0xe60] sm:$0xff] }
 0x24e   : > { %5033 = vmatprep.subr.bf16.mxu1 %v5032_v36  ;;  %v3046_v36 = vld [vmem:[%s9690_s5 + $0xe0] sm:$0xff]  ;;  %v4762_v39 = vpack.c.bf16 %v1391_v30, %v1384_v29 }
 0x24f   : > { %v5050_v47 = vpack.c.bf16 %v3048_v21, %v3046_v36  ;;  %v1462_v30 = vld [vmem:[%s9688_s3 + $0x1020] sm:$0xff]  ;;  %v3069_v36 = vld [vmem:[%s9690_s5 + $0x198] sm:$0xff] }
 0x250   : > { %4747 = vmatpush1.bf16.msra.mxu0 %v4746_v40  ;;  %v4764_v40 = vpack.c.bf16 %v1406_v33, %v1399_v31  ;;  %v3064_v33 = vld [vmem:[%s9690_s5 + $0x170] sm:$0xff] }
 0x251   : > { %4749 = vmatprep.subr.bf16.mxu0 %v4748_v43  ;;  %5035 = vmatpush1.bf16.msra.mxu1 %v5034_v48  ;;  %v1398_v43 = vld [vmem:[%s9688_s3 + $0xe20] sm:$0xff]  ;;  %v1420_v48 = vld [vmem:[%s9688_s3 + $0xed0] sm:$0xff] }
 0x252   : > { %5037 = vmatprep.subr.bf16.mxu1 %v5036_v49  ;;  %v3050_v49 = vld [vmem:[%s9690_s5 + $0x100] sm:$0xff]  ;;  %v4766_v19 = vpack.c.bf16 %v1405_v45, %v1398_v43  ;;  %v1476_v45 = vld [vmem:[%s9688_s3 + $0x1090] sm:$0xff] }
 0x253   : > { %v5054_v60 = vpack.c.bf16 %v3052_v2, %v3050_v49  ;;  %v3073_v49 = vld [vmem:[%s9690_s5 + $0x1b8] sm:$0xff] }
 0x254   : > { %4751 = vmatpush1.bf16.msra.mxu0 %v4750_v52  ;;  %v4768_v52 = vpack.c.bf16 %v1420_v48, %v1413_v46  ;;  %v3068_v48 = vld [vmem:[%s9690_s5 + $0x190] sm:$0xff] }
 0x255   : > { %4753 = vmatprep.subr.bf16.mxu0 %v4752_v54  ;;  %5039 = vmatpush1.bf16.msra.mxu1 %v5038_v61  ;;  %v1412_v54 = vld [vmem:[%s9688_s3 + $0xe90] sm:$0xff]  ;;  %v1434_v61 = vld [vmem:[%s9688_s3 + $0xf40] sm:$0xff] }
 0x256   : > { %5041 = vmatprep.subr.bf16.mxu1 %v5040_v59  ;;  %v3054_v59 = vld [vmem:[%s9690_s5 + $0x120] sm:$0xff]  ;;  %v4770_v7 = vpack.c.bf16 %v1419_v55, %v1412_v54 }
 0x257   : > { %v5058_v14 = vpack.c.bf16 %v3056_v63, %v3054_v59  ;;  %v1490_v55 = vld [vmem:[%s9688_s3 + $0x1100] sm:$0xff]  ;;  %v3077_v59 = vld [vmem:[%s9690_s5 + $0x1d8] sm:$0xff] }
 0x258   : > { %4755 = vmatpush1.bf16.msra.mxu0 %v4754_v8  ;;  %v4772_v8 = vpack.c.bf16 %v1434_v61, %v1427_v58  ;;  %v3072_v61 = vld [vmem:[%s9690_s5 + $0x1b0] sm:$0xff] }
 0x259   : > { %4757 = vmatprep.subr.bf16.mxu0 %v4756_v12  ;;  %5043 = vmatpush1.bf16.msra.mxu1 %v5042_v16  ;;  %v1426_v12 = vld [vmem:[%s9688_s3 + $0xf00] sm:$0xff] }
 0x25a   : > { %5045 = vmatprep.subr.bf16.mxu1 %v5044_v20  ;;  %v3058_v16 = vld [vmem:[%s9690_s5 + $0x140] sm:$0xff]  ;;  %v3063_v20 = vld [vmem:[%s9690_s5 + $0x168] sm:$0xff] }
 0x25b   : > { %v5062_v29 = vpack.c.bf16 %v3060_v18, %v3058_v16  ;;  %v5064_v31 = vpack.c.bf16 %v3065_v23, %v3063_v20  ;;  %v3081_v16 = vld [vmem:[%s9690_s5 + $0x1f8] sm:$0xff]  ;;  %v1496_v23 = vld [vmem:[%s9688_s3 + $0x1130] sm:$0xff] }
 0x25c   : > { %4759 = vmatpush1.bf16.msra.mxu0 %v4758_v27  ;;  %v1447_v27 = vld [vmem:[%s9688_s3 + $0xfa8] sm:$0xff] }
 0x25d   : > { %4761 = vmatprep.subr.bf16.mxu0 %v4760_v28  ;;  %5047 = vmatpush1.bf16.msra.mxu1 %v5046_v32  ;;  %v1455_v28 = vld [vmem:[%s9688_s3 + $0xfe8] sm:$0xff]  ;;  %v3062_v32 = vld [vmem:[%s9690_s5 + $0x160] sm:$0xff]  ;;  %v4778_v21 = vpack.c.bf16 %v1447_v27, %v1440_v26 }
 0x25e   : > { %5049 = vmatprep.subr.bf16.mxu1 %v5048_v34  ;;  %v3067_v34 = vld [vmem:[%s9690_s5 + $0x188] sm:$0xff]  ;;  %v4780_v37 = vpack.c.bf16 %v1462_v30, %v1455_v28  ;;  %v5066_v43 = vpack.c.bf16 %v3064_v33, %v3062_v32  ;;  %v1518_v27 = vld [vmem:[%s9688_s3 + $0x11e0] sm:$0xff]  ;;  %v3080_v30 = vld [vmem:[%s9690_s5 + $0x1f0] sm:$0xff] }
 0x25f   : > { %v5068_v46 = vpack.c.bf16 %v3069_v36, %v3067_v34  ;;  %v3085_v32 = vld [vmem:[%s9690_s5 + $0x218] sm:$0xff]  ;;  %v1510_v36 = vld [vmem:[%s9688_s3 + $0x11a0] sm:$0xff] }
 0x260   : > { %4763 = vmatpush1.bf16.msra.mxu0 %v4762_v39  ;;  %v1461_v39 = vld [vmem:[%s9688_s3 + $0x1018] sm:$0xff] }
 0x261   : > { %4765 = vmatprep.subr.bf16.mxu0 %v4764_v40  ;;  %5051 = vmatpush1.bf16.msra.mxu1 %v5050_v47  ;;  %v1469_v40 = vld [vmem:[%s9688_s3 + $0x1058] sm:$0xff]  ;;  %v3066_v47 = vld [vmem:[%s9690_s5 + $0x180] sm:$0xff]  ;;  %v4782_v2 = vpack.c.bf16 %v1461_v39, %v1454_v38  ;;  %v1532_v39 = vld [vmem:[%s9688_s3 + $0x1250] sm:$0xff] }
 0x262   : > { %5053 = vmatprep.subr.bf16.mxu1 %v5052_v44  ;;  %v3071_v44 = vld [vmem:[%s9690_s5 + $0x1a8] sm:$0xff]  ;;  %v4784_v41 = vpack.c.bf16 %v1476_v45, %v1469_v40  ;;  %v5070_v54 = vpack.c.bf16 %v3068_v48, %v3066_v47  ;;  %v1525_v38 = vld [vmem:[%s9688_s3 + $0x1218] sm:$0xff] }
 0x263   : > { %2583 = vmatmul.mubr.f32.vlgmr.msra.gmra.mrb[6].mxu0 %v6997_v57  ;;  %v1433_v57 = vld [vmem:[%s9688_s3 + $0xf38] sm:$0xff]  ;;  %v5072_v58 = vpack.c.bf16 %v3073_v49, %v3071_v44  ;;  %v4800_v45 = vpack.c.bf16 %v1532_v39, %v1525_v38  ;;  %v1531_v47 = vld [vmem:[%s9688_s3 + $0x1248] sm:$0xff]  ;;  %v1546_v44 = vld [vmem:[%s9688_s3 + $0x12c0] sm:$0xff] }
 0x264   : > { %4767 = vmatpush1.bf16.msra.mxu0 %v4766_v19  ;;  %2653 = vmatprep.mubr.f32.mxu0 %v7023_v10  ;;  %v1448_v10 = vld [vmem:[%s9688_s3 + $0xfb0] sm:$0xff]  ;;  %v4774_v24 = vpack.c.bf16 %v1433_v57, %v1426_v12  ;;  %v1475_v19 = vld [vmem:[%s9688_s3 + $0x1088] sm:$0xff] }
 0x265   : > { %4769 = vmatprep.subr.bf16.mxu0 %v4768_v52  ;;  %5055 = vmatpush1.bf16.msra.mxu1 %v5054_v60  ;;  %v4776_v35 = vpack.c.bf16 %v1448_v10, %v1441_v13  ;;  %v1483_v52 = vld [vmem:[%s9688_s3 + $0x10c8] sm:$0xff]  ;;  %v3070_v60 = vld [vmem:[%s9690_s5 + $0x1a0] sm:$0xff]  ;;  %v4786_v63 = vpack.c.bf16 %v1475_v19, %v1468_v50  ;;  %v1504_v57 = vld [vmem:[%s9688_s3 + $0x1170] sm:$0xff] }
 0x266   : > { %5057 = vmatprep.subr.bf16.mxu1 %v5056_v62  ;;  %v3075_v62 = vld [vmem:[%s9690_s5 + $0x1c8] sm:$0xff]  ;;  %v4788_v5 = vpack.c.bf16 %v1490_v55, %v1483_v52  ;;  %v5074_v12 = vpack.c.bf16 %v3072_v61, %v3070_v60  ;;  %v3076_v10 = vld [vmem:[%s9690_s5 + $0x1d0] sm:$0xff]  ;;  %v1545_v50 = vld [vmem:[%s9688_s3 + $0x12b8] sm:$0xff] }
 0x267   : > { %v5076_v13 = vpack.c.bf16 %v3077_v59, %v3075_v62  ;;  %v1539_v48 = vld [vmem:[%s9688_s3 + $0x1288] sm:$0xff]  ;;  %v1553_v19 = vld [vmem:[%s9688_s3 + $0x12f8] sm:$0xff]  ;;  %v1560_v52 = vld [vmem:[%s9688_s3 + $0x1330] sm:$0xff] }
 0x268   : > { %4771 = vmatpush1.bf16.msra.mxu0 %v4770_v7  ;;  %v1489_v7 = vld [vmem:[%s9688_s3 + $0x10f8] sm:$0xff]  ;;  %v4808_v55 = vpack.c.bf16 %v1560_v52, %v1553_v19  ;;  %v1559_v60 = vld [vmem:[%s9688_s3 + $0x1328] sm:$0xff]  ;;  %v1574_v62 = vld [vmem:[%s9688_s3 + $0x13a0] sm:$0xff] }
 0x269   : > { %4773 = vmatprep.subr.bf16.mxu0 %v4772_v8  ;;  %5059 = vmatpush1.bf16.msra.mxu1 %v5058_v14  ;;  %v1497_v8 = vld [vmem:[%s9688_s3 + $0x1138] sm:$0xff]  ;;  %v3074_v14 = vld [vmem:[%s9690_s5 + $0x1c0] sm:$0xff]  ;;  %v4790_v18 = vpack.c.bf16 %v1489_v7, %v1482_v6  ;;  %v1567_v61 = vld [vmem:[%s9688_s3 + $0x1368] sm:$0xff] }
 0x26a   : > { %5061 = vmatprep.subr.bf16.mxu1 %v5060_v15  ;;  %v3079_v15 = vld [vmem:[%s9690_s5 + $0x1e8] sm:$0xff]  ;;  %v4792_v20 = vpack.c.bf16 %v1504_v57, %v1497_v8  ;;  %v5078_v26 = vpack.c.bf16 %v3076_v10, %v3074_v14  ;;  %v1573_v6 = vld [vmem:[%s9688_s3 + $0x1398] sm:$0xff]  ;;  %v1588_v8 = vld [vmem:[%s9688_s3 + $0x1410] sm:$0xff] }
 0x26b   : > { %v5080_v28 = vpack.c.bf16 %v3081_v16, %v3079_v15  ;;  %v1581_v7 = vld [vmem:[%s9688_s3 + $0x13d8] sm:$0xff]  ;;  %v1587_v14 = vld [vmem:[%s9688_s3 + $0x1408] sm:$0xff]  ;;  %v1602_v15 = vld [vmem:[%s9688_s3 + $0x1480] sm:$0xff] }
 0x26c   : > { %4775 = vmatpush1.bf16.msra.mxu0 %v4774_v24  ;;  %v1503_v24 = vld [vmem:[%s9688_s3 + $0x1168] sm:$0xff]  ;;  %v4816_v57 = vpack.c.bf16 %v1588_v8, %v1581_v7  ;;  %v1692_v7 = vld [vmem:[%s9688_s3 + $0x1750] sm:$0xff] }
 0x26d   : > { %4777 = vmatprep.subr.bf16.mxu0 %v4776_v35  ;;  %5063 = vmatpush1.bf16.msra.mxu1 %v5062_v29  ;;  %v1511_v35 = vld [vmem:[%s9688_s3 + $0x11a8] sm:$0xff]  ;;  %v3078_v29 = vld [vmem:[%s9690_s5 + $0x1e0] sm:$0xff]  ;;  %v4794_v33 = vpack.c.bf16 %v1503_v24, %v1496_v23  ;;  %v1601_v23 = vld [vmem:[%s9688_s3 + $0x1478] sm:$0xff] }
 0x26e   : > { %5065 = vmatprep.subr.bf16.mxu1 %v5064_v31  ;;  %v3083_v31 = vld [vmem:[%s9690_s5 + $0x208] sm:$0xff]  ;;  %v4796_v34 = vpack.c.bf16 %v1518_v27, %v1511_v35  ;;  %v1609_v24 = vld [vmem:[%s9688_s3 + $0x14b8] sm:$0xff]  ;;  %v1616_v35 = vld [vmem:[%s9688_s3 + $0x14f0] sm:$0xff] }
 0x26f   : > { %v5084_v40 = vpack.c.bf16 %v3085_v32, %v3083_v31  ;;  %v1595_v10 = vld [vmem:[%s9688_s3 + $0x1448] sm:$0xff]  ;;  %v4824_v27 = vpack.c.bf16 %v1616_v35, %v1609_v24  ;;  %v1630_v31 = vld [vmem:[%s9688_s3 + $0x1560] sm:$0xff]  ;;  %v1721_v35 = vld [vmem:[%s9688_s3 + $0x1838] sm:$0xff] }
 0x270   : > { %4779 = vmatpush1.bf16.msra.mxu0 %v4778_v21  ;;  %v1517_v21 = vld [vmem:[%s9688_s3 + $0x11d8] sm:$0xff]  ;;  %v1671_v19 = vld [vmem:[%s9688_s3 + $0x16a8] sm:$0xff] }
 0x271   : > { %4781 = vmatprep.subr.bf16.mxu0 %v4780_v37  ;;  %5067 = vmatpush1.bf16.msra.mxu1 %v5066_v43  ;;  %v5082_v37 = vpack.c.bf16 %v3080_v30, %v3078_v29  ;;  %v4798_v43 = vpack.c.bf16 %v1517_v21, %v1510_v36  ;;  %v1615_v29 = vld [vmem:[%s9688_s3 + $0x14e8] sm:$0xff]  ;;  %v1629_v36 = vld [vmem:[%s9688_s3 + $0x1558] sm:$0xff] }
 0x272   : > { %5069 = vmatprep.subr.bf16.mxu1 %v5068_v46  ;;  %v1524_v46 = vld [vmem:[%s9688_s3 + $0x1210] sm:$0xff]  ;;  %v1623_v30 = vld [vmem:[%s9688_s3 + $0x1528] sm:$0xff]  ;;  %v1637_v21 = vld [vmem:[%s9688_s3 + $0x1598] sm:$0xff] }
 0x273   : > { %v4802_v49 = vpack.c.bf16 %v1531_v47, %v1524_v46  ;;  %v1658_v46 = vld [vmem:[%s9688_s3 + $0x1640] sm:$0xff]  ;;  %v1679_v52 = vld [vmem:[%s9688_s3 + $0x16e8] sm:$0xff] }
 0x274   : > { %4783 = vmatpush1.bf16.msra.mxu0 %v4782_v2  ;;  %v4804_v2 = vpack.c.bf16 %v1546_v44, %v1539_v48  ;;  %v1650_v44 = vld [vmem:[%s9688_s3 + $0x1600] sm:$0xff]  ;;  %v1699_v8 = vld [vmem:[%s9688_s3 + $0x1788] sm:$0xff] }
 0x275   : > { %4785 = vmatprep.subr.bf16.mxu0 %v4784_v41  ;;  %5071 = vmatpush1.bf16.msra.mxu1 %v5070_v54  ;;  %v1538_v41 = vld [vmem:[%s9688_s3 + $0x1280] sm:$0xff] }
 0x276   : > { %5073 = vmatprep.subr.bf16.mxu1 %v5072_v58  ;;  %v4806_v54 = vpack.c.bf16 %v1545_v50, %v1538_v41  ;;  %v1552_v58 = vld [vmem:[%s9688_s3 + $0x12f0] sm:$0xff] }
 0x277   : > { %v4810_v59 = vpack.c.bf16 %v1559_v60, %v1552_v58  ;;  %v1664_v50 = vld [vmem:[%s9688_s3 + $0x1670] sm:$0xff]  ;;  %v1678_v60 = vld [vmem:[%s9688_s3 + $0x16e0] sm:$0xff] }
 0x278   : > { %4787 = vmatpush1.bf16.msra.mxu0 %v4786_v63  ;;  %v4812_v63 = vpack.c.bf16 %v1574_v62, %v1567_v61  ;;  %v1685_v61 = vld [vmem:[%s9688_s3 + $0x1718] sm:$0xff] }
 0x279   : > { %4789 = vmatprep.subr.bf16.mxu0 %v4788_v5  ;;  %5075 = vmatpush1.bf16.msra.mxu1 %v5074_v12  ;;  %v1566_v5 = vld [vmem:[%s9688_s3 + $0x1360] sm:$0xff]  ;;  %v1693_v62 = vld [vmem:[%s9688_s3 + $0x1758] sm:$0xff] }
 0x27a   : > { %5077 = vmatprep.subr.bf16.mxu1 %v5076_v13  ;;  %v4814_v12 = vpack.c.bf16 %v1573_v6, %v1566_v5  ;;  %v1580_v13 = vld [vmem:[%s9688_s3 + $0x13d0] sm:$0xff]  ;;  %v8915_v5 = vld [vmem:[%s9689_s4] sm:$0x7f] }
 0x27b   : > { %v4818_v16 = vpack.c.bf16 %v1587_v14, %v1580_v13  ;;  %v1847_v13 = vrot.slane %v8915_v5, %v6546_v1  ;;  %v1851_v14 = vrot.slane %v8915_v5, %v6554_v3 }
 0x27c   : > { %4791 = vmatpush1.bf16.msra.mxu0 %v4790_v18  ;;  %v4820_v18 = vpack.c.bf16 %v1602_v15, %v1595_v10  ;;  %v1859_v10 = vrot.slane %v8915_v5, %v599_v56  ;;  %v4850_v15 = vpack.c.bf16 %v1699_v8, %v1692_v7  ;;  %v1728_v56 = vld [vmem:[%s9688_s3 + $0x1870] sm:$0xff]  ;;  %v1755_v8 = vld [vmem:[%s9688_s3 + $0x1948] sm:$0xff] }
 0x27d   : > { %4793 = vmatprep.subr.bf16.mxu0 %v4792_v20  ;;  %5079 = vmatpush1.bf16.msra.mxu1 %v5078_v26  ;;  %v1594_v20 = vld [vmem:[%s9688_s3 + $0x1440] sm:$0xff]  ;;  %v1748_v7 = vld [vmem:[%s9688_s3 + $0x1910] sm:$0xff] }
 0x27e   : > { %5081 = vmatprep.subr.bf16.mxu1 %v5080_v28  ;;  %v4822_v26 = vpack.c.bf16 %v1601_v23, %v1594_v20  ;;  %v1608_v28 = vld [vmem:[%s9688_s3 + $0x14b0] sm:$0xff]  ;;  %v1713_v20 = vld [vmem:[%s9688_s3 + $0x17f8] sm:$0xff] }
 0x27f   : > { %v4826_v32 = vpack.c.bf16 %v1615_v29, %v1608_v28  ;;  %v3082_v29 = vld [vmem:[%s9690_s5 + $0x200] sm:$0xff] }
 0x280   : > { %4795 = vmatpush1.bf16.msra.mxu0 %v4794_v33  ;;  %v4828_v33 = vpack.c.bf16 %v1630_v31, %v1623_v30  ;;  %v3084_v30 = vld [vmem:[%s9690_s5 + $0x210] sm:$0xff] }
 0x281   : > { %4797 = vmatprep.subr.bf16.mxu0 %v4796_v34  ;;  %5083 = vmatpush1.bf16.msra.mxu1 %v5082_v37  ;;  %v1622_v34 = vld [vmem:[%s9688_s3 + $0x1520] sm:$0xff]  ;;  %v1644_v37 = vld [vmem:[%s9688_s3 + $0x15d0] sm:$0xff] }
 0x282   : > { %5085 = vmatprep.subr.bf16.mxu1 %v5084_v40  ;;  %v4830_v38 = vpack.c.bf16 %v1629_v36, %v1622_v34  ;;  %v4832_v39 = vpack.c.bf16 %v1644_v37, %v1637_v21  ;;  %v1636_v40 = vld [vmem:[%s9688_s3 + $0x1590] sm:$0xff]  ;;  %v3087_v34 = vld [vmem:[%s9690_s5 + $0x228] sm:$0xff]  ;;  %v3089_v36 = vld [vmem:[%s9690_s5 + $0x238] sm:$0xff]  ;;  %v4856_v21 = vpack.c.bf16 %v1728_v56, %v1721_v35 }
 0x283   : > { %v1720_v37 = vld [vmem:[%s9688_s3 + $0x1830] sm:$0xff]  ;;  %v1762_v35 = vld [vmem:[%s9688_s3 + $0x1980] sm:$0xff]  ;;  %v1769_v56 = vld [vmem:[%s9688_s3 + $0x19b8] sm:$0xff] }
 0x284   : > { %4799 = vmatpush1.bf16.msra.mxu0 %v4798_v43  ;;  %v1643_v43 = vld [vmem:[%s9688_s3 + $0x15c8] sm:$0xff] }
 0x285   : > { %4801 = vmatprep.subr.bf16.mxu0 %v4800_v45  ;;  %v1651_v45 = vld [vmem:[%s9688_s3 + $0x1608] sm:$0xff]  ;;  %v4834_v47 = vpack.c.bf16 %v1643_v43, %v1636_v40  ;;  %v5086_v40 = vpack.c.bf16 %v3084_v30, %v3082_v29  ;;  %v3098_v30 = vld [vmem:[%s9690_s5 + $0x280] sm:$0xff] }
 0x286   : > { %v4836_v48 = vpack.c.bf16 %v1658_v46, %v1651_v45  ;;  %v1735_v43 = vld [vmem:[%s9688_s3 + $0x18a8] sm:$0xff]  ;;  %v1742_v45 = vld [vmem:[%s9688_s3 + $0x18e0] sm:$0xff] }
 0x288   : > { %4803 = vmatpush1.bf16.msra.mxu0 %v4802_v49  ;;  %v1657_v49 = vld [vmem:[%s9688_s3 + $0x1638] sm:$0xff] }
 0x289   : > { %4805 = vmatprep.subr.bf16.mxu0 %v4804_v2  ;;  %v1665_v2 = vld [vmem:[%s9688_s3 + $0x1678] sm:$0xff] }
 0x28c   : > { %4807 = vmatpush1.bf16.msra.mxu0 %v4806_v54  ;;  %v1686_v54 = vld [vmem:[%s9688_s3 + $0x1720] sm:$0xff] }
 0x28d   : > { %4809 = vmatprep.subr.bf16.mxu0 %v4808_v55  ;;  %v4842_v55 = vpack.c.bf16 %v1671_v19, %v1664_v50  ;;  %v4844_v58 = vpack.c.bf16 %v1686_v54, %v1679_v52  ;;  %v1734_v50 = vld [vmem:[%s9688_s3 + $0x18a0] sm:$0xff]  ;;  %v1741_v19 = vld [vmem:[%s9688_s3 + $0x18d8] sm:$0xff] }
 0x28e   : > { %v1749_v54 = vld [vmem:[%s9688_s3 + $0x1918] sm:$0xff] }
 0x290   : > { %4811 = vmatpush1.bf16.msra.mxu0 %v4810_v59  ;;  %v1700_v59 = vld [vmem:[%s9688_s3 + $0x1790] sm:$0xff] }
 0x291   : > { %4813 = vmatprep.subr.bf16.mxu0 %v4812_v63  ;;  %v4846_v63 = vpack.c.bf16 %v1685_v61, %v1678_v60  ;;  %v4848_v6 = vpack.c.bf16 %v1700_v59, %v1693_v62  ;;  %v3090_v60 = vld [vmem:[%s9690_s5 + $0x240] sm:$0xff]  ;;  %v3092_v61 = vld [vmem:[%s9690_s5 + $0x250] sm:$0xff]  ;;  %v4862_v62 = vpack.c.bf16 %v1741_v19, %v1734_v50  ;;  %v3095_v59 = vld [vmem:[%s9690_s5 + $0x268] sm:$0xff] }
 0x292   : > { %v1812_v50 = vld [vmem:[%s9688_s3 + $0x1b10] sm:$0xff] }
 0x294   : > { %4815 = vmatpush1.bf16.msra.mxu0 %v4814_v12  ;;  %v1707_v12 = vld [vmem:[%s9688_s3 + $0x17c8] sm:$0xff] }
 0x295   : > { %4817 = vmatprep.subr.bf16.mxu0 %v4816_v57  ;;  %v1714_v57 = vld [vmem:[%s9688_s3 + $0x1800] sm:$0xff] }
 0x298   : > { %4819 = vmatpush1.bf16.msra.mxu0 %v4818_v16  ;;  %v4852_v16 = vpack.c.bf16 %v1714_v57, %v1707_v12  ;;  %v5094_v12 = vpack.c.bf16 %v3092_v61, %v3090_v60  ;;  %v1763_v57 = vld [vmem:[%s9688_s3 + $0x1988] sm:$0xff]  ;;  %v3113_v60 = vld [vmem:[%s9690_s5 + $0x2f8] sm:$0xff] }
 0x299   : > { %4821 = vmatprep.subr.bf16.mxu0 %v4820_v18  ;;  %v1706_v18 = vld [vmem:[%s9688_s3 + $0x17c0] sm:$0xff] }
 0x29c   : > { %4823 = vmatpush1.bf16.msra.mxu0 %v4822_v26 }
 0x29d   : > { %4825 = vmatprep.subr.bf16.mxu0 %v4824_v27 }
 0x2a0   : > { %4827 = vmatpush1.bf16.msra.mxu0 %v4826_v32 }
 0x2a1   : > { %4829 = vmatprep.subr.bf16.mxu0 %v4828_v33  ;;  %v4854_v33 = vpack.c.bf16 %v1713_v20, %v1706_v18  ;;  %v3099_v18 = vld [vmem:[%s9690_s5 + $0x288] sm:$0xff]  ;;  %v3101_v20 = vld [vmem:[%s9690_s5 + $0x298] sm:$0xff] }
 0x2a2   : > { %v5100_v29 = vpack.c.bf16 %v3101_v20, %v3099_v18  ;;  %v1825_v18 = vld [vmem:[%s9688_s3 + $0x1b78] sm:$0xff] }
 0x2a3   : > { %2654 = vmatmul.mubr.f32.vlgmr.msra.gmra.mrb[6].mxu0 %v7406_v53  ;;  %v1672_v53 = vld [vmem:[%s9688_s3 + $0x16b0] sm:$0xff] }
 0x2a4   : > { %4831 = vmatpush1.bf16.msra.mxu0 %v4830_v38  ;;  %2724 = vmatprep.mubr.f32.mxu0 %v7432_v42  ;;  %v4838_v42 = vpack.c.bf16 %v1657_v49, %v1650_v44  ;;  %v4840_v41 = vpack.c.bf16 %v1672_v53, %v1665_v2  ;;  %v1727_v38 = vld [vmem:[%s9688_s3 + $0x1868] sm:$0xff]  ;;  %v3088_v44 = vld [vmem:[%s9690_s5 + $0x230] sm:$0xff] }
 0x2a5   : > { %4833 = vmatprep.subr.bf16.mxu0 %v4832_v39  ;;  %v4858_v2 = vpack.c.bf16 %v1727_v38, %v1720_v37  ;;  %v3091_v53 = vld [vmem:[%s9690_s5 + $0x248] sm:$0xff] }
 0x2a6   : > { %v1783_v37 = vld [vmem:[%s9688_s3 + $0x1a28] sm:$0xff] }
 0x2a8   : > { %4835 = vmatpush1.bf16.msra.mxu0 %v4834_v47  ;;  %v5088_v47 = vpack.c.bf16 %v3089_v36, %v3087_v34  ;;  %v3105_v34 = vld [vmem:[%s9690_s5 + $0x2b8] sm:$0xff] }
 0x2a9   : > { %4837 = vmatprep.subr.bf16.mxu0 %v4836_v48  ;;  %v3086_v48 = vld [vmem:[%s9690_s5 + $0x220] sm:$0xff] }
 0x2aa   : > { %v5090_v52 = vpack.c.bf16 %v3088_v44, %v3086_v48  ;;  %v3107_v48 = vld [vmem:[%s9690_s5 + $0x2c8] sm:$0xff]  ;;  %v3109_v44 = vld [vmem:[%s9690_s5 + $0x2d8] sm:$0xff] }
 0x2ab   : > { %v5108_v19 = vpack.c.bf16 %v3109_v44, %v3107_v48  ;;  %v3125_v48 = vld [vmem:[%s9690_s5 + $0x358] sm:$0xff] }
 0x2ac   : > { %4839 = vmatpush1.bf16.msra.mxu0 %v4838_v42  ;;  %v3093_v42 = vld [vmem:[%s9690_s5 + $0x258] sm:$0xff] }
 0x2ad   : > { %4841 = vmatprep.subr.bf16.mxu0 %v4840_v41  ;;  %v4860_v41 = vpack.c.bf16 %v1742_v45, %v1735_v43  ;;  %v3102_v45 = vld [vmem:[%s9690_s5 + $0x2a0] sm:$0xff] }
 0x2b0   : > { %4843 = vmatpush1.bf16.msra.mxu0 %v4842_v55  ;;  %v1756_v55 = vld [vmem:[%s9688_s3 + $0x1950] sm:$0xff] }
 0x2b1   : > { %4845 = vmatprep.subr.bf16.mxu0 %v4844_v58  ;;  %v5092_v58 = vpack.c.bf16 %v3093_v42, %v3091_v53  ;;  %v1797_v53 = vld [vmem:[%s9688_s3 + $0x1a98] sm:$0xff] }
 0x2b4   : > { %4847 = vmatpush1.bf16.msra.mxu0 %v4846_v63  ;;  %v3097_v63 = vld [vmem:[%s9690_s5 + $0x278] sm:$0xff] }
 0x2b5   : > { %4849 = vmatprep.subr.bf16.mxu0 %v4848_v6  ;;  %v4864_v6 = vpack.c.bf16 %v1756_v55, %v1749_v54  ;;  %v3108_v54 = vld [vmem:[%s9690_s5 + $0x2d0] sm:$0xff] }
 0x2b6   : > { %v2158_v23 = vpop.f32.mrb[4].mxu0  ;;  %v8942_v24 = vpop.f32.mrb[4].mxu1 }
 0x2b7   : > { %v5252_v26 = vadd.f32 %v2158_v23, %v1847_v13  ;;  %v2160_v27 = vpop.f32.mrb[5].mxu0  ;;  %v2444_v28 = vpop.f32.mrb[5].mxu1  ;;  %v1770_v13 = vld [vmem:[%s9688_s3 + $0x19c0] sm:$0xff] }
 0x2b8   : > { %v5253_v31 = vadd.f32 %v2160_v27, %v1851_v14  ;;  %v5255_v32 = vadd.f32 %v2444_v28, %v1859_v10  ;;  %4851 = vmatpush1.bf16.msra.mxu0 %v4850_v15  ;;  %v5096_v14 = vpack.c.bf16 %v3097_v63, %v3095_v59  ;;  %v3094_v10 = vld [vmem:[%s9690_s5 + $0x260] sm:$0xff]  ;;  %v3096_v15 = vld [vmem:[%s9690_s5 + $0x270] sm:$0xff]  ;;  %v4868_v23 = vpack.c.bf16 %v1770_v13, %v1763_v57  ;;  %v1777_v27 = vld [vmem:[%s9688_s3 + $0x19f8] sm:$0xff] }
 0x2b9   : > { %4853 = vmatprep.subr.bf16.mxu0 %v4852_v16  ;;  %v3011_v46 = vmax.f32 %v5252_v26, 0.0  ;;  %v4866_v16 = vpack.c.bf16 %v1755_v8, %v1748_v7  ;;  %v5098_v26 = vpack.c.bf16 %v3096_v15, %v3094_v10  ;;  %v1784_v28 = vld [vmem:[%s9688_s3 + $0x1a30] sm:$0xff]  ;;  %v1811_v59 = vld [vmem:[%s9688_s3 + $0x1b08] sm:$0xff]  ;;  %v1826_v7 = vld [vmem:[%s9688_s3 + $0x1b80] sm:$0xff] }
 0x2ba   : > { %v3012_v39 = vmax.f32 %v5253_v31, 0.0  ;;  %v3014_v49 = vmax.f32 %v5255_v32, 0.0  ;;  %v3100_v31 = vld [vmem:[%s9690_s5 + $0x290] sm:$0xff]  ;;  %v4870_v32 = vpack.c.bf16 %v1769_v56, %v1762_v35  ;;  %v4872_v36 = vpack.c.bf16 %v1784_v28, %v1777_v27  ;;  %v3117_v10 = vld [vmem:[%s9690_s5 + $0x318] sm:$0xff]  ;;  %v3114_v27 = vld [vmem:[%s9690_s5 + $0x300] sm:$0xff] }
 0x2bb   : > { %v5102_v38 = vpack.c.bf16 %v3100_v31, %v3098_v30  ;;  %v3112_v57 = vld [vmem:[%s9690_s5 + $0x2f0] sm:$0xff]  ;;  %v3119_v31 = vld [vmem:[%s9690_s5 + $0x328] sm:$0xff] }
 0x2bc   : > { %4855 = vmatpush1.bf16.msra.mxu0 %v4854_v33  ;;  %3298 = vmatprep.mubr.f32.mxu1 %v3012_v39  ;;  %v3103_v33 = vld [vmem:[%s9690_s5 + $0x2a8] sm:$0xff]  ;;  %v1840_v35 = vld [vmem:[%s9688_s3 + $0x1bf0] sm:$0xff] }
 0x2bd   : > { %3299 = vmatmul.mubr.f32.vlgmr.msra.gmra.mrb[12].mxu1 %v3011_v46  ;;  %4857 = vmatprep.subr.bf16.mxu0 %v4856_v21  ;;  %v1776_v21 = vld [vmem:[%s9688_s3 + $0x19f0] sm:$0xff]  ;;  %v1791_v39 = vld [vmem:[%s9688_s3 + $0x1a68] sm:$0xff]  ;;  %v5104_v43 = vpack.c.bf16 %v3105_v34, %v3103_v33 }
 0x2be   : > { %5087 = vmatpush1.bf16.msra.mxu1 %v5086_v40  ;;  %3369 = vmatprep.mubr.f32.mxu1 %v3014_v49  ;;  %v1798_v40 = vld [vmem:[%s9688_s3 + $0x1aa0] sm:$0xff]  ;;  %v3104_v46 = vld [vmem:[%s9690_s5 + $0x2b0] sm:$0xff] }
 0x2bf   : > { %5089 = vmatprep.subr.bf16.mxu1 %v5088_v47  ;;  %v4874_v47 = vpack.c.bf16 %v1783_v37, %v1776_v21  ;;  %v4876_v49 = vpack.c.bf16 %v1798_v40, %v1791_v39  ;;  %v5106_v42 = vpack.c.bf16 %v3104_v46, %v3102_v45  ;;  %v3116_v28 = vld [vmem:[%s9690_s5 + $0x310] sm:$0xff]  ;;  %v1839_v21 = vld [vmem:[%s9688_s3 + $0x1be8] sm:$0xff] }
 0x2c0   : > { %4859 = vmatpush1.bf16.msra.mxu0 %v4858_v2  ;;  %v1790_v2 = vld [vmem:[%s9688_s3 + $0x1a60] sm:$0xff]  ;;  %v5118_v37 = vpack.c.bf16 %v3116_v28, %v3114_v27  ;;  %v1071_v39 = vld [vmem:[%s9688_s3 + $0x3e8] sm:$0xff]  ;;  %v3120_v45 = vld [vmem:[%s9690_s5 + $0x330] sm:$0xff] }
 0x2c1   : > { %4861 = vmatprep.subr.bf16.mxu0 %v4860_v41  ;;  %v1805_v41 = vld [vmem:[%s9688_s3 + $0x1ad8] sm:$0xff]  ;;  %v4878_v55 = vpack.c.bf16 %v1797_v53, %v1790_v2  ;;  %v959_v2 = vld [vmem:[%s9688_s3 + $0x68] sm:$0xff] }
 0x2c2   : > { %5091 = vmatpush1.bf16.msra.mxu1 %v5090_v52  ;;  %v3106_v52 = vld [vmem:[%s9690_s5 + $0x2c0] sm:$0xff]  ;;  %v4880_v61 = vpack.c.bf16 %v1812_v50, %v1805_v41  ;;  %v1085_v41 = vld [vmem:[%s9688_s3 + $0x458] sm:$0xff] }
 0x2c3   : > { %5093 = vmatprep.subr.bf16.mxu1 %v5092_v58  ;;  %v3111_v58 = vld [vmem:[%s9690_s5 + $0x2e8] sm:$0xff]  ;;  %v5110_v63 = vpack.c.bf16 %v3108_v54, %v3106_v52  ;;  %v3124_v52 = vld [vmem:[%s9690_s5 + $0x350] sm:$0xff]  ;;  %v3137_v27 = vld [vmem:[%s9690_s5 + $0x3b8] sm:$0xff] }
 0x2c4   : > { %4863 = vmatpush1.bf16.msra.mxu0 %v4862_v62  ;;  %v1804_v62 = vld [vmem:[%s9688_s3 + $0x1ad0] sm:$0xff]  ;;  %v5112_v8 = vpack.c.bf16 %v3113_v60, %v3111_v58  ;;  %v3129_v58 = vld [vmem:[%s9690_s5 + $0x378] sm:$0xff] }
 0x2c5   : > { %4865 = vmatprep.subr.bf16.mxu0 %v4864_v6  ;;  %v1819_v6 = vld [vmem:[%s9688_s3 + $0x1b48] sm:$0xff]  ;;  %v4882_v13 = vpack.c.bf16 %v1811_v59, %v1804_v62  ;;  %v973_v62 = vld [vmem:[%s9688_s3 + $0xd8] sm:$0xff] }
 0x2c6   : > { %5095 = vmatpush1.bf16.msra.mxu1 %v5094_v12  ;;  %v3110_v12 = vld [vmem:[%s9690_s5 + $0x2e0] sm:$0xff]  ;;  %v4884_v15 = vpack.c.bf16 %v1826_v7, %v1819_v6  ;;  %v1099_v6 = vld [vmem:[%s9688_s3 + $0x4c8] sm:$0xff] }
 0x2c7   : > { %5097 = vmatprep.subr.bf16.mxu1 %v5096_v14  ;;  %v3115_v14 = vld [vmem:[%s9690_s5 + $0x308] sm:$0xff]  ;;  %v5114_v20 = vpack.c.bf16 %v3112_v57, %v3110_v12  ;;  %v3128_v12 = vld [vmem:[%s9690_s5 + $0x370] sm:$0xff] }
 0x2c8   : > { %4867 = vmatpush1.bf16.msra.mxu0 %v4866_v16  ;;  %v1818_v16 = vld [vmem:[%s9688_s3 + $0x1b40] sm:$0xff] }
 0x2c9   : > { %4869 = vmatprep.subr.bf16.mxu0 %v4868_v23  ;;  %v1833_v23 = vld [vmem:[%s9688_s3 + $0x1bb8] sm:$0xff]  ;;  %v4886_v30 = vpack.c.bf16 %v1825_v18, %v1818_v16  ;;  %v1106_v16 = vld [vmem:[%s9688_s3 + $0x500] sm:$0xff] }
 0x2ca   : > { %5099 = vmatpush1.bf16.msra.mxu1 %v5098_v26  ;;  %v5116_v26 = vpack.c.bf16 %v3117_v10, %v3115_v14  ;;  %v4888_v34 = vpack.c.bf16 %v1840_v35, %v1833_v23  ;;  %v980_v10 = vld [vmem:[%s9688_s3 + $0x110] sm:$0xff]  ;;  %v1113_v18 = vld [vmem:[%s9688_s3 + $0x538] sm:$0xff]  ;;  %v3130_v23 = vld [vmem:[%s9690_s5 + $0x380] sm:$0xff] }
 0x2cb   : > { %5101 = vmatprep.subr.bf16.mxu1 %v5100_v29  ;;  %v3132_v35 = vld [vmem:[%s9690_s5 + $0x390] sm:$0xff]  ;;  %v4904_v28 = vpack.c.bf16 %v1113_v18, %v1106_v16  ;;  %v3146_v16 = vld [vmem:[%s9690_s5 + $0x400] sm:$0xff] }
 0x2cc   : > { %4871 = vmatpush1.bf16.msra.mxu0 %v4870_v32  ;;  %v3121_v32 = vld [vmem:[%s9690_s5 + $0x338] sm:$0xff]  ;;  %v3148_v18 = vld [vmem:[%s9690_s5 + $0x410] sm:$0xff] }
 0x2cd   : > { %4873 = vmatprep.subr.bf16.mxu0 %v4872_v36  ;;  %v1832_v36 = vld [vmem:[%s9688_s3 + $0x1bb0] sm:$0xff]  ;;  %v5120_v40 = vpack.c.bf16 %v3121_v32, %v3119_v31  ;;  %v5134_v31 = vpack.c.bf16 %v3132_v35, %v3130_v23  ;;  %v3151_v35 = vld [vmem:[%s9690_s5 + $0x428] sm:$0xff] }
 0x2ce   : > { %5103 = vmatpush1.bf16.msra.mxu1 %v5102_v38  ;;  %v1064_v38 = vld [vmem:[%s9688_s3 + $0x3b0] sm:$0xff]  ;;  %v4890_v46 = vpack.c.bf16 %v1839_v21, %v1832_v36  ;;  %v3134_v21 = vld [vmem:[%s9690_s5 + $0x3a0] sm:$0xff] }
 0x2cf   : > { %5105 = vmatprep.subr.bf16.mxu1 %v5104_v43  ;;  %v3118_v43 = vld [vmem:[%s9690_s5 + $0x320] sm:$0xff]  ;;  %v4892_v44 = vpack.c.bf16 %v1071_v39, %v1064_v38  ;;  %v1120_v32 = vld [vmem:[%s9688_s3 + $0x570] sm:$0xff]  ;;  %v3139_v39 = vld [vmem:[%s9690_s5 + $0x3c8] sm:$0xff] }
 0x2d0   : > { %4875 = vmatpush1.bf16.msra.mxu0 %v4874_v47  ;;  %v3123_v47 = vld [vmem:[%s9690_s5 + $0x348] sm:$0xff]  ;;  %v5122_v53 = vpack.c.bf16 %v3120_v45, %v3118_v43  ;;  %v1008_v45 = vld [vmem:[%s9688_s3 + $0x1f0] sm:$0xff] }
 0x2d1   : > { %4877 = vmatprep.subr.bf16.mxu0 %v4876_v49  ;;  %v952_v49 = vld [vmem:[%s9688_s3 + $0x30] sm:$0xff]  ;;  %v5124_v50 = vpack.c.bf16 %v3125_v48, %v3123_v47  ;;  %v1134_v48 = vld [vmem:[%s9688_s3 + $0x5e0] sm:$0xff] }
 0x2d2   : > { %5107 = vmatpush1.bf16.msra.mxu1 %v5106_v42  ;;  %v1078_v42 = vld [vmem:[%s9688_s3 + $0x420] sm:$0xff]  ;;  %v4894_v54 = vpack.c.bf16 %v959_v2, %v952_v49 }
 0x2d3   : > { %5109 = vmatprep.subr.bf16.mxu1 %v5108_v19  ;;  %v3122_v19 = vld [vmem:[%s9690_s5 + $0x340] sm:$0xff]  ;;  %v4896_v60 = vpack.c.bf16 %v1085_v41, %v1078_v42  ;;  %v3143_v41 = vld [vmem:[%s9690_s5 + $0x3e8] sm:$0xff] }
 0x2d4   : > { %4879 = vmatpush1.bf16.msra.mxu0 %v4878_v55  ;;  %v3127_v55 = vld [vmem:[%s9690_s5 + $0x368] sm:$0xff]  ;;  %v5126_v59 = vpack.c.bf16 %v3124_v52, %v3122_v19  ;;  %v3138_v2 = vld [vmem:[%s9690_s5 + $0x3c0] sm:$0xff] }
 0x2d5   : > { %4881 = vmatprep.subr.bf16.mxu0 %v4880_v61  ;;  %v966_v61 = vld [vmem:[%s9688_s3 + $0xa0] sm:$0xff]  ;;  %v5128_v7 = vpack.c.bf16 %v3129_v58, %v3127_v55  ;;  %v1148_v58 = vld [vmem:[%s9688_s3 + $0x650] sm:$0xff] }
 0x2d6   : > { %5111 = vmatpush1.bf16.msra.mxu1 %v5110_v63  ;;  %v1092_v63 = vld [vmem:[%s9688_s3 + $0x490] sm:$0xff]  ;;  %v4898_v57 = vpack.c.bf16 %v973_v62, %v966_v61  ;;  %v1022_v52 = vld [vmem:[%s9688_s3 + $0x260] sm:$0xff]  ;;  %v1855_v61 = vrot.slane %v8915_v5, %v595_v9  ;;  %v3149_v9 = vld [vmem:[%s9690_s5 + $0x418] sm:$0xff] }
 0x2d7   : > { %v3776_v56 = vpop.f32.mrb[6].mxu1  ;;  %5113 = vmatprep.subr.bf16.mxu1 %v5112_v8  ;;  %v3126_v8 = vld [vmem:[%s9690_s5 + $0x360] sm:$0xff]  ;;  %v4900_v14 = vpack.c.bf16 %v1099_v6, %v1092_v63  ;;  %v3144_v63 = vld [vmem:[%s9690_s5 + $0x3f0] sm:$0xff] }
 0x2d8   : > { %v3777_v29 = vpop.f32.mrb[7].mxu1  ;;  %4883 = vmatpush1.bf16.msra.mxu0 %v4882_v13  ;;  %v3131_v13 = vld [vmem:[%s9690_s5 + $0x388] sm:$0xff] }
 0x2d9   : > { %v9154_v33 = vadd.f32 %v3777_v29, %v3776_v56  ;;  %4885 = vmatprep.subr.bf16.mxu0 %v4884_v15  ;;  %v987_v15 = vld [vmem:[%s9688_s3 + $0x148] sm:$0xff]  ;;  %v994_v29 = vld [vmem:[%s9688_s3 + $0x180] sm:$0xff] }
 0x2da   : > { %5115 = vmatpush1.bf16.msra.mxu1 %v5114_v20  ;;  %v4902_v56 = vpack.c.bf16 %v987_v15, %v980_v10  ;;  %v5254_v10 = vadd.f32 %v8942_v24, %v1855_v61  ;;  %v3153_v24 = vld [vmem:[%s9690_s5 + $0x438] sm:$0xff]  ;;  %v3171_v61 = vld [vmem:[%s9690_s5 + $0x4c8] sm:$0xff] }
 0x2db   : > { %5117 = vmatprep.subr.bf16.mxu1 %v5116_v26  ;;  %v3135_v26 = vld [vmem:[%s9690_s5 + $0x3a8] sm:$0xff] }
 0x2dc   : > { %4887 = vmatpush1.bf16.msra.mxu0 %v4886_v30  ;;  %v1001_v30 = vld [vmem:[%s9688_s3 + $0x1b8] sm:$0xff]  ;;  %v5136_v36 = vpack.c.bf16 %v3137_v27, %v3135_v26  ;;  %v1050_v27 = vld [vmem:[%s9688_s3 + $0x340] sm:$0xff] }
 0x2dd   : > { %4889 = vmatprep.subr.bf16.mxu0 %v4888_v34  ;;  %v1127_v34 = vld [vmem:[%s9688_s3 + $0x5a8] sm:$0xff]  ;;  %v4906_v38 = vpack.c.bf16 %v1001_v30, %v994_v29  ;;  %v5150_v29 = vpack.c.bf16 %v3148_v18, %v3146_v16  ;;  %v3013_v30 = vmax.f32 %v5254_v10, 0.0  ;;  %v3181_v10 = vld [vmem:[%s9690_s5 + $0x518] sm:$0xff]  ;;  %v3178_v18 = vld [vmem:[%s9690_s5 + $0x500] sm:$0xff] }
 0x2de   : > { %5119 = vmatpush1.bf16.msra.mxu1 %v5118_v37  ;;  %v3136_v37 = vld [vmem:[%s9690_s5 + $0x3b0] sm:$0xff]  ;;  %v4908_v43 = vpack.c.bf16 %v1127_v34, %v1120_v32  ;;  %v3150_v32 = vld [vmem:[%s9690_s5 + $0x420] sm:$0xff] }
 0x2df   : > { %5121 = vmatprep.subr.bf16.mxu1 %v5120_v40  ;;  %v3141_v40 = vld [vmem:[%s9690_s5 + $0x3d8] sm:$0xff]  ;;  %v5138_v47 = vpack.c.bf16 %v3136_v37, %v3134_v21  ;;  %v3152_v34 = vld [vmem:[%s9690_s5 + $0x430] sm:$0xff]  ;;  %v3155_v21 = vld [vmem:[%s9690_s5 + $0x448] sm:$0xff] }
 0x2e0   : > { %4891 = vmatpush1.bf16.msra.mxu0 %v4890_v46  ;;  %v1015_v46 = vld [vmem:[%s9688_s3 + $0x228] sm:$0xff]  ;;  %v5140_v49 = vpack.c.bf16 %v3141_v40, %v3139_v39  ;;  %v3157_v37 = vld [vmem:[%s9690_s5 + $0x458] sm:$0xff]  ;;  %v3154_v40 = vld [vmem:[%s9690_s5 + $0x440] sm:$0xff] }
 0x2e1   : > { %4893 = vmatprep.subr.bf16.mxu0 %v4892_v44  ;;  %v1141_v44 = vld [vmem:[%s9688_s3 + $0x618] sm:$0xff]  ;;  %v4910_v42 = vpack.c.bf16 %v1015_v46, %v1008_v45  ;;  %v5156_v39 = vpack.c.bf16 %v3157_v37, %v3155_v21  ;;  %v3159_v45 = vld [vmem:[%s9690_s5 + $0x468] sm:$0xff]  ;;  %v3186_v21 = vld [vmem:[%s9690_s5 + $0x540] sm:$0xff] }
 0x2e2   : > { %5123 = vmatpush1.bf16.msra.mxu1 %v5122_v53  ;;  %v3140_v53 = vld [vmem:[%s9690_s5 + $0x3d0] sm:$0xff]  ;;  %v4912_v19 = vpack.c.bf16 %v1141_v44, %v1134_v48  ;;  %v3161_v46 = vld [vmem:[%s9690_s5 + $0x478] sm:$0xff]  ;;  %v3158_v44 = vld [vmem:[%s9690_s5 + $0x460] sm:$0xff] }
 0x2e3   : > { %2725 = vmatmul.mubr.f32.vlgmr.msra.gmra.mrb[6].mxu0 %v7794_v51  ;;  %5125 = vmatprep.subr.bf16.mxu1 %v5124_v50  ;;  %v3133_v51 = vld [vmem:[%s9690_s5 + $0x398] sm:$0xff]  ;;  %v5142_v55 = vpack.c.bf16 %v3140_v53, %v3138_v2  ;;  %v5160_v48 = vpack.c.bf16 %v3161_v46, %v3159_v45  ;;  %v3163_v2 = vld [vmem:[%s9690_s5 + $0x488] sm:$0xff]  ;;  %v3188_v37 = vld [vmem:[%s9690_s5 + $0x550] sm:$0xff] }
 0x2e4   : > { %4895 = vmatpush3.bf16.msra.mxu0 %v4894_v54  ;;  %2795 = vmatprep.mubr.f32.mxu0 %v6584_v17  ;;  %v5130_v17 = vpack.c.bf16 %v3128_v12, %v3126_v8  ;;  %v5132_v20 = vpack.c.bf16 %v3133_v51, %v3131_v13  ;;  %v3145_v50 = vld [vmem:[%s9690_s5 + $0x3f8] sm:$0xff]  ;;  %v1036_v12 = vld [vmem:[%s9688_s3 + $0x2d0] sm:$0xff]  ;;  %v1162_v51 = vld [vmem:[%s9688_s3 + $0x6c0] sm:$0xff] }
 0x2e5   : > { %4897 = vmatprep.subr.bf16.mxu0 %v4896_v60  ;;  %v1029_v54 = vld [vmem:[%s9688_s3 + $0x298] sm:$0xff]  ;;  %v1155_v60 = vld [vmem:[%s9688_s3 + $0x688] sm:$0xff]  ;;  %v5144_v62 = vpack.c.bf16 %v3145_v50, %v3143_v41  ;;  %v3162_v41 = vld [vmem:[%s9690_s5 + $0x480] sm:$0xff] }
 0x2e6   : > { %5127 = vmatpush1.bf16.msra.mxu1 %v5126_v59  ;;  %v3142_v59 = vld [vmem:[%s9690_s5 + $0x3e0] sm:$0xff]  ;;  %v4914_v6 = vpack.c.bf16 %v1029_v54, %v1022_v52  ;;  %v4916_v8 = vpack.c.bf16 %v1155_v60, %v1148_v58  ;;  %v3165_v53 = vld [vmem:[%s9690_s5 + $0x498] sm:$0xff]  ;;  %v3164_v50 = vld [vmem:[%s9690_s5 + $0x490] sm:$0xff] }
 0x2e7   : > { %5129 = vmatprep.subr.bf16.mxu1 %v5128_v7  ;;  %v3147_v7 = vld [vmem:[%s9690_s5 + $0x408] sm:$0xff]  ;;  %v5146_v13 = vpack.c.bf16 %v3144_v63, %v3142_v59  ;;  %v3169_v52 = vld [vmem:[%s9690_s5 + $0x4b8] sm:$0xff]  ;;  %v5166_v54 = vpack.c.bf16 %v3164_v50, %v3162_v41  ;;  %v3166_v58 = vld [vmem:[%s9690_s5 + $0x4a0] sm:$0xff] }
 0x2e8   : > { %4899 = vmatpush3.bf16.msra.mxu0 %v4898_v57  ;;  %v1043_v57 = vld [vmem:[%s9688_s3 + $0x308] sm:$0xff]  ;;  %v3168_v60 = vld [vmem:[%s9690_s5 + $0x4b0] sm:$0xff]  ;;  %v3190_v45 = vld [vmem:[%s9690_s5 + $0x560] sm:$0xff] }
 0x2e9   : > { %4901 = vmatprep.subr.bf16.mxu0 %v4900_v14  ;;  %v1169_v14 = vld [vmem:[%s9688_s3 + $0x6f8] sm:$0xff]  ;;  %v4918_v23 = vpack.c.bf16 %v1043_v57, %v1036_v12  ;;  %v5170_v59 = vpack.c.bf16 %v3168_v60, %v3166_v58  ;;  %v3192_v46 = vld [vmem:[%s9690_s5 + $0x570] sm:$0xff] }
 0x2ea   : > { %5131 = vmatpush1.bf16.msra.mxu1 %v5130_v17  ;;  %v5148_v17 = vpack.c.bf16 %v3149_v9, %v3147_v7  ;;  %v4920_v26 = vpack.c.bf16 %v1169_v14, %v1162_v51  ;;  %v3172_v7 = vld [vmem:[%s9690_s5 + $0x4d0] sm:$0xff]  ;;  %v3175_v9 = vld [vmem:[%s9690_s5 + $0x4e8] sm:$0xff] }
 0x2eb   : > { %5133 = vmatprep.subr.bf16.mxu1 %v5132_v20  ;;  %v3176_v51 = vld [vmem:[%s9690_s5 + $0x4f0] sm:$0xff]  ;;  %v3179_v14 = vld [vmem:[%s9690_s5 + $0x508] sm:$0xff] }
 0x2ec   : > { %4903 = vmatpush3.bf16.msra.mxu0 %v4902_v56  ;;  %v5180_v16 = vpack.c.bf16 %v3181_v10, %v3179_v14  ;;  %v3536_v14 = vld [vmem:[%s9692_s7 + $0x80] sm:$0xff]  ;;  %v3537_v10 = vld [vmem:[%s9692_s7 + $0x88] sm:$0xff] }
 0x2ed   : > { %4905 = vmatprep.subr.bf16.mxu0 %v4904_v28  ;;  %v1057_v28 = vld [vmem:[%s9688_s3 + $0x378] sm:$0xff] }
 0x2ee   : > { %5135 = vmatpush1.bf16.msra.mxu1 %v5134_v31  ;;  %v5152_v31 = vpack.c.bf16 %v3153_v24, %v3151_v35  ;;  %v3183_v35 = vld [vmem:[%s9690_s5 + $0x528] sm:$0xff]  ;;  %v3185_v24 = vld [vmem:[%s9690_s5 + $0x538] sm:$0xff] }
 0x2ef   : > { %5137 = vmatprep.subr.bf16.mxu1 %v5136_v36  ;;  %v4922_v36 = vpack.c.bf16 %v1057_v28, %v1050_v27  ;;  %v5184_v28 = vpack.c.bf16 %v3185_v24, %v3183_v35  ;;  %v3522_v24 = vld [vmem:[%s9692_s7 + $0x10] sm:$0xff] }
 0x2f0   : > { %4907 = vmatpush3.bf16.msra.mxu0 %v4906_v38  ;;  %v5154_v38 = vpack.c.bf16 %v3152_v34, %v3150_v32  ;;  %v3189_v32 = vld [vmem:[%s9690_s5 + $0x558] sm:$0xff] }
 0x2f1   : > { %4909 = vmatprep.subr.bf16.mxu0 %v4908_v43  ;;  %v3156_v43 = vld [vmem:[%s9690_s5 + $0x450] sm:$0xff] }
 0x2f2   : > { %5139 = vmatpush1.bf16.msra.mxu1 %v5138_v47  ;;  %v5158_v47 = vpack.c.bf16 %v3156_v43, %v3154_v40  ;;  %v5190_v40 = vpack.c.bf16 %v3188_v37, %v3186_v21  ;;  %v3543_v21 = vld [vmem:[%s9692_s7 + $0xb8] sm:$0xff] }
 0x2f3   : > { %5141 = vmatprep.subr.bf16.mxu1 %v5140_v49  ;;  %v3160_v49 = vld [vmem:[%s9690_s5 + $0x470] sm:$0xff] }
 0x2f4   : > { %4911 = vmatpush3.bf16.msra.mxu0 %v4910_v42  ;;  %v5164_v42 = vpack.c.bf16 %v3165_v53, %v3163_v2  ;;  %v3194_v2 = vld [vmem:[%s9690_s5 + $0x580] sm:$0xff]  ;;  %v3196_v53 = vld [vmem:[%s9690_s5 + $0x590] sm:$0xff] }
 0x2f5   : > { %4913 = vmatprep.subr.bf16.mxu0 %v4912_v19  ;;  %v3167_v19 = vld [vmem:[%s9690_s5 + $0x4a8] sm:$0xff]  ;;  %v5198_v41 = vpack.c.bf16 %v3196_v53, %v3194_v2  ;;  %v3547_v2 = vld [vmem:[%s9692_s7 + $0xd8] sm:$0xff] }
 0x2f6   : > { %5143 = vmatpush1.bf16.msra.mxu1 %v5142_v55  ;;  %v5168_v55 = vpack.c.bf16 %v3169_v52, %v3167_v19  ;;  %v3198_v19 = vld [vmem:[%s9690_s5 + $0x5a0] sm:$0xff]  ;;  %v3200_v52 = vld [vmem:[%s9690_s5 + $0x5b0] sm:$0xff] }
 0x2f7   : > { %v3811_v15 = vpop.f32.mrb[8].mxu1  ;;  %5145 = vmatprep.subr.bf16.mxu1 %v5144_v62  ;;  %v3173_v62 = vld [vmem:[%s9690_s5 + $0x4d8] sm:$0xff]  ;;  %v5202_v58 = vpack.c.bf16 %v3200_v52, %v3198_v19  ;;  %v3549_v19 = vld [vmem:[%s9692_s7 + $0xe8] sm:$0xff] }
 0x2f8   : > { %v3812_v20 = vpop.f32.mrb[9].mxu1  ;;  %4915 = vmatpush3.bf16.msra.mxu0 %v4914_v6  ;;  %v5172_v63 = vpack.c.bf16 %v3173_v62, %v3171_v61  ;;  %v3170_v6 = vld [vmem:[%s9690_s5 + $0x4c0] sm:$0xff]  ;;  %v3204_v62 = vld [vmem:[%s9690_s5 + $0x5d0] sm:$0xff] }
 0x2f9   : > { %v9354_v56 = vadd.f32 %v3812_v20, %v3811_v15  ;;  %4917 = vmatprep.subr.bf16.mxu0 %v4916_v8  ;;  %v3177_v8 = vld [vmem:[%s9690_s5 + $0x4f8] sm:$0xff]  ;;  %v5174_v12 = vpack.c.bf16 %v3172_v7, %v3170_v6  ;;  %v3180_v20 = vld [vmem:[%s9690_s5 + $0x510] sm:$0xff]  ;;  %v3202_v61 = vld [vmem:[%s9690_s5 + $0x5c0] sm:$0xff] }
 0x2fa   : > { %5147 = vmatpush1.bf16.msra.mxu1 %v5146_v13  ;;  %v5176_v57 = vpack.c.bf16 %v3177_v8, %v3175_v9  ;;  %v3174_v13 = vld [vmem:[%s9690_s5 + $0x4e0] sm:$0xff]  ;;  %v5182_v27 = vpack.c.bf16 %v3180_v20, %v3178_v18  ;;  %v3209_v6 = vld [vmem:[%s9690_s5 + $0x5f8] sm:$0xff]  ;;  %v3208_v8 = vld [vmem:[%s9690_s5 + $0x5f0] sm:$0xff] }
 0x2fb   : > { %5149 = vmatprep.subr.bf16.mxu1 %v5148_v17  ;;  %v5178_v15 = vpack.c.bf16 %v3176_v51, %v3174_v13  ;;  %v3206_v9 = vld [vmem:[%s9690_s5 + $0x5e0] sm:$0xff]  ;;  %v3213_v13 = vld [vmem:[%s9690_s5 + $0x618] sm:$0xff]  ;;  %v3538_v18 = vld [vmem:[%s9692_s7 + $0x90] sm:$0xff] }
 0x2fc   : > { %4919 = vmatpush3.bf16.msra.mxu0 %v4918_v23  ;;  %v3539_v20 = vld [vmem:[%s9692_s7 + $0x98] sm:$0xff] }
 0x2fd   : > { %3370 = vmatmul.mubr.f32.vlgmr.msra.gmra.mrb[12].mxu1 %v3013_v30  ;;  %4921 = vmatprep.subr.bf16.mxu0 %v4920_v26  ;;  %v3184_v30 = vld [vmem:[%s9690_s5 + $0x530] sm:$0xff]  ;;  %v5224_v35 = vpack.c.bf16 %v3539_v20, %v3538_v18 }
 0x2fe   : > { %5151 = vmatpush1.bf16.msra.mxu1 %v5150_v29  ;;  %v3182_v29 = vld [vmem:[%s9690_s5 + $0x520] sm:$0xff] }
 0x2ff   : > { %5153 = vmatprep.subr.bf16.mxu1 %v5152_v31  ;;  %v3187_v31 = vld [vmem:[%s9690_s5 + $0x548] sm:$0xff]  ;;  %v5186_v34 = vpack.c.bf16 %v3184_v30, %v3182_v29 }
 0x300   : > { %4923 = vmatpush3.bf16.msra.mxu0 %v4922_v36  ;;  %v5188_v36 = vpack.c.bf16 %v3189_v32, %v3187_v31  ;;  %v3541_v29 = vld [vmem:[%s9692_s7 + $0xa8] sm:$0xff]  ;;  %v3524_v32 = vld [vmem:[%s9692_s7 + $0x20] sm:$0xff] }
 0x302   : > { %5155 = vmatpush1.bf16.msra.mxu1 %v5154_v38  ;;  %v3191_v38 = vld [vmem:[%s9690_s5 + $0x568] sm:$0xff] }
 0x303   : > { %2796 = vmatmul.mubr.f32.vlgmr.msra.gmra.mrb[8].mxu0 %v6592_v22  ;;  %5157 = vmatprep.subr.bf16.mxu1 %v5156_v39  ;;  %v5162_v22 = vpack.c.bf16 %v3160_v49, %v3158_v44  ;;  %v3193_v39 = vld [vmem:[%s9690_s5 + $0x578] sm:$0xff]  ;;  %v5194_v44 = vpack.c.bf16 %v3192_v46, %v3190_v45  ;;  %v3545_v45 = vld [vmem:[%s9692_s7 + $0xc8] sm:$0xff] }
 0x304   : > { %v5192_v43 = vpack.c.bf16 %v3193_v39, %v3191_v38  ;;  %v3526_v39 = vld [vmem:[%s9692_s7 + $0x30] sm:$0xff] }
 0x306   : > { %5159 = vmatpush1.bf16.msra.mxu1 %v5158_v47  ;;  %v3195_v47 = vld [vmem:[%s9690_s5 + $0x588] sm:$0xff] }
 0x307   : > { %5161 = vmatprep.subr.bf16.mxu1 %v5160_v48  ;;  %v3197_v48 = vld [vmem:[%s9690_s5 + $0x598] sm:$0xff] }
 0x308   : > { %v5196_v49 = vpack.c.bf16 %v3197_v48, %v3195_v47  ;;  %v3528_v48 = vld [vmem:[%s9692_s7 + $0x40] sm:$0xff] }
 0x30a   : > { %5163 = vmatpush1.bf16.msra.mxu1 %v5162_v22  ;;  %v3199_v22 = vld [vmem:[%s9690_s5 + $0x5a8] sm:$0xff] }
 0x30b   : > { %5165 = vmatprep.subr.bf16.mxu1 %v5164_v42  ;;  %v3201_v42 = vld [vmem:[%s9690_s5 + $0x5b8] sm:$0xff] }
 0x30c   : > { %v5200_v50 = vpack.c.bf16 %v3201_v42, %v3199_v22  ;;  %v3530_v42 = vld [vmem:[%s9692_s7 + $0x50] sm:$0xff] }
 0x30e   : > { %5167 = vmatpush1.bf16.msra.mxu1 %v5166_v54  ;;  %v3203_v54 = vld [vmem:[%s9690_s5 + $0x5c8] sm:$0xff] }
 0x30f   : > { %5169 = vmatprep.subr.bf16.mxu1 %v5168_v55  ;;  %v3205_v55 = vld [vmem:[%s9690_s5 + $0x5d8] sm:$0xff] }
 0x310   : > { %v5204_v60 = vpack.c.bf16 %v3205_v55, %v3203_v54  ;;  %v1863_v55 = vrot.slane %v8915_v5, %v603_v4  ;;  %v3215_v4 = vld [vmem:[%s9690_s5 + $0x628] sm:$0xff] }
 0x312   : > { %5171 = vmatpush1.bf16.msra.mxu1 %v5170_v59  ;;  %v5206_v59 = vpack.c.bf16 %v3204_v62, %v3202_v61 }
 0x313   : > { %5173 = vmatprep.subr.bf16.mxu1 %v5172_v63  ;;  %v3207_v63 = vld [vmem:[%s9690_s5 + $0x5e8] sm:$0xff] }
 0x314   : > { %v5208_v7 = vpack.c.bf16 %v3209_v6, %v3207_v63  ;;  %v3212_v63 = vld [vmem:[%s9690_s5 + $0x610] sm:$0xff] }
 0x316   : > { %5175 = vmatpush1.bf16.msra.mxu1 %v5174_v12  ;;  %v5210_v12 = vpack.c.bf16 %v3208_v8, %v3206_v9 }
 0x317   : > { %v3846_v17 = vpop.f32.mrb[10].mxu1  ;;  %5177 = vmatprep.subr.bf16.mxu1 %v5176_v57  ;;  %v3211_v57 = vld [vmem:[%s9690_s5 + $0x608] sm:$0xff] }
 0x318   : > { %v3847_v23 = vpop.f32.mrb[11].mxu1  ;;  %v5212_v51 = vpack.c.bf16 %v3213_v13, %v3211_v57  ;;  %v3216_v57 = vld [vmem:[%s9690_s5 + $0x630] sm:$0xff] }
 0x319   : > { %v9459_v26 = vadd.f32 %v3847_v23, %v3846_v17  ;;  %v5220_v17 = vpack.c.bf16 %v3537_v10, %v3536_v14  ;;  %v5294_v10 = vld [vmem:[%s9689_s4] sm:$0x7f] }
 0x31a   : > { %5179 = vmatpush1.bf16.msra.mxu1 %v5178_v15  ;;  %v3520_v15 = vld [vmem:[%s9692_s7] sm:$0xff] }
 0x31b   : > { %5181 = vmatprep.subr.bf16.mxu1 %v5180_v16  ;;  %v3521_v16 = vld [vmem:[%s9692_s7 + $0x8] sm:$0xff]  ;;  %5221 = vmatprep.subr.bf16.mxu0 %v5220_v17 }
 0x31c   : > { %v5222_v23 = vpack.c.bf16 %v3521_v16, %v3520_v15  ;;  %v1871_v15 = vrot.slane %v5294_v10, %v611_v11 }
 0x31e   : > { %5183 = vmatpush1.bf16.msra.mxu1 %v5182_v27  ;;  %v3523_v27 = vld [vmem:[%s9692_s7 + $0x18] sm:$0xff]  ;;  %5223 = vmatpush3.bf16.msra.mxu0 %v5222_v23 }
 0x31f   : > { %5185 = vmatprep.subr.bf16.mxu1 %v5184_v28  ;;  %v3540_v28 = vld [vmem:[%s9692_s7 + $0xa0] sm:$0xff]  ;;  %v5226_v30 = vpack.c.bf16 %v3523_v27, %v3522_v24  ;;  %5225 = vmatprep.subr.bf16.mxu0 %v5224_v35 }
 0x320   : > { %v5228_v31 = vpack.c.bf16 %v3541_v29, %v3540_v28  ;;  %v3532_v27 = vld [vmem:[%s9692_s7 + $0x60] sm:$0xff]  ;;  %v3534_v28 = vld [vmem:[%s9692_s7 + $0x70] sm:$0xff]  ;;  %v3535_v29 = vld [vmem:[%s9692_s7 + $0x78] sm:$0xff] }
 0x321   : > { %v5246_v11 = vpack.c.bf16 %v3533_v0, %v3532_v27 }
 0x322   : > { %5187 = vmatpush1.bf16.msra.mxu1 %v5186_v34  ;;  %v3525_v34 = vld [vmem:[%s9692_s7 + $0x28] sm:$0xff]  ;;  %5227 = vmatpush3.bf16.msra.mxu0 %v5226_v30  ;;  %v5250_v30 = vpack.c.bf16 %v3535_v29, %v3534_v28 }
 0x323   : > { %5189 = vmatprep.subr.bf16.mxu1 %v5188_v36  ;;  %v3542_v36 = vld [vmem:[%s9692_s7 + $0xb0] sm:$0xff]  ;;  %v5230_v37 = vpack.c.bf16 %v3525_v34, %v3524_v32  ;;  %5229 = vmatprep.subr.bf16.mxu0 %v5228_v31  ;;  %v3218_v31 = vld [vmem:[%s9691_s6] sm:$0x3] }
 0x324   : > { %v5232_v38 = vpack.c.bf16 %v3543_v21, %v3542_v36  ;;  %v3223_v32 = vrot.slane %v3218_v31, %v6546_v1  ;;  %v3227_v34 = vrot.slane %v3218_v31, %v6554_v3 }
 0x326   : > { %5191 = vmatpush1.bf16.msra.mxu1 %v5190_v40  ;;  %v3527_v40 = vld [vmem:[%s9692_s7 + $0x38] sm:$0xff]  ;;  %5231 = vmatpush3.bf16.msra.mxu0 %v5230_v37 }
 0x327   : > { %5193 = vmatprep.subr.bf16.mxu1 %v5192_v43  ;;  %v3544_v43 = vld [vmem:[%s9692_s7 + $0xc0] sm:$0xff]  ;;  %v5234_v46 = vpack.c.bf16 %v3527_v40, %v3526_v39  ;;  %5233 = vmatprep.subr.bf16.mxu0 %v5232_v38 }
 0x328   : > { %v5236_v47 = vpack.c.bf16 %v3545_v45, %v3544_v43  ;;  %v3705_v45 = vld [vmem:[#allocation2] ss:$0 sm:$0xff] }
 0x32a   : > { %5195 = vmatpush1.bf16.msra.mxu1 %v5194_v44  ;;  %v3529_v44 = vld [vmem:[%s9692_s7 + $0x48] sm:$0xff]  ;;  %5235 = vmatpush3.bf16.msra.mxu0 %v5234_v46 }
 0x32b   : > { %5197 = vmatprep.subr.bf16.mxu1 %v5196_v49  ;;  %v3546_v49 = vld [vmem:[%s9692_s7 + $0xd0] sm:$0xff]  ;;  %v5238_v53 = vpack.c.bf16 %v3529_v44, %v3528_v48  ;;  %5237 = vmatprep.subr.bf16.mxu0 %v5236_v47 }
 0x32c   : > { %v5240_v22 = vpack.c.bf16 %v3547_v2, %v3546_v49 }
 0x32e   : > { %5199 = vmatpush1.bf16.msra.mxu1 %v5198_v41  ;;  %v3531_v41 = vld [vmem:[%s9692_s7 + $0x58] sm:$0xff]  ;;  %5239 = vmatpush3.bf16.msra.mxu0 %v5238_v53 }
 0x32f   : > { %5201 = vmatprep.subr.bf16.mxu1 %v5200_v50  ;;  %v3548_v50 = vld [vmem:[%s9692_s7 + $0xe0] sm:$0xff]  ;;  %v5242_v52 = vpack.c.bf16 %v3531_v41, %v3530_v42  ;;  %5241 = vmatprep.subr.bf16.mxu0 %v5240_v22 }
 0x330   : > { %v5244_v54 = vpack.c.bf16 %v3549_v19, %v3548_v50 }
 0x332   : > { %5203 = vmatpush1.bf16.msra.mxu1 %v5202_v58  ;;  %5243 = vmatpush3.bf16.msra.mxu0 %v5242_v52  ;;  %v1867_v58 = vrot.slane %v8915_v5, %v607_v25  ;;  %v3217_v25 = vld [vmem:[%s9690_s5 + $0x638] sm:$0xff] }
 0x333   : > { %5205 = vmatprep.subr.bf16.mxu1 %v5204_v60  ;;  %5245 = vmatprep.subr.bf16.mxu0 %v5244_v54  ;;  %v5216_v8 = vpack.c.bf16 %v3217_v25, %v3215_v4 }
 0x336   : > { %5207 = vmatpush1.bf16.msra.mxu1 %v5206_v59  ;;  %v3210_v59 = vld [vmem:[%s9690_s5 + $0x600] sm:$0xff]  ;;  %5247 = vmatpush3.bf16.msra.mxu0 %v5246_v11 }
 0x337   : > { %5209 = vmatprep.subr.bf16.mxu1 %v5208_v7  ;;  %v5214_v7 = vpack.c.bf16 %v3212_v63, %v3210_v59 }
 0x33a   : > { %5211 = vmatpush1.bf16.msra.mxu1 %v5210_v12  ;;  %v3214_v12 = vld [vmem:[%s9690_s5 + $0x620] sm:$0xff] }
 0x33b   : > { %5213 = vmatprep.subr.bf16.mxu1 %v5212_v51  ;;  %v5218_v13 = vpack.c.bf16 %v3216_v57, %v3214_v12  ;;  %v5303_v51 = vmov 0.0  }
 0x3b6   : > { %v2726_v60 = vpop.f32.mrb[6].mxu0 }
 0x3b7   : > { %v5256_v61 = vadd.f32 %v2726_v60, %v1863_v55  ;;  %v2728_v62 = vpop.f32.mrb[7].mxu0 }
 0x3b8   : > { %v5257_v6 = vadd.f32 %v2728_v62, %v1867_v58 }
 0x3b9   : > { %v3015_v9 = vmax.f32 %v5256_v61, 0.0 }
 0x3ba   : > { %v3016_v5 = vmax.f32 %v5257_v6, 0.0 }
 0x3bc   : > { %3440 = vmatprep.mubr.f32.mxu1 %v3016_v5 }
 0x3bd   : > { %3441 = vmatmul.mubr.f32.vlgmr.msra.gmra.mrb[12].mxu1 %v3015_v9 }
 0x3be   : > { %5215 = vmatpush1.bf16.msra.mxu1 %v5214_v7  ;;  %3511 = vmatprep.mubr.f32.mxu1 %v5303_v51 }
 0x3bf   : > { %5217 = vmatprep.subr.bf16.mxu1 %v5216_v8 }
 0x3c2   : > { %5219 = vmatpush1.bf16.msra.mxu1 %v5218_v13 }
 0x3d6   : > { %v3741_v14 = vpop.f32.mrb[8].mxu0 }
 0x3d7   : > { %v3742_v17 = vpop.f32.mrb[9].mxu0 }
 0x3d8   : > { %v3743_v16 = vadd.f32 %v3742_v17, %v3741_v14 }
 0x3da   : > { %v2798_v18 = vadd.f32 %v3743_v16, %v1871_v15 }
 0x3dc   : > { %v2868_v20 = vadd.f32 %v9154_v33, %v2798_v18  ;;  %v3550_v33 = vld [vmem:[%s9692_s7 + $0xf0] sm:$0xff] }
 0x3de   : > { %v2938_v23 = vadd.f32 %v9354_v56, %v2868_v20  ;;  %v3551_v56 = vld [vmem:[%s9692_s7 + $0xf8] sm:$0xff] }
 0x3e0   : > { %v3008_v35 = vadd.f32 %v9459_v26, %v2938_v23  ;;  %v5248_v26 = vpack.c.bf16 %v3551_v56, %v3550_v33 }
 0x3e2   : > { %v3017_v24 = vmax.f32 %v3008_v35, 0.0  ;;  %5249 = vmatprep.subr.bf16.mxu0 %v5248_v26 }
 0x3e3   : > { %5251 = vmatpush3.bf16.msra.mxu0 %v5250_v30 }
 0x3e4   : > { %3704 = vmatmul.mubr.msk.f32.vlgmr.msra.gmra.mrb[12].mxu1 %vm3230_vm2, %v3017_v24 }
 0x4b7   : > { %v3513_v36 = vpop.f32.mrb[12].mxu1 }
 0x4b8   : > { %v5258_v21 = vadd.f32 %v3513_v36, %v3223_v32  ;;  %v3515_v37 = vpop.f32.mrb[13].mxu1 }
 0x4b9   : > { %v5259_v38 = vadd.f32 %v3515_v37, %v3227_v34 }
 0x4ba   : > { %v3518_v40 = vmax.f32 %v5258_v21, 0.0 }
 0x4bb   : > { %v3519_v39 = vmax.f32 %v5259_v38, 0.0 }
 0x4bd   : > { %3623 = vmatprep.mubr.f32.mxu0 %v3519_v39 }
 0x4be   : > { %3624 = vmatmul.mubr.f32.vlgmr.msra.gmra.mrb[10].mxu0 %v3518_v40 }
 0x591   : > { %v3881_v43 = vpop.f32.mrb[10].mxu0 }
 0x592   : > { %v3882_v46 = vpop.f32.mrb[11].mxu0 }
 0x593   : > { %v3883_v47 = vadd.f32 %v3882_v46, %v3881_v43 }
 0x595   : > { %v3626_v1 = vadd.f32 %v3883_v47, %v3705_v45 }
 0x597   : > { %3630 = vst.msk [vmem:[%s332_s30] sm:$0xff] %vm3629_vm3, %v3626_v1 }
 0x598 PF: > { %s21_s11 = sadd.s32 1, %s5301_s11  }
 0x599   : > { %p18_p4 = scmp.ge.s32.totalorder %s21_s11, 4  }
 0x59b   :  { %20 = sbr.rel (!%p18_p4) target bundleno = 3 (0x3), region = 86 }

</bundles_post_ra>
